<compile_context>
chip_gen: v6e
topology: v6e:2x2x1
jax: 0.10.0
libtpu: 0.0.40
codegen_flags: <defaults>
</compile_context>

<pallas_src>
import functools

import jax
import jax.numpy as jnp
from jax.experimental import pallas as pl
from jax.experimental.pallas import tpu as pltpu

BN_EPS = 1e-5
LANE = 128
_OFF = 8   # sublane-aligned offset of the interior inside the halo scratch buffers


def _round_up(x, m):
    return ((x + m - 1) // m) * m


# ------------------------------ fused Pallas kernel ----------------------------

def _resblock_kernel(*refs, stride, in_hw, out_hw, cin, cout, cout_pad,
                     has_downsample, fuse_couts, compute_dtype):
    """Whole ResBlock for one image: conv1(+ds) -> BN -> ReLU -> conv2 -> BN ->
    +identity -> ReLU.  Each conv is a single big-K MXU contraction over an
    in-VMEM im2col patch matrix; nothing intermediate leaves VMEM."""
    x_ref, w1_ref, b1_ref = refs[0], refs[1], refs[2]
    idx = 3
    if has_downsample and not fuse_couts:
        wd_ref, bd_ref = refs[3], refs[4]
        idx = 5
    w2_ref, b2_ref = refs[idx], refs[idx + 1]
    o_ref = refs[idx + 2]
    scratch = refs[idx + 3:]
    if stride == 1:
        xpad_ref, mid_ref = scratch
    else:
        (mid_ref,) = scratch

    H, W = in_hw
    Ho, Wo = out_hw
    HWo = Ho * Wo
    f32 = jnp.float32

    # ---- conv1 patch matrix, K = 9*Cin (channels NOT padded) ------------------
    if stride == 1:
        # In-kernel 1-px halo pad: zero the scratch, drop the image at a
        # sublane-aligned interior offset (_OFF) so the store is unmasked/aligned.
        xpad_ref[...] = jnp.zeros_like(xpad_ref)
        xpad_ref[1:H + 1, _OFF:_OFF + W, :] = x_ref[0].astype(xpad_ref.dtype)
        xp = xpad_ref[...]
        taps = [xp[dy:dy + Ho, _OFF - 1 + dx:_OFF - 1 + dx + Wo, :].reshape(HWo, cin)
                for dy in range(3) for dx in range(3)]
    else:
        # Stride realized on polyphase planes (only strided outputs are computed).
        s = stride
        phase = [x_ref[0, p] for p in range(s * s)]
        taps = []
        for dy in range(3):
            for dx in range(3):
                p = (dy % s) * s + (dx % s)
                qy, qx = dy // s, dx // s
                taps.append(phase[p][qy:qy + Ho, qx:qx + Wo, :].reshape(HWo, cin))
    patches1 = jnp.concatenate(taps, axis=-1).astype(compute_dtype)

    # ---- conv1 (+ optional downsample conv) sharing the patch matrix ----------
    if fuse_couts:
        # [w1 | wd] concatenated along Cout -> one wide (N = 2*Cout) MXU pass.
        y1 = (jnp.dot(patches1, w1_ref[...].astype(compute_dtype),
                      preferred_element_type=f32) + b1_ref[...].astype(f32))
        out1 = jnp.maximum(y1[:, :cout], 0.0)            # conv1 -> BN1 -> ReLU
        identity = y1[:, cout:2 * cout]                  # ds conv -> BNd (no ReLU)
    else:
        out1 = jnp.maximum(
            jnp.dot(patches1, w1_ref[...].astype(compute_dtype),
                    preferred_element_type=f32) + b1_ref[...].astype(f32), 0.0)
        if has_downsample:
            identity = (jnp.dot(patches1, wd_ref[...].astype(compute_dtype),
                                preferred_element_type=f32)
                        + bd_ref[...].astype(f32))
        else:
            # Module guarantees stride==1 and Cin==Cout here: identity is x itself.
            identity = x_ref[0].astype(f32).reshape(HWo, cout)

    # ---- conv2 patch matrix from the VMEM-resident intermediate (never in HBM) -
    mid_ref[...] = jnp.zeros_like(mid_ref)
    mid_ref[1:Ho + 1, _OFF:_OFF + Wo, :] = out1.reshape(Ho, Wo, cout)
    mid = mid_ref[...]
    taps2 = [mid[dy:dy + Ho, _OFF - 1 + dx:_OFF - 1 + dx + Wo, :].reshape(HWo, cout)
             for dy in range(3) for dx in range(3)]
    patches2 = jnp.concatenate(taps2, axis=-1).astype(compute_dtype)

    # ---- conv2 + folded BN2 + fused residual add + final ReLU -----------------
    y2 = (jnp.dot(patches2, w2_ref[...].astype(compute_dtype),
                  preferred_element_type=f32) + b2_ref[...].astype(f32))
    if cout_pad > cout:
        identity = jnp.concatenate(
            [identity, jnp.zeros((HWo, cout_pad - cout), f32)], axis=-1)
    o_ref[0] = jnp.maximum(y2 + identity, 0.0).astype(o_ref.dtype)   # lane-dense store


# ------------------------------ BN folding --------------------------------------

def fold_bn(w_kkio, bn, eps=BN_EPS):
    """Fold inference-mode BN into the conv weight (per-Cout scale) and a bias.
    Returns ((9*Cin, Cout) weight matrix, (1, Cout) bias) -- no channel padding."""
    gamma, beta, mean, var = bn
    scale = gamma / jnp.sqrt(var + eps)
    bias = beta - mean * scale
    w = (w_kkio * scale[None, None, None, :]).astype(jnp.float32)
    return w.reshape(-1, w.shape[-1]), bias.reshape(1, -1).astype(jnp.float32)


# ------------------------------- ResBlock wrapper --------------------------------

def resblock_forward(params, x_nchw, *, stride=1, do_downsample=False,
                     compute_dtype=jnp.float32, keep_padded_nhwc=False):
    x = jnp.transpose(x_nchw, (0, 2, 3, 1))                   # NCHW -> NHWC
    N, H, W, Cin = x.shape
    cout = int(params["w1"].shape[-1])
    cp = _round_up(cout, LANE)                                # lane-dense output width
    s = int(stride)
    Ho, Wo = (H - 1) // s + 1, (W - 1) // s + 1
    HWo = Ho * Wo

    w1, b1 = fold_bn(params["w1"], params["bn1"])             # (9*Cin, cout)
    w2, b2 = fold_bn(params["w2"], params["bn2"])             # (9*cout, cout)
    # Pad ONLY the final output channel dim (lane-dense store); K stays 9*C_real.
    w2 = jnp.pad(w2, ((0, 0), (0, cp - cout)))
    b2 = jnp.pad(b2, ((0, 0), (0, cp - cout)))

    # Wide-MXU trick only when the split offsets are lane-tile aligned.
    fuse_couts = bool(do_downsample) and (cout % LANE == 0)

    args, in_specs = [], []
    if s == 1:
        xin = x                                               # halo pad done in-kernel
        in_specs.append(pl.BlockSpec((1, H, W, Cin), lambda n: (n, 0, 0, 0)))
    else:
        Hp, Wp = H + 2, W + 2
        Hps, Wps = _round_up(Hp, s), _round_up(Wp, s)
        xp = jnp.pad(x, ((0, 0), (1, 1 + Hps - Hp), (1, 1 + Wps - Wp), (0, 0)))
        xin = jnp.stack([xp[:, ry::s, rx::s, :]
                         for ry in range(s) for rx in range(s)], axis=1)
        in_specs.append(pl.BlockSpec((1,) + tuple(xin.shape[1:]),
                                     lambda n: (n, 0, 0, 0, 0)))
    args.append(xin)

    if do_downsample:
        wd, bd = fold_bn(params["wd"], params["bnd"])
        if fuse_couts:
            w1 = jnp.concatenate([w1, wd], axis=-1)
            b1 = jnp.concatenate([b1, bd], axis=-1)
    weight_args = [w1, b1]
    if do_downsample and not fuse_couts:
        weight_args += [wd, bd]
    weight_args += [w2, b2]
    for wm in weight_args:
        in_specs.append(pl.BlockSpec(wm.shape, lambda n: (0, 0)))   # fetched once
    args += weight_args

    scratch = []
    if s == 1:
        scratch.append(pltpu.VMEM((H + 2, W + 2 + _OFF - 1, Cin), jnp.float32))
    scratch.append(pltpu.VMEM((Ho + 2, Wo + 2 + _OFF - 1, cout), jnp.float32))

    kern = functools.partial(
        _resblock_kernel, stride=s, in_hw=(H, W), out_hw=(Ho, Wo), cin=Cin,
        cout=cout, cout_pad=cp, has_downsample=bool(do_downsample),
        fuse_couts=fuse_couts, compute_dtype=compute_dtype)

    out = pl.pallas_call(
        kern,
        out_shape=jax.ShapeDtypeStruct((N, HWo, cp), jnp.float32),
        grid_spec=pltpu.PrefetchScalarGridSpec(
            num_scalar_prefetch=0,
            grid=(N,),
            in_specs=in_specs,
            out_specs=pl.BlockSpec((1, HWo, cp), lambda n: (n, 0, 0)),
            scratch_shapes=scratch),
        compiler_params=pltpu.CompilerParams(
            # Batch axis is independent -> shards across TensorCores on v7x.
            dimension_semantics=("parallel",),
            # Working set is < 1 MiB; keep the cap well under v7x's 64 MiB physical.
            vmem_limit_bytes=32 * 1024 * 1024),
    )(*args)

    y = out.reshape(N, Ho, Wo, cp)
    if keep_padded_nhwc:
        return y                         # chained blocks: keep lane-dense NHWC layout
    return jnp.transpose(y[..., :cout], (0, 3, 1, 2))         # NHWC -> NCHW


# ------------------------ parameters (deterministic) ----------------------------

def xavier_normal(key, shape):
    kh, kw, cin, cout = shape
    fan_in, fan_out = cin * kh * kw, cout * kh * kw
    std = (2.0 / (fan_in + fan_out)) ** 0.5
    return std * jax.random.normal(key, shape, dtype=jnp.float32)


def init_resblock_params(key, in_channels, out_channels, stride=1):
    k1, k2, k3 = jax.random.split(key, 3)

    def bn_params(c):
        return (jnp.ones(c, jnp.float32), jnp.zeros(c, jnp.float32),
                jnp.zeros(c, jnp.float32), jnp.ones(c, jnp.float32))

    params = {
        "w1": xavier_normal(k1, (3, 3, in_channels, out_channels)),
        "bn1": bn_params(out_channels),
        "w2": xavier_normal(k2, (3, 3, out_channels, out_channels)),
        "bn2": bn_params(out_channels),
    }
    do_downsample = (in_channels != out_channels) or (stride != 1)
    if do_downsample:
        params["wd"] = xavier_normal(k3, (3, 3, in_channels, out_channels))
        params["bnd"] = bn_params(out_channels)
    return params, do_downsample


# --------------------------- pure-JAX reference ----------------------------------

def ref_forward(params, x_nchw, stride, do_downsample):
    def conv(x, w_kkio, s):
        w = jnp.transpose(w_kkio, (3, 2, 0, 1))  # -> OIHW
        return jax.lax.conv_general_dilated(
            x, w, (s, s), ((1, 1), (1, 1)),
            dimension_numbers=("NCHW", "OIHW", "NCHW"))

    def bn(x, p):
        g, b, m, v = p
        inv = (g / jnp.sqrt(v + BN_EPS))[None, :, None, None]
        return (x - m[None, :, None, None]) * inv + b[None, :, None, None]

    out = jax.nn.relu(bn(conv(x_nchw, params["w1"], stride), params["bn1"]))
    out = bn(conv(out, params["w2"], 1), params["bn2"])
    identity = x_nchw
    if do_downsample:
        identity = bn(conv(x_nchw, params["wd"], stride), params["bnd"])
    return jax.nn.relu(out + identity)


# ----------------------------------- main ----------------------------------------

if __name__ == "__main__":
    key = jax.random.PRNGKey(0)
    configs = [
        # (N, Cin, Cout, H, W, stride, compute_dtype, atol, rtol)
        (2, 4, 8, 16, 16, 1, jnp.float32, 1e-4, 1e-4),   # Cin != Cout -> downsample
        (2, 8, 8, 16, 16, 2, jnp.float32, 1e-4, 1e-4),   # stride 2 -> polyphase + ds
        (2, 8, 8, 16, 16, 1, jnp.float32, 1e-4, 1e-4),   # plain identity residual
        (2, 8, 8, 16, 16, 1, jnp.bfloat16, 2e-1, 1e-1),  # bf16 MXU fast path (v6e/v7x)
    ]
    for i, (N, Cin, Cout, H, W, stride, cdt, atol, rtol) in enumerate(configs):
        kx, kp = jax.random.split(jax.random.fold_in(key, i))
        x = jax.random.normal(kx, (N, Cin, H, W), dtype=jnp.float32)
        params, do_ds = init_resblock_params(kp, Cin, Cout, stride)

        y = resblock_forward(params, x, stride=stride, do_downsample=do_ds,
                             compute_dtype=cdt)
        y = jax.block_until_ready(y)

        y_ref = ref_forward(params, x, stride, do_ds)
        assert y.shape == y_ref.shape, f"shape mismatch in config {i}"
        assert jnp.allclose(y, y_ref, atol=atol, rtol=rtol), (
            f"mismatch vs JAX reference in config {i} "
            f"(max err {float(jnp.max(jnp.abs(y - y_ref))):.2e})")

    print("KERNEL_OK")
</pallas_src>

<mosaic_0001>
module attributes {stable_mosaic.version = 11 : i64} {
  func.func @_resblock_kernel(%arg0: i32, %arg1: memref<1x16x16x4xf32, #tpu.memory_space<vmem>>, %arg2: memref<36x8xf32, #tpu.memory_space<vmem>>, %arg3: memref<1x8xf32, #tpu.memory_space<vmem>>, %arg4: memref<36x8xf32, #tpu.memory_space<vmem>>, %arg5: memref<1x8xf32, #tpu.memory_space<vmem>>, %arg6: memref<72x128xf32, #tpu.memory_space<vmem>>, %arg7: memref<1x128xf32, #tpu.memory_space<vmem>>, %arg8: memref<1x256x128xf32, #tpu.memory_space<vmem>>, %arg9: memref<18x25x4xf32, #tpu.memory_space<vmem>>, %arg10: memref<18x25x8xf32, #tpu.memory_space<vmem>>) attributes {dimension_semantics = [#tpu.dimension_semantics<parallel>], iteration_bounds = array<i64: 2>, scalar_prefetch = 0 : i64, scratch_operands = 2 : i64, tpu.core_type = #tpu.core_type<tc>, window_params = [{transform_indices = @transform_0, window_bounds = array<i64: 1, 16, 16, 4>}, {pipeline_mode = #tpu.pipeline_mode<synchronous>, transform_indices = @transform_1, window_bounds = array<i64: 36, 8>}, {pipeline_mode = #tpu.pipeline_mode<synchronous>, transform_indices = @transform_2, window_bounds = array<i64: 1, 8>}, {pipeline_mode = #tpu.pipeline_mode<synchronous>, transform_indices = @transform_3, window_bounds = array<i64: 36, 8>}, {pipeline_mode = #tpu.pipeline_mode<synchronous>, transform_indices = @transform_4, window_bounds = array<i64: 1, 8>}, {pipeline_mode = #tpu.pipeline_mode<synchronous>, transform_indices = @transform_5, window_bounds = array<i64: 72, 128>}, {pipeline_mode = #tpu.pipeline_mode<synchronous>, transform_indices = @transform_6, window_bounds = array<i64: 1, 128>}, {transform_indices = @transform_7, window_bounds = array<i64: 1, 256, 128>}]} {
    %cst = arith.constant 0.000000e+00 : f32
    %0 = vector.broadcast %cst : f32 to vector<18x25x4xf32>
    %c0 = arith.constant 0 : index
    %c0_0 = arith.constant 0 : index
    %c0_1 = arith.constant 0 : index
    %1 = vector.load %arg9[%c0, %c0_0, %c0_1] : memref<18x25x4xf32, #tpu.memory_space<vmem>>, vector<18x25x4xf32>
    tpu.vector_store %arg9[%c0, %c0_0, %c0_1], %0 {strides = array<i32>} : memref<18x25x4xf32, #tpu.memory_space<vmem>>, vector<18x25x4xf32>,
    %c0_2 = arith.constant 0 : index
    %c0_3 = arith.constant 0 : index
    %c0_4 = arith.constant 0 : index
    %c0_5 = arith.constant 0 : index
    %2 = vector.load %arg1[%c0_2, %c0_3, %c0_4, %c0_5] : memref<1x16x16x4xf32, #tpu.memory_space<vmem>>, vector<1x16x16x4xf32>
    %3 = vector.shape_cast %2 : vector<1x16x16x4xf32> to vector<16x16x4xf32>
    %c1 = arith.constant 1 : index
    %c8 = arith.constant 8 : index
    %c0_6 = arith.constant 0 : index
    %4 = vector.load %arg9[%c1, %c8, %c0_6] : memref<18x25x4xf32, #tpu.memory_space<vmem>>, vector<16x16x4xf32>
    tpu.vector_store %arg9[%c1, %c8, %c0_6], %3 {strides = array<i32>} : memref<18x25x4xf32, #tpu.memory_space<vmem>>, vector<16x16x4xf32>,
    %c0_7 = arith.constant 0 : index
    %c0_8 = arith.constant 0 : index
    %c0_9 = arith.constant 0 : index
    %5 = vector.load %arg9[%c0_7, %c0_8, %c0_9] : memref<18x25x4xf32, #tpu.memory_space<vmem>>, vector<18x25x4xf32>
    %6 = vector.extract_strided_slice %5 {offsets = [0, 7, 0], sizes = [16, 16, 4], strides = [1, 1, 1]} : vector<18x25x4xf32> to vector<16x16x4xf32>
    %7 = vector.shape_cast %6 : vector<16x16x4xf32> to vector<256x4xf32>
    %8 = vector.extract_strided_slice %5 {offsets = [0, 8, 0], sizes = [16, 16, 4], strides = [1, 1, 1]} : vector<18x25x4xf32> to vector<16x16x4xf32>
    %9 = vector.shape_cast %8 : vector<16x16x4xf32> to vector<256x4xf32>
    %10 = vector.extract_strided_slice %5 {offsets = [0, 9, 0], sizes = [16, 16, 4], strides = [1, 1, 1]} : vector<18x25x4xf32> to vector<16x16x4xf32>
    %11 = vector.shape_cast %10 : vector<16x16x4xf32> to vector<256x4xf32>
    %12 = vector.extract_strided_slice %5 {offsets = [1, 7, 0], sizes = [16, 16, 4], strides = [1, 1, 1]} : vector<18x25x4xf32> to vector<16x16x4xf32>
    %13 = vector.shape_cast %12 : vector<16x16x4xf32> to vector<256x4xf32>
    %14 = vector.extract_strided_slice %5 {offsets = [1, 8, 0], sizes = [16, 16, 4], strides = [1, 1, 1]} : vector<18x25x4xf32> to vector<16x16x4xf32>
    %15 = vector.shape_cast %14 : vector<16x16x4xf32> to vector<256x4xf32>
    %16 = vector.extract_strided_slice %5 {offsets = [1, 9, 0], sizes = [16, 16, 4], strides = [1, 1, 1]} : vector<18x25x4xf32> to vector<16x16x4xf32>
    %17 = vector.shape_cast %16 : vector<16x16x4xf32> to vector<256x4xf32>
    %18 = vector.extract_strided_slice %5 {offsets = [2, 7, 0], sizes = [16, 16, 4], strides = [1, 1, 1]} : vector<18x25x4xf32> to vector<16x16x4xf32>
    %19 = vector.shape_cast %18 : vector<16x16x4xf32> to vector<256x4xf32>
    %20 = vector.extract_strided_slice %5 {offsets = [2, 8, 0], sizes = [16, 16, 4], strides = [1, 1, 1]} : vector<18x25x4xf32> to vector<16x16x4xf32>
    %21 = vector.shape_cast %20 : vector<16x16x4xf32> to vector<256x4xf32>
    %22 = vector.extract_strided_slice %5 {offsets = [2, 9, 0], sizes = [16, 16, 4], strides = [1, 1, 1]} : vector<18x25x4xf32> to vector<16x16x4xf32>
    %23 = vector.shape_cast %22 : vector<16x16x4xf32> to vector<256x4xf32>
    %24 = tpu.concatenate %7, %9, %11, %13, %15, %17, %19, %21, %23 in 1 : vector<256x4xf32>, vector<256x4xf32>, vector<256x4xf32>, vector<256x4xf32>, vector<256x4xf32>, vector<256x4xf32>, vector<256x4xf32>, vector<256x4xf32>, vector<256x4xf32> -> vector<256x36xf32>
    %c0_10 = arith.constant 0 : index
    %c0_11 = arith.constant 0 : index
    %25 = vector.load %arg2[%c0_10, %c0_11] : memref<36x8xf32, #tpu.memory_space<vmem>>, vector<36x8xf32>
    %cst_12 = arith.constant dense<0.000000e+00> : vector<256x8xf32>
    %26 = tpu.matmul %24, %25, %cst_12 {dimension_numbers = #tpu.dot_dimension_numbers<[1], [0], [0], [1], [0, 0, 1, 1], [], []>} : vector<256x36xf32>, vector<36x8xf32>, vector<256x8xf32> -> vector<256x8xf32>
    %c0_13 = arith.constant 0 : index
    %c0_14 = arith.constant 0 : index
    %27 = vector.load %arg3[%c0_13, %c0_14] : memref<1x8xf32, #tpu.memory_space<vmem>>, vector<1x8xf32>
    %28 = vector.broadcast %27 : vector<1x8xf32> to vector<256x8xf32>
    %29 = arith.addf %26, %28 : vector<256x8xf32>
    %cst_15 = arith.constant 0.000000e+00 : f32
    %30 = vector.broadcast %cst_15 : f32 to vector<256x8xf32>
    %31 = arith.maximumf %29, %30 : vector<256x8xf32>
    %c0_16 = arith.constant 0 : index
    %c0_17 = arith.constant 0 : index
    %32 = vector.load %arg4[%c0_16, %c0_17] : memref<36x8xf32, #tpu.memory_space<vmem>>, vector<36x8xf32>
    %cst_18 = arith.constant dense<0.000000e+00> : vector<256x8xf32>
    %33 = tpu.matmul %24, %32, %cst_18 {dimension_numbers = #tpu.dot_dimension_numbers<[1], [0], [0], [1], [0, 0, 1, 1], [], []>} : vector<256x36xf32>, vector<36x8xf32>, vector<256x8xf32> -> vector<256x8xf32>
    %c0_19 = arith.constant 0 : index
    %c0_20 = arith.constant 0 : index
    %34 = vector.load %arg5[%c0_19, %c0_20] : memref<1x8xf32, #tpu.memory_space<vmem>>, vector<1x8xf32>
    %35 = vector.broadcast %34 : vector<1x8xf32> to vector<256x8xf32>
    %36 = arith.addf %33, %35 : vector<256x8xf32>
    %cst_21 = arith.constant 0.000000e+00 : f32
    %37 = vector.broadcast %cst_21 : f32 to vector<18x25x8xf32>
    %c0_22 = arith.constant 0 : index
    %c0_23 = arith.constant 0 : index
    %c0_24 = arith.constant 0 : index
    %38 = vector.load %arg10[%c0_22, %c0_23, %c0_24] : memref<18x25x8xf32, #tpu.memory_space<vmem>>, vector<18x25x8xf32>
    tpu.vector_store %arg10[%c0_22, %c0_23, %c0_24], %37 {strides = array<i32>} : memref<18x25x8xf32, #tpu.memory_space<vmem>>, vector<18x25x8xf32>,
    %39 = vector.shape_cast %31 : vector<256x8xf32> to vector<16x16x8xf32>
    %c1_25 = arith.constant 1 : index
    %c8_26 = arith.constant 8 : index
    %c0_27 = arith.constant 0 : index
    %40 = vector.load %arg10[%c1_25, %c8_26, %c0_27] : memref<18x25x8xf32, #tpu.memory_space<vmem>>, vector<16x16x8xf32>
    tpu.vector_store %arg10[%c1_25, %c8_26, %c0_27], %39 {strides = array<i32>} : memref<18x25x8xf32, #tpu.memory_space<vmem>>, vector<16x16x8xf32>,
    %c0_28 = arith.constant 0 : index
    %c0_29 = arith.constant 0 : index
    %c0_30 = arith.constant 0 : index
    %41 = vector.load %arg10[%c0_28, %c0_29, %c0_30] : memref<18x25x8xf32, #tpu.memory_space<vmem>>, vector<18x25x8xf32>
    %42 = vector.extract_strided_slice %41 {offsets = [0, 7, 0], sizes = [16, 16, 8], strides = [1, 1, 1]} : vector<18x25x8xf32> to vector<16x16x8xf32>
    %43 = vector.shape_cast %42 : vector<16x16x8xf32> to vector<256x8xf32>
    %44 = vector.extract_strided_slice %41 {offsets = [0, 8, 0], sizes = [16, 16, 8], strides = [1, 1, 1]} : vector<18x25x8xf32> to vector<16x16x8xf32>
    %45 = vector.shape_cast %44 : vector<16x16x8xf32> to vector<256x8xf32>
    %46 = vector.extract_strided_slice %41 {offsets = [0, 9, 0], sizes = [16, 16, 8], strides = [1, 1, 1]} : vector<18x25x8xf32> to vector<16x16x8xf32>
    %47 = vector.shape_cast %46 : vector<16x16x8xf32> to vector<256x8xf32>
    %48 = vector.extract_strided_slice %41 {offsets = [1, 7, 0], sizes = [16, 16, 8], strides = [1, 1, 1]} : vector<18x25x8xf32> to vector<16x16x8xf32>
    %49 = vector.shape_cast %48 : vector<16x16x8xf32> to vector<256x8xf32>
    %50 = vector.extract_strided_slice %41 {offsets = [1, 8, 0], sizes = [16, 16, 8], strides = [1, 1, 1]} : vector<18x25x8xf32> to vector<16x16x8xf32>
    %51 = vector.shape_cast %50 : vector<16x16x8xf32> to vector<256x8xf32>
    %52 = vector.extract_strided_slice %41 {offsets = [1, 9, 0], sizes = [16, 16, 8], strides = [1, 1, 1]} : vector<18x25x8xf32> to vector<16x16x8xf32>
    %53 = vector.shape_cast %52 : vector<16x16x8xf32> to vector<256x8xf32>
    %54 = vector.extract_strided_slice %41 {offsets = [2, 7, 0], sizes = [16, 16, 8], strides = [1, 1, 1]} : vector<18x25x8xf32> to vector<16x16x8xf32>
    %55 = vector.shape_cast %54 : vector<16x16x8xf32> to vector<256x8xf32>
    %56 = vector.extract_strided_slice %41 {offsets = [2, 8, 0], sizes = [16, 16, 8], strides = [1, 1, 1]} : vector<18x25x8xf32> to vector<16x16x8xf32>
    %57 = vector.shape_cast %56 : vector<16x16x8xf32> to vector<256x8xf32>
    %58 = vector.extract_strided_slice %41 {offsets = [2, 9, 0], sizes = [16, 16, 8], strides = [1, 1, 1]} : vector<18x25x8xf32> to vector<16x16x8xf32>
    %59 = vector.shape_cast %58 : vector<16x16x8xf32> to vector<256x8xf32>
    %60 = tpu.concatenate %43, %45, %47, %49, %51, %53, %55, %57, %59 in 1 : vector<256x8xf32>, vector<256x8xf32>, vector<256x8xf32>, vector<256x8xf32>, vector<256x8xf32>, vector<256x8xf32>, vector<256x8xf32>, vector<256x8xf32>, vector<256x8xf32> -> vector<256x72xf32>
    %c0_31 = arith.constant 0 : index
    %c0_32 = arith.constant 0 : index
    %61 = vector.load %arg6[%c0_31, %c0_32] : memref<72x128xf32, #tpu.memory_space<vmem>>, vector<72x128xf32>
    %cst_33 = arith.constant dense<0.000000e+00> : vector<256x128xf32>
    %62 = tpu.matmul %60, %61, %cst_33 {dimension_numbers = #tpu.dot_dimension_numbers<[1], [0], [0], [1], [0, 0, 1, 1], [], []>} : vector<256x72xf32>, vector<72x128xf32>, vector<256x128xf32> -> vector<256x128xf32>
    %c0_34 = arith.constant 0 : index
    %c0_35 = arith.constant 0 : index
    %63 = vector.load %arg7[%c0_34, %c0_35] : memref<1x128xf32, #tpu.memory_space<vmem>>, vector<1x128xf32>
    %64 = vector.broadcast %63 : vector<1x128xf32> to vector<256x128xf32>
    %65 = arith.addf %62, %64 : vector<256x128xf32>
    %cst_36 = arith.constant 0.000000e+00 : f32
    %66 = vector.broadcast %cst_36 : f32 to vector<256x120xf32>
    %67 = tpu.concatenate %36, %66 in 1 : vector<256x8xf32>, vector<256x120xf32> -> vector<256x128xf32>
    %68 = arith.addf %65, %67 : vector<256x128xf32>
    %cst_37 = arith.constant 0.000000e+00 : f32
    %69 = vector.broadcast %cst_37 : f32 to vector<256x128xf32>
    %70 = arith.maximumf %68, %69 : vector<256x128xf32>
    %c0_38 = arith.constant 0 : index
    %c0_39 = arith.constant 0 : index
    %c0_40 = arith.constant 0 : index
    %71 = vector.load %arg8[%c0_38, %c0_39, %c0_40] : memref<1x256x128xf32, #tpu.memory_space<vmem>>, vector<1x256x128xf32>
    %72 = vector.shape_cast %71 : vector<1x256x128xf32> to vector<256x128xf32>
    %73 = vector.shape_cast %70 : vector<256x128xf32> to vector<1x256x128xf32>
    tpu.vector_store %arg8[%c0_38, %c0_39, %c0_40], %73 {strides = array<i32>} : memref<1x256x128xf32, #tpu.memory_space<vmem>>, vector<1x256x128xf32>,
    return
  }
  func.func @transform_0(%arg0: i32) -> (i32, i32, i32, i32) {
    %c0_i32 = arith.constant 0 : i32
    %c0_i32_0 = arith.constant 0 : i32
    %c0_i32_1 = arith.constant 0 : i32
    %c0_i32_2 = arith.constant 0 : i32
    return %arg0, %c0_i32, %c0_i32_0, %c0_i32_1 : i32, i32, i32, i32
  }
  func.func @transform_1(%arg0: i32) -> (i32, i32) {
    %c0_i32 = arith.constant 0 : i32
    %c0_i32_0 = arith.constant 0 : i32
    %c0_i32_1 = arith.constant 0 : i32
    return %c0_i32, %c0_i32_0 : i32, i32
  }
  func.func @transform_2(%arg0: i32) -> (i32, i32) {
    %c0_i32 = arith.constant 0 : i32
    %c0_i32_0 = arith.constant 0 : i32
    %c0_i32_1 = arith.constant 0 : i32
    return %c0_i32, %c0_i32_0 : i32, i32
  }
  func.func @transform_3(%arg0: i32) -> (i32, i32) {
    %c0_i32 = arith.constant 0 : i32
    %c0_i32_0 = arith.constant 0 : i32
    %c0_i32_1 = arith.constant 0 : i32
    return %c0_i32, %c0_i32_0 : i32, i32
  }
  func.func @transform_4(%arg0: i32) -> (i32, i32) {
    %c0_i32 = arith.constant 0 : i32
    %c0_i32_0 = arith.constant 0 : i32
    %c0_i32_1 = arith.constant 0 : i32
    return %c0_i32, %c0_i32_0 : i32, i32
  }
  func.func @transform_5(%arg0: i32) -> (i32, i32) {
    %c0_i32 = arith.constant 0 : i32
    %c0_i32_0 = arith.constant 0 : i32
    %c0_i32_1 = arith.constant 0 : i32
    return %c0_i32, %c0_i32_0 : i32, i32
  }
  func.func @transform_6(%arg0: i32) -> (i32, i32) {
    %c0_i32 = arith.constant 0 : i32
    %c0_i32_0 = arith.constant 0 : i32
    %c0_i32_1 = arith.constant 0 : i32
    return %c0_i32, %c0_i32_0 : i32, i32
  }
  func.func @transform_7(%arg0: i32) -> (i32, i32, i32) {
    %c0_i32 = arith.constant 0 : i32
    %c0_i32_0 = arith.constant 0 : i32
    %c0_i32_1 = arith.constant 0 : i32
    return %arg0, %c0_i32, %c0_i32_0 : i32, i32, i32
  }
}

</mosaic_0001>

<bundles_post_ra>
// kernel: tpu_custom_call.1
= control target key start
LH: loop header
LB: loop body
LE: loop exit
PB: predicated region body
PF: predicated region fallthrough
CT: control target
= control target key end

     0   :  { %12 = vsyncpa [#allocation5], 0  ;;  %s9156_s0 = inlined_call_operand.vmem [shape: f32[2,16,16,4], index: 0, kind: input, shape index: {}]   ;;  %s9157_s1 = inlined_call_operand.vmem [shape: f32[36,8], index: 1, kind: input, shape index: {}]   ;;  %s9158_s2 = inlined_call_operand.vmem [shape: f32[1,8], index: 2, kind: input, shape index: {}]   ;;  %s9159_s3 = inlined_call_operand.vmem [shape: f32[36,8], index: 3, kind: input, shape index: {}]   ;;  %s9160_s4 = inlined_call_operand.vmem [shape: f32[1,8], index: 4, kind: input, shape index: {}]   ;;  %s9161_s5 = inlined_call_operand.vmem [shape: f32[72,128], index: 5, kind: input, shape index: {}]   ;;  %s9162_s6 = inlined_call_operand.vmem [shape: f32[1,128], index: 6, kind: input, shape index: {}]   ;;  %s9163_s7 = inlined_call_operand.hbm [shape: f32[2,256,128], index: 7, kind: output, shape index: {}]  }
   0x1   :  { %14 = vsyncpa [#allocation5 + $0x1], 0  ;;  %s5086_s24 = smov 0   ;;  %s5088_s25 = smov 0  }
   0x2   :  { %s5090_s26 = smov 0   ;;  %s5092_s27 = smov 0  }
   0x3 LB: > { %s5107_s28 = sadd.s32 4294967295, %s5029_s27   ;;  %s4447_s29 = sadd.s32 4294967294, %s5029_s27   ;;  %s5029_s27 = sphi %s5092_s27, %s9937_s27   ;;  %s5025_s26 = sphi %s5090_s26, %s9936_s26   ;;  %s5021_s25 = sphi %s5088_s25, %s9935_s25   ;;  %s5017_s24 = sphi %s5086_s24, %s9934_s24  }
   0x4   : > { %s5111_s30 = sadd.s32 1, %s5029_s27   ;;  %s179_s8 = sadd.s32 1, %s5025_s26 }
   0x5   : > { %s176_s9 = ssub.s32 %s5029_s27, %s5111_s30  ;;  %p189_p0 = scmp.ne.s32.totalorder %s5025_s26, %s5021_s25 }
   0x6   : > { %p177_p1 = scmp.eq.s32.totalorder %s176_s9, 0  ;;  %p190_p2 = scmp.eq.s32.totalorder %s5107_s28, 1 }
   0x7   : > { %p195_p3 = scmp.ne.s32.totalorder %s5021_s25, %s5017_s24  ;;  %p196_p4 = scmp.eq.s32.totalorder %s4447_s29, 1 }
   0x8   : > { %s5122_s10 = scalar_select %p177_p1, %s5025_s26, %s179_s8  }
   0x9   : > { %p5124_p5 = por %p190_p2, %p189_p0  ;;  %p5128_p6 = por %p196_p4, %p195_p3 }
   0xa   : > { %p4450_p7 = scmp.ge.s32.totalorder %s5029_s27, 1  ;;  %p240_p8 = scmp.lt.s32.totalorder %s5029_s27, 3 }
   0xc   : > { %p241_p9 = pnand %p4450_p7, %p240_p8 }
   0xe   : > { %244 = sbr.rel (%p241_p9) target bundleno = 1667 (0x683), region = 48 }
  0x13   : > { %vm277_vm0 = vcmask 31744   ;;  %p272_p10 = scmp.lt.s32.totalorder %s5107_s28, 1  ;;  %vm281_vm1 = vcmask 24576   ;;  %v9164_v0 = vmov 0.0   ;;  %s5032_s18 = smov 4   ;;  %vm536_vm2 = vcmask 1040384  }
  0x14   : > { %279 = vst.msk [vmem:[#allocation2 + $0x8] sm:$0xff] %vm277_vm0, %v9164_v0  ;;  %278 = vst.msk [vmem:[#allocation2] sm:$0xff] %vm277_vm0, %v9164_v0  ;;  %vm1574_vm3 = vcmask 64512   ;;  %vm665_vm4 = vcmask 1046528   ;;  %s5033_s19 = smov 8   ;;  %s5034_s20 = smov 12  }
  0x15   : > { %280 = vst.msk [vmem:[#allocation2 + $0x10] sm:$0xff] %vm277_vm0, %v9164_v0  ;;  %283 = vst.msk [vmem:[#allocation2 + $0x20] sm:$0xff] %vm277_vm0, %v9164_v0  ;;  %s273_s13 = scalar_select %p272_p10, %s5107_s28, 1  ;;  %vm1914_vm5 = vcmask 1043456   ;;  %vm1607_vm6 = vcmask 97280   ;;  %vm1640_vm7 = vcmask 130048  }
  0x16   : > { %284 = vst.msk [vmem:[#allocation2 + $0x28] sm:$0xff] %vm277_vm0, %v9164_v0  ;;  %285 = vst.msk [vmem:[#allocation2 + $0x30] sm:$0xff] %vm277_vm0, %v9164_v0  ;;  %s5035_s21 = smov 16   ;;  %s5036_s22 = smov 20   ;;  %vm1673_vm8 = vcmask 162816   ;;  %vm1706_vm9 = vcmask 195584  }
  0x17   : > { %287 = vst.msk [vmem:[#allocation2 + $0x40] sm:$0xff] %vm277_vm0, %v9164_v0  ;;  %288 = vst.msk [vmem:[#allocation2 + $0x48] sm:$0xff] %vm277_vm0, %v9164_v0  ;;  %s4560_s14 = sshll.u32 %s273_s13, 8  ;;  %s5037_s23 = smov 24   ;;  %vm1739_vm10 = vcmask 228352   ;;  %vm1772_vm11 = vcmask 261120  }
  0x18   : > { %289 = vst.msk [vmem:[#allocation2 + $0x50] sm:$0xff] %vm277_vm0, %v9164_v0  ;;  %291 = vst.msk [vmem:[#allocation2 + $0x60] sm:$0xff] %vm277_vm0, %v9164_v0  ;;  %s5285_s17 = scalar_lea.vmem %s9156_s0, %s4560_s14  ;;  %s5038_s29 = smov 28   ;;  %vm1817_vm12 = vcmask 293888   ;;  %vm2418_vm13 = vcmask 57344   ;;  %vm3773_vm14 = vcmask 326656  }
  0x19   : > { %292 = vst.msk [vmem:[#allocation2 + $0x68] sm:$0xff] %vm277_vm0, %v9164_v0  ;;  %293 = vst.msk [vmem:[#allocation2 + $0x70] sm:$0xff] %vm277_vm0, %v9164_v0  ;;  %v351_v1 = vld [vmem:[%s5285_s17] sm:$0xff]  ;;  %v353_v2 = vld [vmem:[%s5285_s17 + $0x10] sm:$0xff]  ;;  %s5039_s8 = smov 32   ;;  %s5042_s9 = smov 56  }
  0x1a   : > { %295 = vst.msk [vmem:[#allocation2 + $0x80] sm:$0xff] %vm277_vm0, %v9164_v0  ;;  %296 = vst.msk [vmem:[#allocation2 + $0x88] sm:$0xff] %vm277_vm0, %v9164_v0  ;;  %v352_v3 = vld [vmem:[%s5285_s17 + $0x8] sm:$0xff]  ;;  %v355_v4 = vld [vmem:[%s5285_s17 + $0x20] sm:$0xff]  ;;  %s5043_s13 = smov 64   ;;  %vm3806_vm15 = vcmask 392192  }
  0x1b   : > { %297 = vst.msk [vmem:[#allocation2 + $0x90] sm:$0xff] %vm277_vm0, %v9164_v0  ;;  %299 = vst.msk [vmem:[#allocation2 + $0xa0] sm:$0xff] %vm277_vm0, %v9164_v0  ;;  %v354_v5 = vld [vmem:[%s5285_s17 + $0x18] sm:$0xff]  ;;  %v357_v6 = vld [vmem:[%s5285_s17 + $0x30] sm:$0xff] }
  0x1c   : > { %300 = vst.msk [vmem:[#allocation2 + $0xa8] sm:$0xff] %vm277_vm0, %v9164_v0  ;;  %301 = vst.msk [vmem:[#allocation2 + $0xb0] sm:$0xff] %vm277_vm0, %v9164_v0  ;;  %v5296_v7 = vld [vmem:[#allocation2 + $0x8] sm:$0xff]  ;;  %v5298_v8 = vld [vmem:[#allocation2 + $0x10] sm:$0xff] }
  0x1d   : > { %303 = vst.msk [vmem:[#allocation2 + $0xc0] sm:$0xff] %vm277_vm0, %v9164_v0  ;;  %304 = vst.msk [vmem:[#allocation2 + $0xc8] sm:$0xff] %vm277_vm0, %v9164_v0  ;;  %v356_v9 = vld [vmem:[%s5285_s17 + $0x28] sm:$0xff]  ;;  %774 = vrot.lane.b32.xlu0 %v5296_v7, %s5032_s18  ;;  %v9166_v10 = vrot.slane %v5296_v7, 7  ;;  %v540_v11 = vrot.slane %v5298_v8, 7  ;;  %v359_v12 = vld [vmem:[%s5285_s17 + $0x40] sm:$0xff] }
  0x1e   : > { %305 = vst.msk [vmem:[#allocation2 + $0xd0] sm:$0xff] %vm277_vm0, %v9164_v0  ;;  %307 = vst.msk [vmem:[#allocation2 + $0xe0] sm:$0xff] %vm277_vm0, %v9164_v0  ;;  %v358_v13 = vld [vmem:[%s5285_s17 + $0x38] sm:$0xff]  ;;  %v361_v14 = vld [vmem:[%s5285_s17 + $0x50] sm:$0xff] }
  0x1f   : > { %308 = vst.msk [vmem:[#allocation2 + $0xe8] sm:$0xff] %vm277_vm0, %v9164_v0  ;;  %309 = vst.msk [vmem:[#allocation2 + $0xf0] sm:$0xff] %vm277_vm0, %v9164_v0  ;;  %v360_v15 = vld [vmem:[%s5285_s17 + $0x48] sm:$0xff]  ;;  %v363_v16 = vld [vmem:[%s5285_s17 + $0x60] sm:$0xff]  ;;  %v5325_v20 = vsel %vm536_vm2, %v9166_v10, %v540_v11 }
  0x20   : > { %311 = vst.msk [vmem:[#allocation2 + $0x100] sm:$0xff] %vm277_vm0, %v9164_v0  ;;  %312 = vst.msk [vmem:[#allocation2 + $0x108] sm:$0xff] %vm277_vm0, %v9164_v0  ;;  %v362_v17 = vld [vmem:[%s5285_s17 + $0x58] sm:$0xff]  ;;  %v365_v18 = vld [vmem:[%s5285_s17 + $0x70] sm:$0xff] }
  0x21   : > { %313 = vst.msk [vmem:[#allocation2 + $0x110] sm:$0xff] %vm277_vm0, %v9164_v0  ;;  %315 = vst.msk [vmem:[#allocation2 + $0x120] sm:$0xff] %vm277_vm0, %v9164_v0  ;;  %v364_v19 = vld [vmem:[%s5285_s17 + $0x68] sm:$0xff]  ;;  %v367_v21 = vld [vmem:[%s5285_s17 + $0x80] sm:$0xff]  ;;  %776 = vrot.lane.b32.xlu0 %v5298_v8, %s5032_s18 }
  0x22   : > { %316 = vst.msk [vmem:[#allocation2 + $0x128] sm:$0xff] %vm277_vm0, %v9164_v0  ;;  %317 = vst.msk [vmem:[#allocation2 + $0x130] sm:$0xff] %vm277_vm0, %v9164_v0  ;;  %v366_v22 = vld [vmem:[%s5285_s17 + $0x78] sm:$0xff]  ;;  %v369_v23 = vld [vmem:[%s5285_s17 + $0x90] sm:$0xff] }
  0x23   : > { %319 = vst.msk [vmem:[#allocation2 + $0x140] sm:$0xff] %vm277_vm0, %v9164_v0  ;;  %320 = vst.msk [vmem:[#allocation2 + $0x148] sm:$0xff] %vm277_vm0, %v9164_v0  ;;  %v368_v24 = vld [vmem:[%s5285_s17 + $0x88] sm:$0xff]  ;;  %v371_v25 = vld [vmem:[%s5285_s17 + $0xa0] sm:$0xff] }
  0x24   : > { %321 = vst.msk [vmem:[#allocation2 + $0x150] sm:$0xff] %vm277_vm0, %v9164_v0  ;;  %323 = vst.msk [vmem:[#allocation2 + $0x160] sm:$0xff] %vm277_vm0, %v9164_v0  ;;  %v370_v26 = vld [vmem:[%s5285_s17 + $0x98] sm:$0xff]  ;;  %v373_v30 = vld [vmem:[%s5285_s17 + $0xb0] sm:$0xff] }
  0x25   : > { %324 = vst.msk [vmem:[#allocation2 + $0x168] sm:$0xff] %vm277_vm0, %v9164_v0  ;;  %325 = vst.msk [vmem:[#allocation2 + $0x170] sm:$0xff] %vm277_vm0, %v9164_v0  ;;  %v372_v31 = vld [vmem:[%s5285_s17 + $0xa8] sm:$0xff]  ;;  %v375_v32 = vld [vmem:[%s5285_s17 + $0xc0] sm:$0xff] }
  0x26   : > { %327 = vst.msk [vmem:[#allocation2 + $0x180] sm:$0xff] %vm277_vm0, %v9164_v0  ;;  %328 = vst.msk [vmem:[#allocation2 + $0x188] sm:$0xff] %vm277_vm0, %v9164_v0  ;;  %v374_v36 = vld [vmem:[%s5285_s17 + $0xb8] sm:$0xff]  ;;  %v377_v37 = vld [vmem:[%s5285_s17 + $0xd0] sm:$0xff] }
  0x27   : > { %329 = vst.msk [vmem:[#allocation2 + $0x190] sm:$0xff] %vm277_vm0, %v9164_v0  ;;  %331 = vst.msk [vmem:[#allocation2 + $0x1a0] sm:$0xff] %vm277_vm0, %v9164_v0  ;;  %v376_v38 = vld [vmem:[%s5285_s17 + $0xc8] sm:$0xff]  ;;  %v379_v39 = vld [vmem:[%s5285_s17 + $0xe0] sm:$0xff] }
  0x28   : > { %332 = vst.msk [vmem:[#allocation2 + $0x1a8] sm:$0xff] %vm277_vm0, %v9164_v0  ;;  %333 = vst.msk [vmem:[#allocation2 + $0x1b0] sm:$0xff] %vm277_vm0, %v9164_v0  ;;  %v378_v40 = vld [vmem:[%s5285_s17 + $0xd8] sm:$0xff]  ;;  %v380_v41 = vld [vmem:[%s5285_s17 + $0xe8] sm:$0xff] }
  0x29   : > { %335 = vst.msk [vmem:[#allocation2 + $0x1c0] sm:$0xff] %vm277_vm0, %v9164_v0  ;;  %336 = vst.msk [vmem:[#allocation2 + $0x1c8] sm:$0xff] %vm277_vm0, %v9164_v0  ;;  %v381_v59 = vld [vmem:[%s5285_s17 + $0xf0] sm:$0xff]  ;;  %v382_v63 = vld [vmem:[%s5285_s17 + $0xf8] sm:$0xff]  ;;  %s4561_s17 = sshll.u32 %s5107_s28, 12 }
  0x2a   : > { %337 = vst.msk [vmem:[#allocation2 + $0x1d0] sm:$0xff] %vm277_vm0, %v9164_v0  ;;  %339 = vst.msk [vmem:[#allocation2 + $0x1e0] sm:$0xff] %vm277_vm0, %v9164_v0 }
  0x2b   : > { %340 = vst.msk [vmem:[#allocation2 + $0x1e8] sm:$0xff] %vm277_vm0, %v9164_v0  ;;  %341 = vst.msk [vmem:[#allocation2 + $0x1f0] sm:$0xff] %vm277_vm0, %v9164_v0 }
  0x2c   : > { %343 = vst.msk [vmem:[#allocation2 + $0x200] sm:$0xff] %vm277_vm0, %v9164_v0  ;;  %344 = vst.msk [vmem:[#allocation2 + $0x208] sm:$0xff] %vm277_vm0, %v9164_v0 }
  0x2d   : > { %345 = vst.msk [vmem:[#allocation2 + $0x210] sm:$0xff] %vm277_vm0, %v9164_v0  ;;  %347 = vst.msk [vmem:[#allocation2 + $0x220] sm:$0xff] %vm277_vm0, %v9164_v0 }
  0x2e   : > { %348 = vst.msk [vmem:[#allocation2 + $0x228] sm:$0xff] %vm277_vm0, %v9164_v0  ;;  %349 = vst.msk [vmem:[#allocation2 + $0x230] sm:$0xff] %vm277_vm0, %v9164_v0 }
  0x2f   : > { %282 = vst.msk [vmem:[#allocation2 + $0x18] sm:$0x1] %vm281_vm1, %v9164_v0  ;;  %286 = vst.msk [vmem:[#allocation2 + $0x38] sm:$0x1] %vm281_vm1, %v9164_v0 }
  0x30   : > { %290 = vst.msk [vmem:[#allocation2 + $0x58] sm:$0x1] %vm281_vm1, %v9164_v0  ;;  %294 = vst.msk [vmem:[#allocation2 + $0x78] sm:$0x1] %vm281_vm1, %v9164_v0 }
  0x31   : > { %298 = vst.msk [vmem:[#allocation2 + $0x98] sm:$0x1] %vm281_vm1, %v9164_v0  ;;  %302 = vst.msk [vmem:[#allocation2 + $0xb8] sm:$0x1] %vm281_vm1, %v9164_v0 }
  0x32   : > { %306 = vst.msk [vmem:[#allocation2 + $0xd8] sm:$0x1] %vm281_vm1, %v9164_v0  ;;  %310 = vst.msk [vmem:[#allocation2 + $0xf8] sm:$0x1] %vm281_vm1, %v9164_v0 }
  0x33   : > { %314 = vst.msk [vmem:[#allocation2 + $0x118] sm:$0x1] %vm281_vm1, %v9164_v0  ;;  %318 = vst.msk [vmem:[#allocation2 + $0x138] sm:$0x1] %vm281_vm1, %v9164_v0 }
  0x34   : > { %322 = vst.msk [vmem:[#allocation2 + $0x158] sm:$0x1] %vm281_vm1, %v9164_v0  ;;  %326 = vst.msk [vmem:[#allocation2 + $0x178] sm:$0x1] %vm281_vm1, %v9164_v0 }
  0x35   : > { %330 = vst.msk [vmem:[#allocation2 + $0x198] sm:$0x1] %vm281_vm1, %v9164_v0  ;;  %334 = vst.msk [vmem:[#allocation2 + $0x1b8] sm:$0x1] %vm281_vm1, %v9164_v0 }
  0x36   : > { %338 = vst.msk [vmem:[#allocation2 + $0x1d8] sm:$0x1] %vm281_vm1, %v9164_v0  ;;  %342 = vst.msk [vmem:[#allocation2 + $0x1f8] sm:$0x1] %vm281_vm1, %v9164_v0 }
  0x37   : > { %346 = vst.msk [vmem:[#allocation2 + $0x218] sm:$0x1] %vm281_vm1, %v9164_v0  ;;  %350 = vst.msk [vmem:[#allocation2 + $0x238] sm:$0x1] %vm281_vm1, %v9164_v0  ;;  %vm3872_vm1 = vcmask 523264  }
  0x38   : > { %384 = vst.msk [vmem:[#allocation2 + $0x28] sm:$0xff] %vm277_vm0, %v351_v1  ;;  %386 = vst.msk [vmem:[#allocation2 + $0x48] sm:$0xff] %vm277_vm0, %v353_v2  ;;  %v666_v2 = vrot.slane %v5296_v7, 1 }
  0x39   : > { %385 = vst.msk [vmem:[#allocation2 + $0x30] sm:$0xff] %vm277_vm0, %v352_v3  ;;  %9295 = vst [vmem:[#allocation7_spill] sm:$0xff] %v5296_v7  ;;  %v667_v3 = vrot.slane %v5298_v8, 1 }
  0x3a   : > { %388 = vst.msk [vmem:[#allocation2 + $0x68] sm:$0xff] %vm277_vm0, %v355_v4  ;;  %387 = vst.msk [vmem:[#allocation2 + $0x50] sm:$0xff] %vm277_vm0, %v354_v5 }
  0x3b   : > { %390 = vst.msk [vmem:[#allocation2 + $0x88] sm:$0xff] %vm277_vm0, %v357_v6  ;;  %389 = vst.msk [vmem:[#allocation2 + $0x70] sm:$0xff] %vm277_vm0, %v356_v9  ;;  %v419_v6 = vld [vmem:[#allocation2 + $0x18] sm:$0x1]  ;;  %v668_v9 = vsel %vm665_vm4, %v666_v2, %v667_v3 }
  0x3c   : > { %392 = vst.msk [vmem:[#allocation2 + $0xa8] sm:$0xff] %vm277_vm0, %v359_v12  ;;  %391 = vst.msk [vmem:[#allocation2 + $0x90] sm:$0xff] %vm277_vm0, %v358_v13  ;;  %v669_v13 = vrot.slane %v419_v6, 1 }
  0x3d   : > { %394 = vst.msk [vmem:[#allocation2 + $0xc8] sm:$0xff] %vm277_vm0, %v361_v14  ;;  %393 = vst.msk [vmem:[#allocation2 + $0xb0] sm:$0xff] %vm277_vm0, %v360_v15  ;;  %v423_v14 = vld [vmem:[#allocation2 + $0x38] sm:$0x1] }
  0x3e   : > { %396 = vst.msk [vmem:[#allocation2 + $0xe8] sm:$0xff] %vm277_vm0, %v363_v16  ;;  %9296 = vst [vmem:[#allocation8_spill] sm:$0xff] %v5325_v20 }
  0x3f   : > { %395 = vst.msk [vmem:[#allocation2 + $0xd0] sm:$0xff] %vm277_vm0, %v362_v17  ;;  %398 = vst.msk [vmem:[#allocation2 + $0x108] sm:$0xff] %vm277_vm0, %v365_v18  ;;  %v5341_v27 = vld [vmem:[#allocation2 + $0x28] sm:$0xff]  ;;  %v670_v18 = vsel %vm665_vm4, %v667_v3, %v669_v13  ;;  %v439_v3 = vld [vmem:[#allocation2 + $0xb8] sm:$0x1] }
  0x40   : > { %397 = vst.msk [vmem:[#allocation2 + $0xf0] sm:$0xff] %vm277_vm0, %v364_v19  ;;  %400 = vst.msk [vmem:[#allocation2 + $0x128] sm:$0xff] %vm277_vm0, %v367_v21  ;;  %v5343_v28 = vld [vmem:[#allocation2 + $0x48] sm:$0xff]  ;;  %778 = vrot.lane.b32.xlu1 %v5341_v27, %s5032_s18  ;;  %v5350_v29 = vld [vmem:[#allocation2 + $0x30] sm:$0xff]  ;;  %v671_v11 = vrot.slane %v5341_v27, 1  ;;  %v674_v19 = vrot.slane %v423_v14, 1 }
  0x41   : > { %399 = vst.msk [vmem:[#allocation2 + $0x110] sm:$0xff] %vm277_vm0, %v366_v22  ;;  %402 = vst.msk [vmem:[#allocation2 + $0x148] sm:$0xff] %vm277_vm0, %v369_v23  ;;  %782 = vrot.lane.b32.xlu0 %v5343_v28, %s5032_s18  ;;  %v5359_v33 = vld [vmem:[#allocation2 + $0x68] sm:$0xff]  ;;  %v5364_v34 = vld [vmem:[#allocation2 + $0x50] sm:$0xff]  ;;  %v672_v12 = vrot.slane %v5350_v29, 1  ;;  %v676_v16 = vrot.slane %v5343_v28, 1 }
  0x42   : > { %401 = vst.msk [vmem:[#allocation2 + $0x130] sm:$0xff] %vm277_vm0, %v368_v24  ;;  %404 = vst.msk [vmem:[#allocation2 + $0x168] sm:$0xff] %vm277_vm0, %v371_v25  ;;  %v5368_v35 = vld [vmem:[#allocation2 + $0x88] sm:$0xff]  ;;  %v5381_v42 = vld [vmem:[#allocation2 + $0x70] sm:$0xff]  ;;  %v677_v17 = vrot.slane %v5364_v34, 1  ;;  %v681_v23 = vrot.slane %v5359_v33, 1 }
  0x43   : > { %403 = vst.msk [vmem:[#allocation2 + $0x150] sm:$0xff] %vm277_vm0, %v370_v26  ;;  %406 = vst.msk [vmem:[#allocation2 + $0x188] sm:$0xff] %vm277_vm0, %v373_v30  ;;  %v5388_v43 = vld [vmem:[#allocation2 + $0xa8] sm:$0xff]  ;;  %v5392_v44 = vld [vmem:[#allocation2 + $0x90] sm:$0xff]  ;;  %v5599_v15 = vsel %vm665_vm4, %v671_v11, %v672_v12  ;;  %v682_v24 = vrot.slane %v5381_v42, 1  ;;  %v5615_v25 = vsel %vm665_vm4, %v672_v12, %v674_v19  ;;  %v694_v13 = vrot.slane %v439_v3, 1 }
  0x44   : > { %405 = vst.msk [vmem:[#allocation2 + $0x170] sm:$0xff] %vm277_vm0, %v372_v31  ;;  %408 = vst.msk [vmem:[#allocation2 + $0x1a8] sm:$0xff] %vm277_vm0, %v375_v32  ;;  %780 = vrot.lane.b32.xlu1 %v5350_v29, %s5032_s18  ;;  %v5396_v45 = vld [vmem:[#allocation2 + $0xc8] sm:$0xff]  ;;  %v5400_v46 = vld [vmem:[#allocation2 + $0xb0] sm:$0xff]  ;;  %v5609_v22 = vsel %vm665_vm4, %v676_v16, %v677_v17  ;;  %v686_v32 = vrot.slane %v5368_v35, 1 }
  0x45   : > { %786 = vrot.lane.b32.xlu0 %v5359_v33, %s5032_s18  ;;  %407 = vst.msk [vmem:[#allocation2 + $0x190] sm:$0xff] %vm277_vm0, %v374_v36  ;;  %410 = vst.msk [vmem:[#allocation2 + $0x1c8] sm:$0xff] %vm277_vm0, %v377_v37  ;;  %v5404_v47 = vld [vmem:[#allocation2 + $0xe8] sm:$0xff]  ;;  %v427_v21 = vld [vmem:[#allocation2 + $0x58] sm:$0x1]  ;;  %v5620_v31 = vsel %vm665_vm4, %v681_v23, %v682_v24  ;;  %v687_v36 = vrot.slane %v5392_v44, 1 }
  0x46   : > { %409 = vst.msk [vmem:[#allocation2 + $0x1b0] sm:$0xff] %vm277_vm0, %v376_v38  ;;  %412 = vst.msk [vmem:[#allocation2 + $0x1e8] sm:$0xff] %vm277_vm0, %v379_v39  ;;  %v5408_v48 = vld [vmem:[#allocation2 + $0xd0] sm:$0xff]  ;;  %v5412_v49 = vld [vmem:[#allocation2 + $0x108] sm:$0xff]  ;;  %v679_v26 = vrot.slane %v427_v21, 1 }
  0x47   : > { %411 = vst.msk [vmem:[#allocation2 + $0x1d0] sm:$0xff] %vm277_vm0, %v378_v40  ;;  %413 = vst.msk [vmem:[#allocation2 + $0x1f0] sm:$0xff] %vm277_vm0, %v380_v41  ;;  %v5416_v50 = vld [vmem:[#allocation2 + $0xf0] sm:$0xff]  ;;  %v5420_v51 = vld [vmem:[#allocation2 + $0x128] sm:$0xff]  ;;  %v5632_v40 = vsel %vm665_vm4, %v686_v32, %v687_v36  ;;  %v691_v41 = vrot.slane %v5388_v43, 1  ;;  %v697_v11 = vrot.slane %v5408_v48, 1 }
  0x48   : > { %784 = vrot.lane.b32.xlu1 %v5364_v34, %s5032_s18  ;;  %v5424_v52 = vld [vmem:[#allocation2 + $0x110] sm:$0xff]  ;;  %v5428_v53 = vld [vmem:[#allocation2 + $0x148] sm:$0xff]  ;;  %414 = vst.msk [vmem:[#allocation2 + $0x208] sm:$0xff] %vm277_vm0, %v381_v59  ;;  %415 = vst.msk [vmem:[#allocation2 + $0x210] sm:$0xff] %vm277_vm0, %v382_v63  ;;  %v5627_v37 = vsel %vm665_vm4, %v677_v17, %v679_v26  ;;  %v692_v59 = vrot.slane %v5400_v46, 1  ;;  %v701_v17 = vrot.slane %v5404_v47, 1 }
  0x49   : > { %790 = vrot.lane.b32.xlu0 %v5368_v35, %s5032_s18  ;;  %v5432_v54 = vld [vmem:[#allocation2 + $0x130] sm:$0xff]  ;;  %v5436_v55 = vld [vmem:[#allocation2 + $0x168] sm:$0xff]  ;;  %2415 = vst.msk [vmem:[#allocation3] sm:$0xff] %vm1574_vm3, %v9164_v0  ;;  %2416 = vst.msk [vmem:[#allocation3 + $0x8] sm:$0xff] %vm1574_vm3, %v9164_v0  ;;  %v706_v26 = vrot.slane %v5412_v49, 1 }
  0x4a   : > { %v5440_v56 = vld [vmem:[#allocation2 + $0x150] sm:$0xff]  ;;  %v5444_v57 = vld [vmem:[#allocation2 + $0x188] sm:$0xff]  ;;  %2417 = vst.msk [vmem:[#allocation3 + $0x10] sm:$0xff] %vm1574_vm3, %v9164_v0  ;;  %2420 = vst.msk [vmem:[#allocation3 + $0x20] sm:$0xff] %vm1574_vm3, %v9164_v0  ;;  %v5644_v6 = vsel %vm665_vm4, %v691_v41, %v692_v59  ;;  %v5663_v19 = vsel %vm665_vm4, %v692_v59, %v694_v13  ;;  %v711_v41 = vrot.slane %v5420_v51, 1  ;;  %v712_v59 = vrot.slane %v5432_v54, 1 }
  0x4b   : > { %v5448_v58 = vld [vmem:[#allocation2 + $0x170] sm:$0xff]  ;;  %v5453_v60 = vld [vmem:[#allocation2 + $0x1a8] sm:$0xff]  ;;  %2421 = vst.msk [vmem:[#allocation3 + $0x28] sm:$0xff] %vm1574_vm3, %v9164_v0  ;;  %2422 = vst.msk [vmem:[#allocation3 + $0x30] sm:$0xff] %vm1574_vm3, %v9164_v0  ;;  %v716_v13 = vrot.slane %v5428_v53, 1 }
  0x4c   : > { %788 = vrot.lane.b32.xlu1 %v5381_v42, %s5032_s18  ;;  %2424 = vst.msk [vmem:[#allocation3 + $0x40] sm:$0xff] %vm1574_vm3, %v9164_v0  ;;  %2425 = vst.msk [vmem:[#allocation3 + $0x48] sm:$0xff] %vm1574_vm3, %v9164_v0  ;;  %v5566_v61 = vld [vmem:[#allocation2 + $0x190] sm:$0xff]  ;;  %v5570_v62 = vld [vmem:[#allocation2 + $0x1c8] sm:$0xff] }
  0x4d   : > { %794 = vrot.lane.b32.xlu0 %v5388_v43, %s5032_s18  ;;  %2426 = vst.msk [vmem:[#allocation3 + $0x50] sm:$0xff] %vm1574_vm3, %v9164_v0  ;;  %2428 = vst.msk [vmem:[#allocation3 + $0x60] sm:$0xff] %vm1574_vm3, %v9164_v0  ;;  %v5575_v1 = vld [vmem:[#allocation2 + $0x1b0] sm:$0xff]  ;;  %v5582_v4 = vld [vmem:[#allocation2 + $0x1e8] sm:$0xff] }
  0x4e   : > { %2429 = vst.msk [vmem:[#allocation3 + $0x68] sm:$0xff] %vm1574_vm3, %v9164_v0  ;;  %2430 = vst.msk [vmem:[#allocation3 + $0x70] sm:$0xff] %vm1574_vm3, %v9164_v0  ;;  %v5586_v5 = vld [vmem:[#allocation2 + $0x1d0] sm:$0xff]  ;;  %v431_v30 = vld [vmem:[#allocation2 + $0x78] sm:$0x1]  ;;  %v732_v10 = vrot.slane %v5575_v1, 1 }
  0x4f   : > { %2432 = vst.msk [vmem:[#allocation3 + $0x80] sm:$0xff] %vm1574_vm3, %v9164_v0  ;;  %2433 = vst.msk [vmem:[#allocation3 + $0x88] sm:$0xff] %vm1574_vm3, %v9164_v0  ;;  %v5595_v8 = vld [vmem:[#allocation2 + $0x1f0] sm:$0xff]  ;;  %v684_v38 = vrot.slane %v431_v30, 1  ;;  %v435_v39 = vld [vmem:[#allocation2 + $0x98] sm:$0x1] }
  0x50   : > { %792 = vrot.lane.b32.xlu1 %v5392_v44, %s5032_s18  ;;  %2434 = vst.msk [vmem:[#allocation3 + $0x90] sm:$0xff] %vm1574_vm3, %v9164_v0  ;;  %2436 = vst.msk [vmem:[#allocation3 + $0xa0] sm:$0xff] %vm1574_vm3, %v9164_v0  ;;  %v689_v2 = vrot.slane %v435_v39, 1  ;;  %v443_v14 = vld [vmem:[#allocation2 + $0xd8] sm:$0x1]  ;;  %v707_v30 = vrot.slane %v5424_v52, 1 }
  0x51   : > { %798 = vrot.lane.b32.xlu0 %v5396_v45, %s5032_s18  ;;  %2437 = vst.msk [vmem:[#allocation3 + $0xa8] sm:$0xff] %vm1574_vm3, %v9164_v0  ;;  %2438 = vst.msk [vmem:[#allocation3 + $0xb0] sm:$0xff] %vm1574_vm3, %v9164_v0  ;;  %v5639_v63 = vsel %vm665_vm4, %v682_v24, %v684_v38  ;;  %v699_v21 = vrot.slane %v443_v14, 1  ;;  %v447_v23 = vld [vmem:[#allocation2 + $0xf8] sm:$0x1]  ;;  %v717_v14 = vrot.slane %v5440_v56, 1 }
  0x52   : > { %2440 = vst.msk [vmem:[#allocation3 + $0xc0] sm:$0xff] %vm1574_vm3, %v9164_v0  ;;  %2441 = vst.msk [vmem:[#allocation3 + $0xc8] sm:$0xff] %vm1574_vm3, %v9164_v0  ;;  %v5651_v12 = vsel %vm665_vm4, %v687_v36, %v689_v2  ;;  %v704_v36 = vrot.slane %v447_v23, 1  ;;  %v451_v38 = vld [vmem:[#allocation2 + $0x118] sm:$0x1]  ;;  %v5680_v39 = vsel %vm665_vm4, %v706_v26, %v707_v30  ;;  %v721_v26 = vrot.slane %v5436_v55, 1 }
  0x53   : > { %2442 = vst.msk [vmem:[#allocation3 + $0xd0] sm:$0xff] %vm1574_vm3, %v9164_v0  ;;  %2444 = vst.msk [vmem:[#allocation3 + $0xe0] sm:$0xff] %vm1574_vm3, %v9164_v0  ;;  %v5675_v32 = vsel %vm665_vm4, %v697_v11, %v699_v21  ;;  %v709_v3 = vrot.slane %v451_v38, 1  ;;  %v459_v21 = vld [vmem:[#allocation2 + $0x158] sm:$0x1]  ;;  %v5704_v23 = vsel %vm665_vm4, %v716_v13, %v717_v14  ;;  %v727_v13 = vrot.slane %v5566_v61, 1 }
  0x54   : > { %796 = vrot.lane.b32.xlu1 %v5400_v46, %s5032_s18  ;;  %2445 = vst.msk [vmem:[#allocation3 + $0xe8] sm:$0xff] %vm1574_vm3, %v9164_v0  ;;  %2446 = vst.msk [vmem:[#allocation3 + $0xf0] sm:$0xff] %vm1574_vm3, %v9164_v0  ;;  %v737_v7 = vrot.slane %v5586_v5, 1 }
  0x55   : > { %802 = vrot.lane.b32.xlu0 %v5404_v47, %s5032_s18  ;;  %2448 = vst.msk [vmem:[#allocation3 + $0x100] sm:$0xff] %vm1574_vm3, %v9164_v0  ;;  %2449 = vst.msk [vmem:[#allocation3 + $0x108] sm:$0xff] %vm1574_vm3, %v9164_v0 }
  0x56   : > { %2450 = vst.msk [vmem:[#allocation3 + $0x110] sm:$0xff] %vm1574_vm3, %v9164_v0  ;;  %2452 = vst.msk [vmem:[#allocation3 + $0x120] sm:$0xff] %vm1574_vm3, %v9164_v0 }
  0x57   : > { %2453 = vst.msk [vmem:[#allocation3 + $0x128] sm:$0xff] %vm1574_vm3, %v9164_v0  ;;  %2454 = vst.msk [vmem:[#allocation3 + $0x130] sm:$0xff] %vm1574_vm3, %v9164_v0 }
  0x58   : > { %800 = vrot.lane.b32.xlu1 %v5408_v48, %s5032_s18  ;;  %2456 = vst.msk [vmem:[#allocation3 + $0x140] sm:$0xff] %vm1574_vm3, %v9164_v0  ;;  %2457 = vst.msk [vmem:[#allocation3 + $0x148] sm:$0xff] %vm1574_vm3, %v9164_v0 }
  0x59   : > { %806 = vrot.lane.b32.xlu0 %v5412_v49, %s5032_s18  ;;  %2458 = vst.msk [vmem:[#allocation3 + $0x150] sm:$0xff] %vm1574_vm3, %v9164_v0  ;;  %2460 = vst.msk [vmem:[#allocation3 + $0x160] sm:$0xff] %vm1574_vm3, %v9164_v0 }
  0x5a   : > { %2461 = vst.msk [vmem:[#allocation3 + $0x168] sm:$0xff] %vm1574_vm3, %v9164_v0  ;;  %2462 = vst.msk [vmem:[#allocation3 + $0x170] sm:$0xff] %vm1574_vm3, %v9164_v0 }
  0x5b   : > { %2464 = vst.msk [vmem:[#allocation3 + $0x180] sm:$0xff] %vm1574_vm3, %v9164_v0  ;;  %2465 = vst.msk [vmem:[#allocation3 + $0x188] sm:$0xff] %vm1574_vm3, %v9164_v0 }
  0x5c   : > { %804 = vrot.lane.b32.xlu1 %v5416_v50, %s5032_s18  ;;  %2466 = vst.msk [vmem:[#allocation3 + $0x190] sm:$0xff] %vm1574_vm3, %v9164_v0  ;;  %2468 = vst.msk [vmem:[#allocation3 + $0x1a0] sm:$0xff] %vm1574_vm3, %v9164_v0 }
  0x5d   : > { %810 = vrot.lane.b32.xlu0 %v5420_v51, %s5032_s18  ;;  %2469 = vst.msk [vmem:[#allocation3 + $0x1a8] sm:$0xff] %vm1574_vm3, %v9164_v0  ;;  %2470 = vst.msk [vmem:[#allocation3 + $0x1b0] sm:$0xff] %vm1574_vm3, %v9164_v0 }
  0x5e   : > { %2472 = vst.msk [vmem:[#allocation3 + $0x1c0] sm:$0xff] %vm1574_vm3, %v9164_v0  ;;  %2473 = vst.msk [vmem:[#allocation3 + $0x1c8] sm:$0xff] %vm1574_vm3, %v9164_v0 }
  0x5f   : > { %2474 = vst.msk [vmem:[#allocation3 + $0x1d0] sm:$0xff] %vm1574_vm3, %v9164_v0  ;;  %2476 = vst.msk [vmem:[#allocation3 + $0x1e0] sm:$0xff] %vm1574_vm3, %v9164_v0 }
  0x60   : > { %808 = vrot.lane.b32.xlu1 %v5424_v52, %s5032_s18  ;;  %2477 = vst.msk [vmem:[#allocation3 + $0x1e8] sm:$0xff] %vm1574_vm3, %v9164_v0  ;;  %2478 = vst.msk [vmem:[#allocation3 + $0x1f0] sm:$0xff] %vm1574_vm3, %v9164_v0 }
  0x61   : > { %814 = vrot.lane.b32.xlu0 %v5428_v53, %s5032_s18  ;;  %2480 = vst.msk [vmem:[#allocation3 + $0x200] sm:$0xff] %vm1574_vm3, %v9164_v0  ;;  %2481 = vst.msk [vmem:[#allocation3 + $0x208] sm:$0xff] %vm1574_vm3, %v9164_v0 }
  0x62   : > { %2482 = vst.msk [vmem:[#allocation3 + $0x210] sm:$0xff] %vm1574_vm3, %v9164_v0  ;;  %2484 = vst.msk [vmem:[#allocation3 + $0x220] sm:$0xff] %vm1574_vm3, %v9164_v0 }
  0x63   : > { %2485 = vst.msk [vmem:[#allocation3 + $0x228] sm:$0xff] %vm1574_vm3, %v9164_v0  ;;  %2486 = vst.msk [vmem:[#allocation3 + $0x230] sm:$0xff] %vm1574_vm3, %v9164_v0 }
  0x64   : > { %812 = vrot.lane.b32.xlu1 %v5432_v54, %s5032_s18 }
  0x65   : > { %818 = vrot.lane.b32.xlu0 %v5436_v55, %s5032_s18 }
  0x68   : > { %816 = vrot.lane.b32.xlu1 %v5440_v56, %s5032_s18 }
  0x69   : > { %822 = vrot.lane.b32.xlu0 %v5444_v57, %s5032_s18 }
  0x6c   : > { %820 = vrot.lane.b32.xlu1 %v5448_v58, %s5032_s18 }
  0x6d   : > { %826 = vrot.lane.b32.xlu0 %v5453_v60, %s5032_s18 }
  0x70   : > { %824 = vrot.lane.b32.xlu1 %v5566_v61, %s5032_s18 }
  0x71   : > { %830 = vrot.lane.b32.xlu0 %v5570_v62, %s5032_s18 }
  0x74   : > { %828 = vrot.lane.b32.xlu1 %v5575_v1, %s5032_s18 }
  0x75   : > { %834 = vrot.lane.b32.xlu0 %v5582_v4, %s5032_s18 }
  0x78   : > { %832 = vrot.lane.b32.xlu1 %v5586_v5, %s5032_s18 }
  0x79   : > { %870 = vrot.lane.b32.xlu0 %v668_v9, %s5033_s19  ;;  %v696_v9 = vrot.slane %v5396_v45, 1 }
  0x7b   : > { %v5656_v16 = vsel %vm665_vm4, %v696_v9, %v697_v11  ;;  %v455_v9 = vld [vmem:[#allocation2 + $0x138] sm:$0x1]  ;;  %v5692_v11 = vsel %vm665_vm4, %v711_v41, %v712_v59 }
  0x7c   : > { %836 = vrot.lane.b32.xlu1 %v5595_v8, %s5032_s18  ;;  %v463_v41 = vld [vmem:[#allocation2 + $0x178] sm:$0x1]  ;;  %s5041_s18 = smov 48  }
  0x7d   : > { %874 = vrot.lane.b32.xlu0 %v5599_v15, %s5033_s19 }
  0x80   : > { %872 = vrot.lane.b32.xlu1 %v670_v18, %s5033_s19  ;;  %v702_v18 = vrot.slane %v5416_v50, 1 }
  0x81   : > { %878 = vrot.lane.b32.xlu0 %v5609_v22, %s5033_s19 }
  0x82   : > { %v5668_v24 = vsel %vm665_vm4, %v701_v17, %v702_v18  ;;  %v5687_v2 = vsel %vm665_vm4, %v702_v18, %v704_v36  ;;  %v5699_v17 = vsel %vm665_vm4, %v707_v30, %v709_v3  ;;  %v714_v18 = vrot.slane %v455_v9, 1 }
  0x83   : > { %v722_v36 = vrot.slane %v5448_v58, 1  ;;  %v719_v30 = vrot.slane %v459_v21, 1  ;;  %v726_v9 = vrot.slane %v5444_v57, 1 }
  0x84   : > { %876 = vrot.lane.b32.xlu1 %v5615_v25, %s5033_s19  ;;  %v5711_v38 = vsel %vm665_vm4, %v712_v59, %v714_v18  ;;  %v724_v59 = vrot.slane %v463_v41, 1  ;;  %v467_v18 = vld [vmem:[#allocation2 + $0x198] sm:$0x1] }
  0x85   : > { %882 = vrot.lane.b32.xlu0 %v5620_v31, %s5033_s19  ;;  %9297 = vst [vmem:[#allocation9_spill] sm:$0xff] %v5711_v38  ;;  %v5716_v3 = vsel %vm665_vm4, %v721_v26, %v722_v36  ;;  %v5723_v0 = vsel %vm665_vm4, %v717_v14, %v719_v30  ;;  %v5728_v21 = vsel %vm665_vm4, %v726_v9, %v727_v13  ;;  %v731_v26 = vrot.slane %v5453_v60, 1  ;;  %v471_v30 = vld [vmem:[#allocation2 + $0x1b8] sm:$0x1] }
  0x86   : > { %9298 = vst [vmem:[#allocation10_spill] sm:$0xff] %v5716_v3  ;;  %9299 = vst [vmem:[#allocation11_spill] sm:$0xff] %v5723_v0  ;;  %v5735_v20 = vsel %vm665_vm4, %v722_v36, %v724_v59  ;;  %v729_v14 = vrot.slane %v467_v18, 1  ;;  %v736_v9 = vrot.slane %v5570_v62, 1  ;;  %v734_v59 = vrot.slane %v471_v30, 1  ;;  %v420_v30 = vld [vmem:[#allocation2 + $0x20] sm:$0xff] }
  0x87   : > { %9300 = vst [vmem:[#allocation12_spill] sm:$0xff] %v5728_v21  ;;  %9301 = vst [vmem:[#allocation13_spill] sm:$0xff] %v5735_v20  ;;  %v5740_v41 = vsel %vm665_vm4, %v731_v26, %v732_v10  ;;  %v475_v18 = vld [vmem:[#allocation2 + $0x1d8] sm:$0x1] }
  0x88   : > { %880 = vrot.lane.b32.xlu1 %v5627_v37, %s5033_s19  ;;  %9302 = vst [vmem:[#allocation14_spill] sm:$0xff] %v5740_v41  ;;  %v5749_v36 = vsel %vm665_vm4, %v727_v13, %v729_v14  ;;  %v5754_v26 = vsel %vm665_vm4, %v736_v9, %v737_v7  ;;  %v5763_v13 = vsel %vm665_vm4, %v732_v10, %v734_v59  ;;  %v739_v14 = vrot.slane %v475_v18, 1  ;;  %v479_v9 = vld [vmem:[#allocation2 + $0x1f8] sm:$0x1] }
  0x89   : > { %886 = vrot.lane.b32.xlu0 %v5632_v40, %s5033_s19  ;;  %9304 = vst [vmem:[#allocation16_spill] sm:$0xff] %v5749_v36  ;;  %9305 = vst [vmem:[#allocation17_spill] sm:$0xff] %v5754_v26  ;;  %v542_v10 = vrot.slane %v420_v30, 7  ;;  %v744_v18 = vrot.slane %v479_v9, 1  ;;  %v548_v30 = vrot.slane %v5343_v28, 7 }
  0x8a   : > { %9307 = vst [vmem:[#allocation19_spill] sm:$0xff] %v5763_v13  ;;  %v5778_v59 = vsel %vm665_vm4, %v737_v7, %v739_v14  ;;  %v428_v14 = vld [vmem:[#allocation2 + $0x60] sm:$0xff] }
  0x8b   : > { %9311 = vst [vmem:[#allocation23_spill] sm:$0xff] %v5778_v59 }
  0x8c   : > { %884 = vrot.lane.b32.xlu1 %v5639_v63, %s5033_s19 }
  0x8d   : > { %890 = vrot.lane.b32.xlu0 %v5644_v6, %s5033_s19 }
  0x90   : > { %888 = vrot.lane.b32.xlu1 %v5651_v12, %s5033_s19 }
  0x91   : > { %894 = vrot.lane.b32.xlu0 %v5656_v16, %s5033_s19 }
  0x94   : > { %892 = vrot.lane.b32.xlu1 %v5663_v19, %s5033_s19 }
  0x95   : > { %898 = vrot.lane.b32.xlu0 %v5668_v24, %s5033_s19 }
  0x98   : > { %896 = vrot.lane.b32.xlu1 %v5675_v32, %s5033_s19 }
  0x99   : > { %902 = vrot.lane.b32.xlu0 %v5680_v39, %s5033_s19 }
  0x9c   : > { %900 = vrot.lane.b32.xlu1 %v5687_v2, %s5033_s19 }
  0x9d   : > { %906 = vrot.lane.b32.xlu0 %v5692_v11, %s5033_s19 }
  0xa0   : > { %904 = vrot.lane.b32.xlu1 %v5699_v17, %s5033_s19 }
  0xa1   : > { %910 = vrot.lane.b32.xlu0 %v5704_v23, %s5033_s19 }
  0xa4   : > { %908 = vrot.lane.b32.xlu1 %v5711_v38, %s5033_s19 }
  0xa5   : > { %914 = vrot.lane.b32.xlu0 %v5716_v3, %s5033_s19  ;;  %v5744_v3 = vpop.permute.xlu0 %774 }
  0xa6   : > { %9303 = vst [vmem:[#allocation15_spill] sm:$0xff] %v5744_v3 }
  0xa8   : > { %912 = vrot.lane.b32.xlu1 %v5723_v0, %s5033_s19  ;;  %v742_v0 = vrot.slane %v5595_v8, 1 }
  0xa9   : > { %918 = vrot.lane.b32.xlu0 %v5728_v21, %s5033_s19  ;;  %v741_v21 = vrot.slane %v5582_v4, 1  ;;  %v5758_v38 = vpop.permute.xlu0 %776 }
  0xaa   : > { %9306 = vst [vmem:[#allocation18_spill] sm:$0xff] %v5758_v38  ;;  %v543_v38 = vrot.slane %v5341_v27, 7  ;;  %v5793_v7 = vsel %vm665_vm4, %v742_v0, %v744_v18  ;;  %v432_v18 = vld [vmem:[#allocation2 + $0x80] sm:$0xff] }
  0xab   : > { %9315 = vst [vmem:[#allocation27_spill] sm:$0xff] %v5793_v7 }
  0xac   : > { %916 = vrot.lane.b32.xlu1 %v5735_v20, %s5033_s19 }
  0xad   : > { %922 = vrot.lane.b32.xlu0 %v5740_v41, %s5033_s19  ;;  %v5770_v41 = vsel %vm665_vm4, %v741_v21, %v742_v0  ;;  %v553_v0 = vrot.slane %v5359_v33, 7 }
  0xae   : > { %9309 = vst [vmem:[#allocation21_spill] sm:$0xff] %v5770_v41 }
  0xb0   : > { %920 = vrot.lane.b32.xlu1 %v5749_v36, %s5033_s19 }
  0xb1   : > { %926 = vrot.lane.b32.xlu0 %v5754_v26, %s5033_s19 }
  0xb2   : > { %v5765_v3 = vpop.permute.xlu1 %778 }
  0xb3   : > { %9308 = vst [vmem:[#allocation20_spill] sm:$0xff] %v5765_v3  ;;  %v5772_v20 = vpop.permute.xlu0 %782  ;;  %v424_v3 = vld [vmem:[#allocation2 + $0x40] sm:$0xff] }
  0xb4   : > { %9310 = vst [vmem:[#allocation22_spill] sm:$0xff] %v5772_v20  ;;  %924 = vrot.lane.b32.xlu1 %v5763_v13, %s5033_s19  ;;  %v5789_v20 = vsel %vm536_vm2, %v542_v10, %v543_v38  ;;  %v547_v13 = vrot.slane %v424_v3, 7  ;;  %v552_v10 = vrot.slane %v428_v14, 7  ;;  %v557_v14 = vrot.slane %v432_v18, 7 }
  0xb5   : > { %930 = vrot.lane.b32.xlu0 %v5770_v41, %s5033_s19  ;;  %9314 = vst [vmem:[#allocation26_spill] sm:$0xff] %v5789_v20 }
  0xb6   : > { %v5780_v36 = vpop.permute.xlu1 %780  ;;  %v5805_v3 = vsel %vm536_vm2, %v547_v13, %v548_v30  ;;  %v5821_v13 = vsel %vm536_vm2, %v552_v10, %v553_v0 }
  0xb7   : > { %9312 = vst [vmem:[#allocation24_spill] sm:$0xff] %v5780_v36  ;;  %v5784_v21 = vpop.permute.xlu0 %786  ;;  %9318 = vst [vmem:[#allocation30_spill] sm:$0xff] %v5805_v3 }
  0xb8   : > { %9313 = vst [vmem:[#allocation25_spill] sm:$0xff] %v5784_v21  ;;  %928 = vrot.lane.b32.xlu1 %v5778_v59, %s5033_s19  ;;  %v545_v21 = vrot.slane %v5350_v29, 7  ;;  %9322 = vst [vmem:[#allocation34_spill] sm:$0xff] %v5821_v13 }
  0xb9   : > { %966 = vrot.lane.b32.xlu0 %v5789_v20, %s5034_s20 }
  0xba   : > { %v5795_v9 = vpop.permute.xlu1 %784 }
  0xbb   : > { %9316 = vst [vmem:[#allocation28_spill] sm:$0xff] %v5795_v9  ;;  %v5800_v36 = vpop.permute.xlu0 %790  ;;  %v5813_v9 = vsel %vm536_vm2, %v543_v38, %v545_v21  ;;  %v555_v21 = vrot.slane %v5381_v42, 7 }
  0xbc   : > { %9317 = vst [vmem:[#allocation29_spill] sm:$0xff] %v5800_v36  ;;  %932 = vrot.lane.b32.xlu1 %v5793_v7, %s5033_s19  ;;  %9320 = vst [vmem:[#allocation32_spill] sm:$0xff] %v5813_v9  ;;  %v550_v36 = vrot.slane %v5364_v34, 7  ;;  %v558_v7 = vrot.slane %v5368_v35, 7 }
  0xbd   : > { %970 = vrot.lane.b32.xlu0 %v5805_v3, %s5034_s20 }
  0xbe   : > { %v5808_v59 = vpop.permute.xlu1 %788  ;;  %v5829_v38 = vsel %vm536_vm2, %v548_v30, %v550_v36  ;;  %v5837_v10 = vsel %vm536_vm2, %v557_v14, %v558_v7  ;;  %v5845_v36 = vsel %vm536_vm2, %v553_v0, %v555_v21  ;;  %v560_v30 = vrot.slane %v5392_v44, 7 }
  0xbf   : > { %9319 = vst [vmem:[#allocation31_spill] sm:$0xff] %v5808_v59  ;;  %v5816_v20 = vpop.permute.xlu0 %794  ;;  %v436_v59 = vld [vmem:[#allocation2 + $0xa0] sm:$0xff]  ;;  %9324 = vst [vmem:[#allocation36_spill] sm:$0xff] %v5829_v38  ;;  %v565_v21 = vrot.slane %v5400_v46, 7 }
  0xc0   : > { %9321 = vst [vmem:[#allocation33_spill] sm:$0xff] %v5816_v20  ;;  %968 = vrot.lane.b32.xlu1 %v5813_v9, %s5034_s20  ;;  %9326 = vst [vmem:[#allocation38_spill] sm:$0xff] %v5837_v10  ;;  %v562_v18 = vrot.slane %v436_v59, 7  ;;  %v563_v9 = vrot.slane %v5388_v43, 7  ;;  %v5861_v0 = vsel %vm536_vm2, %v558_v7, %v560_v30  ;;  %v570_v30 = vrot.slane %v5408_v48, 7 }
  0xc1   : > { %974 = vrot.lane.b32.xlu0 %v5821_v13, %s5034_s20  ;;  %9328 = vst [vmem:[#allocation40_spill] sm:$0xff] %v5845_v36  ;;  %9332 = vst [vmem:[#allocation44_spill] sm:$0xff] %v5861_v0 }
  0xc2   : > { %v5824_v41 = vpop.permute.xlu1 %792  ;;  %v5853_v59 = vsel %vm536_vm2, %v562_v18, %v563_v9  ;;  %v5877_v7 = vsel %vm536_vm2, %v563_v9, %v565_v21  ;;  %v575_v21 = vrot.slane %v5416_v50, 7 }
  0xc3   : > { %9323 = vst [vmem:[#allocation35_spill] sm:$0xff] %v5824_v41  ;;  %v5832_v20 = vpop.permute.xlu0 %798  ;;  %v440_v41 = vld [vmem:[#allocation2 + $0xc0] sm:$0xff]  ;;  %9330 = vst [vmem:[#allocation42_spill] sm:$0xff] %v5853_v59 }
  0xc4   : > { %9325 = vst [vmem:[#allocation37_spill] sm:$0xff] %v5832_v20  ;;  %972 = vrot.lane.b32.xlu1 %v5829_v38, %s5034_s20  ;;  %v567_v14 = vrot.slane %v440_v41, 7  ;;  %v568_v38 = vrot.slane %v5396_v45, 7  ;;  %9336 = vst [vmem:[#allocation48_spill] sm:$0xff] %v5877_v7 }
  0xc5   : > { %978 = vrot.lane.b32.xlu0 %v5837_v10, %s5034_s20 }
  0xc6   : > { %v5840_v3 = vpop.permute.xlu1 %796  ;;  %v5869_v41 = vsel %vm536_vm2, %v567_v14, %v568_v38  ;;  %v5893_v9 = vsel %vm536_vm2, %v568_v38, %v570_v30  ;;  %v580_v30 = vrot.slane %v5424_v52, 7 }
  0xc7   : > { %9327 = vst [vmem:[#allocation39_spill] sm:$0xff] %v5840_v3  ;;  %v5848_v20 = vpop.permute.xlu0 %802  ;;  %v444_v3 = vld [vmem:[#allocation2 + $0xe0] sm:$0xff]  ;;  %9334 = vst [vmem:[#allocation46_spill] sm:$0xff] %v5869_v41 }
  0xc8   : > { %9329 = vst [vmem:[#allocation41_spill] sm:$0xff] %v5848_v20  ;;  %976 = vrot.lane.b32.xlu1 %v5845_v36, %s5034_s20  ;;  %v572_v18 = vrot.slane %v444_v3, 7  ;;  %v573_v36 = vrot.slane %v5404_v47, 7  ;;  %9340 = vst [vmem:[#allocation52_spill] sm:$0xff] %v5893_v9 }
  0xc9   : > { %982 = vrot.lane.b32.xlu0 %v5853_v59, %s5034_s20 }
  0xca   : > { %v5856_v13 = vpop.permute.xlu1 %800  ;;  %v5885_v3 = vsel %vm536_vm2, %v572_v18, %v573_v36  ;;  %v5909_v38 = vsel %vm536_vm2, %v573_v36, %v575_v21  ;;  %v585_v21 = vrot.slane %v5432_v54, 7 }
  0xcb   : > { %9331 = vst [vmem:[#allocation43_spill] sm:$0xff] %v5856_v13  ;;  %v5864_v20 = vpop.permute.xlu0 %806  ;;  %v448_v13 = vld [vmem:[#allocation2 + $0x100] sm:$0xff]  ;;  %9338 = vst [vmem:[#allocation50_spill] sm:$0xff] %v5885_v3 }
  0xcc   : > { %9333 = vst [vmem:[#allocation45_spill] sm:$0xff] %v5864_v20  ;;  %980 = vrot.lane.b32.xlu1 %v5861_v0, %s5034_s20  ;;  %v577_v14 = vrot.slane %v448_v13, 7  ;;  %v578_v0 = vrot.slane %v5412_v49, 7  ;;  %9344 = vst [vmem:[#allocation56_spill] sm:$0xff] %v5909_v38 }
  0xcd   : > { %986 = vrot.lane.b32.xlu0 %v5869_v41, %s5034_s20 }
  0xce   : > { %v5872_v10 = vpop.permute.xlu1 %804  ;;  %v5901_v13 = vsel %vm536_vm2, %v577_v14, %v578_v0  ;;  %v5925_v36 = vsel %vm536_vm2, %v578_v0, %v580_v30  ;;  %v590_v30 = vrot.slane %v5440_v56, 7 }
  0xcf   : > { %9335 = vst [vmem:[#allocation47_spill] sm:$0xff] %v5872_v10  ;;  %v5880_v20 = vpop.permute.xlu0 %810  ;;  %v452_v10 = vld [vmem:[#allocation2 + $0x120] sm:$0xff]  ;;  %9342 = vst [vmem:[#allocation54_spill] sm:$0xff] %v5901_v13 }
  0xd0   : > { %9337 = vst [vmem:[#allocation49_spill] sm:$0xff] %v5880_v20  ;;  %984 = vrot.lane.b32.xlu1 %v5877_v7, %s5034_s20  ;;  %v582_v18 = vrot.slane %v452_v10, 7  ;;  %v583_v7 = vrot.slane %v5420_v51, 7  ;;  %9348 = vst [vmem:[#allocation60_spill] sm:$0xff] %v5925_v36 }
  0xd1   : > { %990 = vrot.lane.b32.xlu0 %v5885_v3, %s5034_s20 }
  0xd2   : > { %v5888_v59 = vpop.permute.xlu1 %808  ;;  %v5917_v10 = vsel %vm536_vm2, %v582_v18, %v583_v7  ;;  %v5941_v0 = vsel %vm536_vm2, %v583_v7, %v585_v21  ;;  %v595_v21 = vrot.slane %v5448_v58, 7 }
  0xd3   : > { %9339 = vst [vmem:[#allocation51_spill] sm:$0xff] %v5888_v59  ;;  %v5896_v20 = vpop.permute.xlu0 %814  ;;  %v456_v59 = vld [vmem:[#allocation2 + $0x140] sm:$0xff]  ;;  %9346 = vst [vmem:[#allocation58_spill] sm:$0xff] %v5917_v10 }
  0xd4   : > { %9341 = vst [vmem:[#allocation53_spill] sm:$0xff] %v5896_v20  ;;  %988 = vrot.lane.b32.xlu1 %v5893_v9, %s5034_s20  ;;  %v587_v14 = vrot.slane %v456_v59, 7  ;;  %v588_v9 = vrot.slane %v5428_v53, 7  ;;  %9352 = vst [vmem:[#allocation64_spill] sm:$0xff] %v5941_v0 }
  0xd5   : > { %994 = vrot.lane.b32.xlu0 %v5901_v13, %s5034_s20 }
  0xd6   : > { %v5904_v41 = vpop.permute.xlu1 %812  ;;  %v5933_v59 = vsel %vm536_vm2, %v587_v14, %v588_v9  ;;  %v5957_v7 = vsel %vm536_vm2, %v588_v9, %v590_v30  ;;  %v600_v30 = vrot.slane %v5566_v61, 7 }
  0xd7   : > { %9343 = vst [vmem:[#allocation55_spill] sm:$0xff] %v5904_v41  ;;  %v5912_v20 = vpop.permute.xlu0 %818  ;;  %v460_v41 = vld [vmem:[#allocation2 + $0x160] sm:$0xff]  ;;  %9350 = vst [vmem:[#allocation62_spill] sm:$0xff] %v5933_v59 }
  0xd8   : > { %9345 = vst [vmem:[#allocation57_spill] sm:$0xff] %v5912_v20  ;;  %992 = vrot.lane.b32.xlu1 %v5909_v38, %s5034_s20  ;;  %v592_v18 = vrot.slane %v460_v41, 7  ;;  %v593_v38 = vrot.slane %v5436_v55, 7  ;;  %9356 = vst [vmem:[#allocation68_spill] sm:$0xff] %v5957_v7 }
  0xd9   : > { %998 = vrot.lane.b32.xlu0 %v5917_v10, %s5034_s20 }
  0xda   : > { %v5920_v3 = vpop.permute.xlu1 %816  ;;  %v5949_v41 = vsel %vm536_vm2, %v592_v18, %v593_v38  ;;  %v5973_v9 = vsel %vm536_vm2, %v593_v38, %v595_v21  ;;  %v605_v21 = vrot.slane %v5575_v1, 7 }
  0xdb   : > { %9347 = vst [vmem:[#allocation59_spill] sm:$0xff] %v5920_v3  ;;  %v5928_v20 = vpop.permute.xlu0 %822  ;;  %v464_v3 = vld [vmem:[#allocation2 + $0x180] sm:$0xff]  ;;  %9354 = vst [vmem:[#allocation66_spill] sm:$0xff] %v5949_v41 }
  0xdc   : > { %9349 = vst [vmem:[#allocation61_spill] sm:$0xff] %v5928_v20  ;;  %996 = vrot.lane.b32.xlu1 %v5925_v36, %s5034_s20  ;;  %v597_v14 = vrot.slane %v464_v3, 7  ;;  %v598_v36 = vrot.slane %v5444_v57, 7  ;;  %9360 = vst [vmem:[#allocation72_spill] sm:$0xff] %v5973_v9 }
  0xdd   : > { %1002 = vrot.lane.b32.xlu0 %v5933_v59, %s5034_s20 }
  0xde   : > { %v5936_v13 = vpop.permute.xlu1 %820  ;;  %v5965_v3 = vsel %vm536_vm2, %v597_v14, %v598_v36  ;;  %v5989_v38 = vsel %vm536_vm2, %v598_v36, %v600_v30  ;;  %v610_v30 = vrot.slane %v5586_v5, 7 }
  0xdf   : > { %9351 = vst [vmem:[#allocation63_spill] sm:$0xff] %v5936_v13  ;;  %v5944_v20 = vpop.permute.xlu0 %826  ;;  %v468_v13 = vld [vmem:[#allocation2 + $0x1a0] sm:$0xff]  ;;  %9358 = vst [vmem:[#allocation70_spill] sm:$0xff] %v5965_v3 }
  0xe0   : > { %9353 = vst [vmem:[#allocation65_spill] sm:$0xff] %v5944_v20  ;;  %1000 = vrot.lane.b32.xlu1 %v5941_v0, %s5034_s20  ;;  %v602_v18 = vrot.slane %v468_v13, 7  ;;  %v603_v0 = vrot.slane %v5453_v60, 7  ;;  %9364 = vst [vmem:[#allocation76_spill] sm:$0xff] %v5989_v38 }
  0xe1   : > { %1006 = vrot.lane.b32.xlu0 %v5949_v41, %s5034_s20 }
  0xe2   : > { %v5952_v10 = vpop.permute.xlu1 %824  ;;  %v5981_v13 = vsel %vm536_vm2, %v602_v18, %v603_v0  ;;  %v480_v18 = vld [vmem:[#allocation2 + $0x200] sm:$0xff]  ;;  %v6007_v36 = vsel %vm536_vm2, %v603_v0, %v605_v21  ;;  %v6022_v0 = vld [vmem:[#allocation2 + $0x210] sm:$0xff] }
  0xe3   : > { %9355 = vst [vmem:[#allocation67_spill] sm:$0xff] %v5952_v10  ;;  %v5960_v20 = vpop.permute.xlu0 %830  ;;  %v472_v10 = vld [vmem:[#allocation2 + $0x1c0] sm:$0xff]  ;;  %9362 = vst [vmem:[#allocation74_spill] sm:$0xff] %v5981_v13 }
  0xe4   : > { %9357 = vst [vmem:[#allocation69_spill] sm:$0xff] %v5960_v20  ;;  %1004 = vrot.lane.b32.xlu1 %v5957_v7, %s5034_s20  ;;  %v607_v14 = vrot.slane %v472_v10, 7  ;;  %v608_v7 = vrot.slane %v5570_v62, 7  ;;  %v5996_v10 = vld [vmem:[#allocation2 + $0x208] sm:$0xff]  ;;  %9368 = vst [vmem:[#allocation80_spill] sm:$0xff] %v6007_v36 }
  0xe5   : > { %1010 = vrot.lane.b32.xlu0 %v5965_v3, %s5034_s20  ;;  %v613_v3 = vrot.slane %v5582_v4, 7 }
  0xe6   : > { %v5968_v59 = vpop.permute.xlu1 %828  ;;  %v6025_v21 = vsel %vm536_vm2, %v608_v7, %v610_v30 }
  0xe7   : > { %9359 = vst [vmem:[#allocation71_spill] sm:$0xff] %v5968_v59  ;;  %v5976_v20 = vpop.permute.xlu0 %834  ;;  %v476_v59 = vld [vmem:[#allocation2 + $0x1e0] sm:$0xff]  ;;  %9372 = vst [vmem:[#allocation84_spill] sm:$0xff] %v6025_v21 }
  0xe8   : > { %9361 = vst [vmem:[#allocation73_spill] sm:$0xff] %v5976_v20  ;;  %1008 = vrot.lane.b32.xlu1 %v5973_v9, %s5034_s20  ;;  %v5999_v9 = vsel %vm536_vm2, %v607_v14, %v608_v7 }
  0xe9   : > { %1014 = vrot.lane.b32.xlu0 %v5981_v13, %s5034_s20  ;;  %9366 = vst [vmem:[#allocation78_spill] sm:$0xff] %v5999_v9 }
  0xea   : > { %v5984_v41 = vpop.permute.xlu1 %832 }
  0xeb   : > { %9363 = vst [vmem:[#allocation75_spill] sm:$0xff] %v5984_v41  ;;  %v5992_v20 = vpop.permute.xlu0 %870  ;;  %v612_v41 = vrot.slane %v476_v59, 7 }
  0xec   : > { %9365 = vst [vmem:[#allocation77_spill] sm:$0xff] %v5992_v20  ;;  %1012 = vrot.lane.b32.xlu1 %v5989_v38, %s5034_s20  ;;  %v749_v20 = vrot.slane %v480_v18, 7  ;;  %v750_v38 = vrot.slane %v5996_v10, 7  ;;  %v615_v18 = vrot.slane %v5595_v8, 7 }
  0xed   : > { %1018 = vrot.lane.b32.xlu0 %v5999_v9, %s5034_s20  ;;  %v6016_v59 = vsel %vm536_vm2, %v612_v41, %v613_v3  ;;  %v752_v41 = vrot.slane %v6022_v0, 7 }
  0xee   : > { %v6002_v13 = vpop.permute.xlu1 %836  ;;  %9370 = vst [vmem:[#allocation82_spill] sm:$0xff] %v6016_v59  ;;  %v6041_v7 = vsel %vm536_vm2, %v613_v3, %v615_v18 }
  0xef   : > { %9367 = vst [vmem:[#allocation79_spill] sm:$0xff] %v6002_v13  ;;  %v6011_v26 = vpop.permute.xlu0 %874  ;;  %v6029_v13 = vsel %vm536_vm2, %v749_v20, %v750_v38  ;;  %9375 = vst [vmem:[#allocation87_spill] sm:$0xff] %v6041_v7  ;;  %v6048_v20 = vsel %vm536_vm2, %v750_v38, %v752_v41 }
  0xf0   : > { %9369 = vst [vmem:[#allocation81_spill] sm:$0xff] %v6011_v26  ;;  %1016 = vrot.lane.b32.xlu1 %v6007_v36, %s5034_s20 }
  0xf1   : > { %1022 = vrot.lane.b32.xlu0 %v6016_v59, %s5034_s20 }
  0xf2   : > { %v6018_v14 = vpop.permute.xlu1 %872 }
  0xf3   : > { %9371 = vst [vmem:[#allocation83_spill] sm:$0xff] %v6018_v14  ;;  %v6031_v26 = vpop.permute.xlu0 %878 }
  0xf4   : > { %9373 = vst [vmem:[#allocation85_spill] sm:$0xff] %v6031_v26  ;;  %1020 = vrot.lane.b32.xlu1 %v6025_v21, %s5034_s20 }
  0xf5   : > { %1026 = vrot.lane.b32.xlu0 %v6029_v13, %s5034_s20 }
  0xf6   : > { %v6036_v14 = vpop.permute.xlu1 %876 }
  0xf7   : > { %9374 = vst [vmem:[#allocation86_spill] sm:$0xff] %v6036_v14  ;;  %v6043_v30 = vpop.permute.xlu0 %882 }
  0xf8   : > { %9376 = vst [vmem:[#allocation88_spill] sm:$0xff] %v6043_v30  ;;  %1024 = vrot.lane.b32.xlu1 %v6041_v7, %s5034_s20 }
  0xf9   : > { %1062 = vrot.lane.b32.xlu0 %v5341_v27, %s5035_s21 }
  0xfa   : > { %v6050_v26 = vpop.permute.xlu1 %880 }
  0xfb   : > { %v6054_v14 = vpop.permute.xlu0 %886 }
  0xfc   : > { %9377 = vst [vmem:[#allocation89_spill] sm:$0xff] %v6054_v14  ;;  %1028 = vrot.lane.b32.xlu1 %v6048_v20, %s5034_s20  ;;  %v9446_v14 = vld [vmem:[#allocation36_spill] sm:$0xff] }
  0xfd   : > { %1066 = vrot.lane.b32.xlu0 %v5343_v28, %s5035_s21 }
  0xfe   : > { %v6058_v3 = vpop.permute.xlu1 %884 }
  0xff   : > { %9378 = vst [vmem:[#allocation90_spill] sm:$0xff] %v6058_v3  ;;  %v6062_v18 = vpop.permute.xlu0 %890  ;;  %v9454_v3 = vld [vmem:[#allocation44_spill] sm:$0xff] }
 0x100   : > { %9379 = vst [vmem:[#allocation91_spill] sm:$0xff] %v6062_v18  ;;  %1064 = vrot.lane.b32.xlu1 %v5350_v29, %s5035_s21 }
 0x101   : > { %1070 = vrot.lane.b32.xlu0 %v5359_v33, %s5035_s21 }
 0x102   : > { %v6066_v38 = vpop.permute.xlu1 %888 }
 0x103   : > { %9380 = vst [vmem:[#allocation92_spill] sm:$0xff] %v6066_v38  ;;  %v6070_v27 = vpop.permute.xlu0 %894  ;;  %v9445_v38 = vld [vmem:[#allocation34_spill] sm:$0xff] }
 0x104   : > { %9381 = vst [vmem:[#allocation93_spill] sm:$0xff] %v6070_v27  ;;  %1068 = vrot.lane.b32.xlu1 %v5364_v34, %s5035_s21 }
 0x105   : > { %1074 = vrot.lane.b32.xlu0 %v5368_v35, %s5035_s21 }
 0x106   : > { %v6074_v41 = vpop.permute.xlu1 %892 }
 0x107   : > { %9382 = vst [vmem:[#allocation94_spill] sm:$0xff] %v6074_v41  ;;  %v6078_v28 = vpop.permute.xlu0 %898 }
 0x108   : > { %9383 = vst [vmem:[#allocation95_spill] sm:$0xff] %v6078_v28  ;;  %1072 = vrot.lane.b32.xlu1 %v5381_v42, %s5035_s21  ;;  %v9437_v28 = vld [vmem:[#allocation21_spill] sm:$0xff] }
 0x109   : > { %1078 = vrot.lane.b32.xlu0 %v5388_v43, %s5035_s21 }
 0x10a   : > { %v6082_v29 = vpop.permute.xlu1 %896 }
 0x10b   : > { %9384 = vst [vmem:[#allocation96_spill] sm:$0xff] %v6082_v29  ;;  %v6086_v33 = vpop.permute.xlu0 %902 }
 0x10c   : > { %9385 = vst [vmem:[#allocation97_spill] sm:$0xff] %v6086_v33  ;;  %1076 = vrot.lane.b32.xlu1 %v5392_v44, %s5035_s21 }
 0x10d   : > { %1082 = vrot.lane.b32.xlu0 %v5396_v45, %s5035_s21 }
 0x10e   : > { %v6090_v34 = vpop.permute.xlu1 %900 }
 0x10f   : > { %9386 = vst [vmem:[#allocation98_spill] sm:$0xff] %v6090_v34  ;;  %v6094_v35 = vpop.permute.xlu0 %906 }
 0x110   : > { %9387 = vst [vmem:[#allocation99_spill] sm:$0xff] %v6094_v35  ;;  %1080 = vrot.lane.b32.xlu1 %v5400_v46, %s5035_s21 }
 0x111   : > { %1086 = vrot.lane.b32.xlu0 %v5404_v47, %s5035_s21 }
 0x112   : > { %v6098_v42 = vpop.permute.xlu1 %904 }
 0x113   : > { %9388 = vst [vmem:[#allocation100_spill] sm:$0xff] %v6098_v42  ;;  %v6102_v43 = vpop.permute.xlu0 %910  ;;  %v9433_v42 = vld [vmem:[#allocation16_spill] sm:$0xff] }
 0x114   : > { %9389 = vst [vmem:[#allocation101_spill] sm:$0xff] %v6102_v43  ;;  %1084 = vrot.lane.b32.xlu1 %v5408_v48, %s5035_s21  ;;  %v9425_v43 = vld [vmem:[#allocation11_spill] sm:$0xff] }
 0x115   : > { %1090 = vrot.lane.b32.xlu0 %v5412_v49, %s5035_s21 }
 0x116   : > { %v6106_v44 = vpop.permute.xlu1 %908 }
 0x117   : > { %9390 = vst [vmem:[#allocation102_spill] sm:$0xff] %v6106_v44  ;;  %v6110_v45 = vpop.permute.xlu0 %914 }
 0x118   : > { %9391 = vst [vmem:[#allocation103_spill] sm:$0xff] %v6110_v45  ;;  %1088 = vrot.lane.b32.xlu1 %v5416_v50, %s5035_s21 }
 0x119   : > { %1094 = vrot.lane.b32.xlu0 %v5420_v51, %s5035_s21 }
 0x11a   : > { %v6114_v46 = vpop.permute.xlu1 %912 }
 0x11b   : > { %9392 = vst [vmem:[#allocation104_spill] sm:$0xff] %v6114_v46  ;;  %v6118_v47 = vpop.permute.xlu0 %918 }
 0x11c   : > { %9393 = vst [vmem:[#allocation105_spill] sm:$0xff] %v6118_v47  ;;  %1092 = vrot.lane.b32.xlu1 %v5424_v52, %s5035_s21 }
 0x11d   : > { %1098 = vrot.lane.b32.xlu0 %v5428_v53, %s5035_s21 }
 0x11e   : > { %v6122_v48 = vpop.permute.xlu1 %916 }
 0x11f   : > { %9394 = vst [vmem:[#allocation106_spill] sm:$0xff] %v6122_v48  ;;  %v6126_v49 = vpop.permute.xlu0 %922 }
 0x120   : > { %9395 = vst [vmem:[#allocation107_spill] sm:$0xff] %v6126_v49  ;;  %1096 = vrot.lane.b32.xlu1 %v5432_v54, %s5035_s21 }
 0x121   : > { %1102 = vrot.lane.b32.xlu0 %v5436_v55, %s5035_s21 }
 0x122   : > { %v6130_v50 = vpop.permute.xlu1 %920 }
 0x123   : > { %9396 = vst [vmem:[#allocation108_spill] sm:$0xff] %v6130_v50  ;;  %v6134_v51 = vpop.permute.xlu0 %926 }
 0x124   : > { %9397 = vst [vmem:[#allocation109_spill] sm:$0xff] %v6134_v51  ;;  %1100 = vrot.lane.b32.xlu1 %v5440_v56, %s5035_s21 }
 0x125   : > { %1106 = vrot.lane.b32.xlu0 %v5444_v57, %s5035_s21 }
 0x126   : > { %v6138_v52 = vpop.permute.xlu1 %924 }
 0x127   : > { %9398 = vst [vmem:[#allocation110_spill] sm:$0xff] %v6138_v52  ;;  %v6142_v53 = vpop.permute.xlu0 %930 }
 0x128   : > { %9399 = vst [vmem:[#allocation111_spill] sm:$0xff] %v6142_v53  ;;  %1104 = vrot.lane.b32.xlu1 %v5448_v58, %s5035_s21 }
 0x129   : > { %1110 = vrot.lane.b32.xlu0 %v5453_v60, %s5035_s21 }
 0x12a   : > { %v6146_v54 = vpop.permute.xlu1 %928 }
 0x12b   : > { %9400 = vst [vmem:[#allocation112_spill] sm:$0xff] %v6146_v54  ;;  %v6152_v55 = vpop.permute.xlu0 %966 }
 0x12c   : > { %1108 = vrot.lane.b32.xlu1 %v5566_v61, %s5035_s21 }
 0x12d   : > { %1114 = vrot.lane.b32.xlu0 %v5570_v62, %s5035_s21 }
 0x12e   : > { %v6154_v56 = vpop.permute.xlu1 %932 }
 0x12f   : > { %9401 = vst [vmem:[#allocation113_spill] sm:$0xff] %v6154_v56  ;;  %v6160_v57 = vpop.permute.xlu0 %970 }
 0x130   : > { %1112 = vrot.lane.b32.xlu1 %v5575_v1, %s5035_s21 }
 0x131   : > { %1118 = vrot.lane.b32.xlu0 %v5582_v4, %s5035_s21 }
 0x132   : > { %v6162_v58 = vpop.permute.xlu1 %968 }
 0x133   : > { %v6168_v60 = vpop.permute.xlu0 %974 }
 0x134   : > { %1116 = vrot.lane.b32.xlu1 %v5586_v5, %s5035_s21 }
 0x135   : > { %1122 = vrot.lane.b32.xlu0 %v5996_v10, %s5035_s21 }
 0x136   : > { %v6170_v61 = vpop.permute.xlu1 %972 }
 0x137   : > { %v6176_v62 = vpop.permute.xlu0 %978 }
 0x138   : > { %1120 = vrot.lane.b32.xlu1 %v5595_v8, %s5035_s21  ;;  %9402 = vst [vmem:[#allocation114_spill] sm:$0xff] %v6176_v62 }
 0x139   : > { %1158 = vrot.lane.b32.xlu0 %v5599_v15, %s5036_s22 }
 0x13a   : > { %v6178_v1 = vpop.permute.xlu1 %976 }
 0x13b   : > { %v6184_v4 = vpop.permute.xlu0 %982 }
 0x13c   : > { %1124 = vrot.lane.b32.xlu1 %v6022_v0, %s5035_s21  ;;  %9403 = vst [vmem:[#allocation115_spill] sm:$0xff] %v6184_v4 }
 0x13d   : > { %1162 = vrot.lane.b32.xlu0 %v5609_v22, %s5036_s22 }
 0x13e   : > { %v6186_v5 = vpop.permute.xlu1 %980 }
 0x13f   : > { %9404 = vst [vmem:[#allocation116_spill] sm:$0xff] %v6186_v5  ;;  %v6192_v8 = vpop.permute.xlu0 %986  ;;  %v9450_v5 = vld [vmem:[#allocation40_spill] sm:$0xff] }
 0x140   : > { %1160 = vrot.lane.b32.xlu1 %v5615_v25, %s5036_s22  ;;  %9405 = vst [vmem:[#allocation117_spill] sm:$0xff] %v6192_v8  ;;  %v9439_v8 = vld [vmem:[#allocation27_spill] sm:$0xff] }
 0x141   : > { %1166 = vrot.lane.b32.xlu0 %v5620_v31, %s5036_s22 }
 0x142   : > { %v6194_v56 = vpop.permute.xlu1 %984 }
 0x143   : > { %9406 = vst [vmem:[#allocation118_spill] sm:$0xff] %v6194_v56  ;;  %v6200_v15 = vpop.permute.xlu0 %990  ;;  %v9442_v56 = vld [vmem:[#allocation30_spill] sm:$0xff] }
 0x144   : > { %1164 = vrot.lane.b32.xlu1 %v5627_v37, %s5036_s22  ;;  %9407 = vst [vmem:[#allocation119_spill] sm:$0xff] %v6200_v15  ;;  %v9438_v15 = vld [vmem:[#allocation23_spill] sm:$0xff] }
 0x145   : > { %1170 = vrot.lane.b32.xlu0 %v5632_v40, %s5036_s22 }
 0x146   : > { %v6202_v53 = vpop.permute.xlu1 %988 }
 0x147   : > { %9408 = vst [vmem:[#allocation120_spill] sm:$0xff] %v6202_v53  ;;  %v6208_v25 = vpop.permute.xlu0 %994 }
 0x148   : > { %1168 = vrot.lane.b32.xlu1 %v5639_v63, %s5036_s22  ;;  %9409 = vst [vmem:[#allocation121_spill] sm:$0xff] %v6208_v25  ;;  %v756_v25 = vrot.slane %v6022_v0, 1 }
 0x149   : > { %1174 = vrot.lane.b32.xlu0 %v5644_v6, %s5036_s22 }
 0x14a   : > { %v6210_v54 = vpop.permute.xlu1 %992 }
 0x14b   : > { %9410 = vst [vmem:[#allocation122_spill] sm:$0xff] %v6210_v54  ;;  %v6216_v51 = vpop.permute.xlu0 %998  ;;  %v483_v54 = vld [vmem:[#allocation2 + $0x218] sm:$0x1] }
 0x14c   : > { %1172 = vrot.lane.b32.xlu1 %v5651_v12, %s5036_s22  ;;  %9411 = vst [vmem:[#allocation123_spill] sm:$0xff] %v6216_v51  ;;  %v758_v27 = vrot.slane %v483_v54, 1 }
 0x14d   : > { %1178 = vrot.lane.b32.xlu0 %v5656_v16, %s5036_s22 }
 0x14e   : > { %v6218_v52 = vpop.permute.xlu1 %996  ;;  %v6312_v18 = vsel %vm665_vm4, %v756_v25, %v758_v27 }
 0x14f   : > { %9412 = vst [vmem:[#allocation124_spill] sm:$0xff] %v6218_v52  ;;  %v6224_v49 = vpop.permute.xlu0 %1002  ;;  %v755_v52 = vrot.slane %v5996_v10, 1 }
 0x150   : > { %1176 = vrot.lane.b32.xlu1 %v5663_v19, %s5036_s22  ;;  %9413 = vst [vmem:[#allocation125_spill] sm:$0xff] %v6224_v49 }
 0x151   : > { %1182 = vrot.lane.b32.xlu0 %v5668_v24, %s5036_s22 }
 0x152   : > { %v6226_v50 = vpop.permute.xlu1 %1000 }
 0x153   : > { %9414 = vst [vmem:[#allocation126_spill] sm:$0xff] %v6226_v50  ;;  %v6232_v47 = vpop.permute.xlu0 %1006  ;;  %v9429_v50 = vld [vmem:[#allocation13_spill] sm:$0xff] }
 0x154   : > { %1180 = vrot.lane.b32.xlu1 %v5675_v32, %s5036_s22  ;;  %9415 = vst [vmem:[#allocation127_spill] sm:$0xff] %v6232_v47 }
 0x155   : > { %1186 = vrot.lane.b32.xlu0 %v5680_v39, %s5036_s22 }
 0x156   : > { %v6234_v48 = vpop.permute.xlu1 %1004 }
 0x157   : > { %9416 = vst [vmem:[#allocation128_spill] sm:$0xff] %v6234_v48  ;;  %v6240_v45 = vpop.permute.xlu0 %1010  ;;  %v9421_v48 = vld [vmem:[#allocation9_spill] sm:$0xff] }
 0x158   : > { %1184 = vrot.lane.b32.xlu1 %v5687_v2, %s5036_s22  ;;  %9417 = vst [vmem:[#allocation129_spill] sm:$0xff] %v6240_v45 }
 0x159   : > { %1190 = vrot.lane.b32.xlu0 %v5692_v11, %s5036_s22 }
 0x15a   : > { %v6242_v46 = vpop.permute.xlu1 %1008 }
 0x15b   : > { %9418 = vst [vmem:[#allocation130_spill] sm:$0xff] %v6242_v46  ;;  %v6248_v49 = vpop.permute.xlu0 %1014  ;;  %v9424_v46 = vld [vmem:[#allocation10_spill] sm:$0xff] }
 0x15c   : > { %1188 = vrot.lane.b32.xlu1 %v5699_v17, %s5036_s22  ;;  %9419 = vst [vmem:[#allocation131_spill] sm:$0xff] %v6248_v49 }
 0x15d   : > { %1194 = vrot.lane.b32.xlu0 %v5704_v23, %s5036_s22 }
 0x15e   : > { %v6250_v47 = vpop.permute.xlu1 %1012 }
 0x15f   : > { %9420 = vst [vmem:[#allocation132_spill] sm:$0xff] %v6250_v47  ;;  %v6256_v44 = vpop.permute.xlu0 %1018  ;;  %v9428_v47 = vld [vmem:[#allocation12_spill] sm:$0xff] }
 0x160   : > { %1192 = vrot.lane.b32.xlu1 %v9421_v48, %s5036_s22  ;;  %9422 = vst [vmem:[#allocation9_spill] sm:$0xff] %v6256_v44 }
 0x161   : > { %1198 = vrot.lane.b32.xlu0 %v9424_v46, %s5036_s22 }
 0x162   : > { %v6258_v45 = vpop.permute.xlu1 %1016 }
 0x163   : > { %9423 = vst [vmem:[#allocation133_spill] sm:$0xff] %v6258_v45  ;;  %v6264_v35 = vpop.permute.xlu0 %1022  ;;  %v9432_v45 = vld [vmem:[#allocation14_spill] sm:$0xff] }
 0x164   : > { %1196 = vrot.lane.b32.xlu1 %v9425_v43, %s5036_s22  ;;  %9426 = vst [vmem:[#allocation10_spill] sm:$0xff] %v6264_v35 }
 0x165   : > { %1202 = vrot.lane.b32.xlu0 %v9428_v47, %s5036_s22 }
 0x166   : > { %v6266_v49 = vpop.permute.xlu1 %1020 }
 0x167   : > { %9427 = vst [vmem:[#allocation11_spill] sm:$0xff] %v6266_v49  ;;  %v6272_v51 = vpop.permute.xlu0 %1026  ;;  %v9435_v49 = vld [vmem:[#allocation17_spill] sm:$0xff] }
 0x168   : > { %1200 = vrot.lane.b32.xlu1 %v9429_v50, %s5036_s22  ;;  %9430 = vst [vmem:[#allocation12_spill] sm:$0xff] %v6272_v51  ;;  %v9436_v51 = vld [vmem:[#allocation19_spill] sm:$0xff] }
 0x169   : > { %1206 = vrot.lane.b32.xlu0 %v9432_v45, %s5036_s22 }
 0x16a   : > { %v6274_v44 = vpop.permute.xlu1 %1024 }
 0x16b   : > { %9431 = vst [vmem:[#allocation13_spill] sm:$0xff] %v6274_v44  ;;  %v6280_v33 = vpop.permute.xlu0 %1062 }
 0x16c   : > { %1204 = vrot.lane.b32.xlu1 %v9433_v42, %s5036_s22 }
 0x16d   : > { %1210 = vrot.lane.b32.xlu0 %v9435_v49, %s5036_s22 }
 0x16e   : > { %v6282_v35 = vpop.permute.xlu1 %1028 }
 0x16f   : > { %9434 = vst [vmem:[#allocation14_spill] sm:$0xff] %v6282_v35  ;;  %v6290_v44 = vpop.permute.xlu0 %1066  ;;  %v6297_v35 = vsel %vm665_vm4, %v755_v52, %v756_v25 }
 0x170   : > { %1208 = vrot.lane.b32.xlu1 %v9436_v51, %s5036_s22 }
 0x171   : > { %1214 = vrot.lane.b32.xlu0 %v9437_v28, %s5036_s22 }
 0x172   : > { %v6292_v34 = vpop.permute.xlu1 %1064 }
 0x173   : > { %v6301_v29 = vpop.permute.xlu0 %1070 }
 0x174   : > { %1212 = vrot.lane.b32.xlu1 %v9438_v15, %s5036_s22 }
 0x175   : > { %1218 = vrot.lane.b32.xlu0 %v6297_v35, %s5036_s22 }
 0x176   : > { %v6303_v53 = vpop.permute.xlu1 %1068 }
 0x177   : > { %v6309_v41 = vpop.permute.xlu0 %1074 }
 0x178   : > { %1216 = vrot.lane.b32.xlu1 %v9439_v8, %s5036_s22  ;;  %9440 = vst [vmem:[#allocation16_spill] sm:$0xff] %v6309_v41  ;;  %v9449_v41 = vld [vmem:[#allocation38_spill] sm:$0xff] }
 0x179   : > { %1254 = vrot.lane.b32.xlu0 %v9442_v56, %s5037_s23 }
 0x17a   : > { %v6314_v52 = vpop.permute.xlu1 %1072 }
 0x17b   : > { %9441 = vst [vmem:[#allocation17_spill] sm:$0xff] %v6314_v52  ;;  %v6320_v54 = vpop.permute.xlu0 %1078  ;;  %v9458_v52 = vld [vmem:[#allocation48_spill] sm:$0xff] }
 0x17c   : > { %1220 = vrot.lane.b32.xlu1 %v6312_v18, %s5036_s22  ;;  %9443 = vst [vmem:[#allocation19_spill] sm:$0xff] %v6320_v54 }
 0x17d   : > { %1258 = vrot.lane.b32.xlu0 %v9445_v38, %s5037_s23 }
 0x17e   : > { %v6322_v4 = vpop.permute.xlu1 %1076 }
 0x17f   : > { %9444 = vst [vmem:[#allocation21_spill] sm:$0xff] %v6322_v4  ;;  %v6328_v27 = vpop.permute.xlu0 %1082  ;;  %v9453_v4 = vld [vmem:[#allocation42_spill] sm:$0xff] }
 0x180   : > { %1256 = vrot.lane.b32.xlu1 %v9446_v14, %s5037_s23  ;;  %9447 = vst [vmem:[#allocation23_spill] sm:$0xff] %v6328_v27 }
 0x181   : > { %1262 = vrot.lane.b32.xlu0 %v9449_v41, %s5037_s23 }
 0x182   : > { %v6330_v25 = vpop.permute.xlu1 %1080 }
 0x183   : > { %9448 = vst [vmem:[#allocation27_spill] sm:$0xff] %v6330_v25  ;;  %v6336_v62 = vpop.permute.xlu0 %1086  ;;  %v9457_v25 = vld [vmem:[#allocation46_spill] sm:$0xff] }
 0x184   : > { %1260 = vrot.lane.b32.xlu1 %v9450_v5, %s5037_s23  ;;  %9451 = vst [vmem:[#allocation30_spill] sm:$0xff] %v6336_v62 }
 0x185   : > { %1266 = vrot.lane.b32.xlu0 %v9453_v4, %s5037_s23  ;;  %v9462_v4 = vld [vmem:[#allocation52_spill] sm:$0xff] }
 0x186   : > { %v6338_v54 = vpop.permute.xlu1 %1084 }
 0x187   : > { %9452 = vst [vmem:[#allocation34_spill] sm:$0xff] %v6338_v54  ;;  %v6344_v30 = vpop.permute.xlu0 %1090  ;;  %v9461_v54 = vld [vmem:[#allocation50_spill] sm:$0xff] }
 0x188   : > { %1264 = vrot.lane.b32.xlu1 %v9454_v3, %s5037_s23  ;;  %9455 = vst [vmem:[#allocation36_spill] sm:$0xff] %v6344_v30 }
 0x189   : > { %1270 = vrot.lane.b32.xlu0 %v9457_v25, %s5037_s23  ;;  %v9466_v25 = vld [vmem:[#allocation56_spill] sm:$0xff] }
 0x18a   : > { %v6346_v27 = vpop.permute.xlu1 %1088 }
 0x18b   : > { %9456 = vst [vmem:[#allocation38_spill] sm:$0xff] %v6346_v27  ;;  %v6352_v5 = vpop.permute.xlu0 %1094  ;;  %v9465_v27 = vld [vmem:[#allocation54_spill] sm:$0xff] }
 0x18c   : > { %1268 = vrot.lane.b32.xlu1 %v9458_v52, %s5037_s23  ;;  %9459 = vst [vmem:[#allocation134_spill] sm:$0xff] %v6352_v5 }
 0x18d   : > { %1274 = vrot.lane.b32.xlu0 %v9461_v54, %s5037_s23  ;;  %v9470_v54 = vld [vmem:[#allocation60_spill] sm:$0xff] }
 0x18e   : > { %v6354_v62 = vpop.permute.xlu1 %1092 }
 0x18f   : > { %9460 = vst [vmem:[#allocation135_spill] sm:$0xff] %v6354_v62  ;;  %v6360_v3 = vpop.permute.xlu0 %1098  ;;  %v9469_v62 = vld [vmem:[#allocation58_spill] sm:$0xff] }
 0x190   : > { %1272 = vrot.lane.b32.xlu1 %v9462_v4, %s5037_s23  ;;  %9463 = vst [vmem:[#allocation136_spill] sm:$0xff] %v6360_v3 }
 0x191   : > { %1278 = vrot.lane.b32.xlu0 %v9465_v27, %s5037_s23  ;;  %v9474_v27 = vld [vmem:[#allocation64_spill] sm:$0xff] }
 0x192   : > { %v6362_v30 = vpop.permute.xlu1 %1096 }
 0x193   : > { %9464 = vst [vmem:[#allocation137_spill] sm:$0xff] %v6362_v30  ;;  %v6368_v52 = vpop.permute.xlu0 %1102  ;;  %v9473_v30 = vld [vmem:[#allocation62_spill] sm:$0xff] }
 0x194   : > { %1276 = vrot.lane.b32.xlu1 %v9466_v25, %s5037_s23  ;;  %9467 = vst [vmem:[#allocation138_spill] sm:$0xff] %v6368_v52 }
 0x195   : > { %1282 = vrot.lane.b32.xlu0 %v9469_v62, %s5037_s23  ;;  %v9478_v62 = vld [vmem:[#allocation68_spill] sm:$0xff] }
 0x196   : > { %v6370_v5 = vpop.permute.xlu1 %1100 }
 0x197   : > { %9468 = vst [vmem:[#allocation139_spill] sm:$0xff] %v6370_v5  ;;  %v6376_v4 = vpop.permute.xlu0 %1106  ;;  %v9477_v5 = vld [vmem:[#allocation66_spill] sm:$0xff] }
 0x198   : > { %1280 = vrot.lane.b32.xlu1 %v9470_v54, %s5037_s23  ;;  %9471 = vst [vmem:[#allocation140_spill] sm:$0xff] %v6376_v4 }
 0x199   : > { %1286 = vrot.lane.b32.xlu0 %v9473_v30, %s5037_s23  ;;  %v9482_v30 = vld [vmem:[#allocation72_spill] sm:$0xff] }
 0x19a   : > { %v6378_v3 = vpop.permute.xlu1 %1104 }
 0x19b   : > { %9472 = vst [vmem:[#allocation141_spill] sm:$0xff] %v6378_v3  ;;  %v6384_v25 = vpop.permute.xlu0 %1110  ;;  %v9481_v3 = vld [vmem:[#allocation70_spill] sm:$0xff] }
 0x19c   : > { %1284 = vrot.lane.b32.xlu1 %v9474_v27, %s5037_s23  ;;  %9475 = vst [vmem:[#allocation142_spill] sm:$0xff] %v6384_v25 }
 0x19d   : > { %1290 = vrot.lane.b32.xlu0 %v9477_v5, %s5037_s23  ;;  %v9486_v5 = vld [vmem:[#allocation76_spill] sm:$0xff] }
 0x19e   : > { %v6386_v52 = vpop.permute.xlu1 %1108 }
 0x19f   : > { %9476 = vst [vmem:[#allocation143_spill] sm:$0xff] %v6386_v52  ;;  %v6392_v54 = vpop.permute.xlu0 %1114  ;;  %v9485_v52 = vld [vmem:[#allocation74_spill] sm:$0xff] }
 0x1a0   : > { %1288 = vrot.lane.b32.xlu1 %v9478_v62, %s5037_s23  ;;  %9479 = vst [vmem:[#allocation144_spill] sm:$0xff] %v6392_v54 }
 0x1a1   : > { %1294 = vrot.lane.b32.xlu0 %v9481_v3, %s5037_s23 }
 0x1a2   : > { %v6394_v4 = vpop.permute.xlu1 %1112 }
 0x1a3   : > { %9480 = vst [vmem:[#allocation145_spill] sm:$0xff] %v6394_v4  ;;  %v6400_v27 = vpop.permute.xlu0 %1118 }
 0x1a4   : > { %1292 = vrot.lane.b32.xlu1 %v9482_v30, %s5037_s23  ;;  %9483 = vst [vmem:[#allocation146_spill] sm:$0xff] %v6400_v27  ;;  %v484_v27 = vld [vmem:[#allocation2 + $0x220] sm:$0xff] }
 0x1a5   : > { %1298 = vrot.lane.b32.xlu0 %v9485_v52, %s5037_s23  ;;  %v763_v52 = vrot.slane %v484_v27, 7 }
 0x1a6   : > { %v6402_v25 = vpop.permute.xlu1 %1116 }
 0x1a7   : > { %9484 = vst [vmem:[#allocation147_spill] sm:$0xff] %v6402_v25  ;;  %v6408_v62 = vpop.permute.xlu0 %1122  ;;  %v6418_v25 = vld [vmem:[#allocation2 + $0x228] sm:$0xff] }
 0x1a8   : > { %1296 = vrot.lane.b32.xlu1 %v9486_v5, %s5037_s23  ;;  %9487 = vst [vmem:[#allocation148_spill] sm:$0xff] %v6408_v62  ;;  %v764_v62 = vrot.slane %v6418_v25, 7 }
 0x1a9   : > { %1302 = vrot.lane.b32.xlu0 %v5999_v9, %s5037_s23 }
 0x1aa   : > { %v6410_v54 = vpop.permute.xlu1 %1120 }
 0x1ab   : > { %9488 = vst [vmem:[#allocation149_spill] sm:$0xff] %v6410_v54  ;;  %v6416_v4 = vpop.permute.xlu0 %1158 }
 0x1ac   : > { %1300 = vrot.lane.b32.xlu1 %v6007_v36, %s5037_s23  ;;  %v6433_v36 = vld [vmem:[#allocation2 + $0x230] sm:$0xff] }
 0x1ad   : > { %1306 = vrot.lane.b32.xlu0 %v6016_v59, %s5037_s23  ;;  %v766_v59 = vrot.slane %v6433_v36, 7 }
 0x1ae   : > { %v6420_v3 = vpop.permute.xlu1 %1124 }
 0x1af   : > { %9489 = vst [vmem:[#allocation150_spill] sm:$0xff] %v6420_v3  ;;  %v6427_v54 = vpop.permute.xlu0 %1162  ;;  %v765_v3 = vsel %vm536_vm2, %v763_v52, %v764_v62  ;;  %v4922_v52 = vld [vmem:[#allocation2 + $0x48] sm:$0xff] }
 0x1b0   : > { %1304 = vrot.lane.b32.xlu1 %v6025_v21, %s5037_s23 }
 0x1b1   : > { %1310 = vrot.lane.b32.xlu0 %v6029_v13, %s5037_s23  ;;  %v767_v13 = vsel %vm536_vm2, %v764_v62, %v766_v59  ;;  %v4925_v62 = vld [vmem:[#allocation2 + $0x88] sm:$0xff] }
 0x1b2   : > { %v6429_v9 = vpop.permute.xlu1 %1160 }
 0x1b3   : > { %v6438_v27 = vpop.permute.xlu0 %1166 }
 0x1b4   : > { %1308 = vrot.lane.b32.xlu1 %v6041_v7, %s5037_s23  ;;  %9490 = vst [vmem:[#allocation151_spill] sm:$0xff] %v6438_v27 }
 0x1b5   : > { %1314 = vrot.lane.b32.xlu0 %v765_v3, %s5037_s23  ;;  %v4923_v3 = vld [vmem:[#allocation2 + $0x68] sm:$0xff] }
 0x1b6   : > { %v6441_v5 = vpop.permute.xlu1 %1164 }
 0x1b7   : > { %v6446_v21 = vpop.permute.xlu0 %1170 }
 0x1b8   : > { %1312 = vrot.lane.b32.xlu1 %v6048_v20, %s5037_s23  ;;  %9491 = vst [vmem:[#allocation152_spill] sm:$0xff] %v6446_v21  ;;  %v4924_v20 = vld [vmem:[#allocation2 + $0x50] sm:$0xff] }
 0x1b9   : > { %1350 = vrot.lane.b32.xlu0 %v4922_v52, %s5038_s29  ;;  %v4926_v52 = vld [vmem:[#allocation2 + $0x70] sm:$0xff] }
 0x1ba   : > { %v6449_v30 = vpop.permute.xlu1 %1168 }
 0x1bb   : > { %9492 = vst [vmem:[#allocation153_spill] sm:$0xff] %v6449_v30  ;;  %v6453_v7 = vpop.permute.xlu0 %1174 }
 0x1bc   : > { %1316 = vrot.lane.b32.xlu1 %v767_v13, %s5037_s23  ;;  %9493 = vst [vmem:[#allocation154_spill] sm:$0xff] %v6453_v7 }
 0x1bd   : > { %1354 = vrot.lane.b32.xlu0 %v4923_v3, %s5038_s29  ;;  %v4928_v3 = vld [vmem:[#allocation2 + $0x90] sm:$0xff] }
 0x1be   : > { %v6455_v27 = vpop.permute.xlu1 %1172 }
 0x1bf   : > { %9494 = vst [vmem:[#allocation155_spill] sm:$0xff] %v6455_v27  ;;  %v6459_v21 = vpop.permute.xlu0 %1178  ;;  %v4927_v27 = vld [vmem:[#allocation2 + $0xa8] sm:$0xff] }
 0x1c0   : > { %1352 = vrot.lane.b32.xlu1 %v4924_v20, %s5038_s29  ;;  %9495 = vst [vmem:[#allocation156_spill] sm:$0xff] %v6459_v21 }
 0x1c1   : > { %1358 = vrot.lane.b32.xlu0 %v4925_v62, %s5038_s29  ;;  %v4930_v62 = vld [vmem:[#allocation2 + $0xb0] sm:$0xff] }
 0x1c2   : > { %v6461_v59 = vpop.permute.xlu1 %1176 }
 0x1c3   : > { %9496 = vst [vmem:[#allocation157_spill] sm:$0xff] %v6461_v59  ;;  %v6465_v13 = vpop.permute.xlu0 %1182  ;;  %v4929_v59 = vld [vmem:[#allocation2 + $0xc8] sm:$0xff] }
 0x1c4   : > { %1356 = vrot.lane.b32.xlu1 %v4926_v52, %s5038_s29  ;;  %9497 = vst [vmem:[#allocation158_spill] sm:$0xff] %v6465_v13 }
 0x1c5   : > { %1362 = vrot.lane.b32.xlu0 %v4927_v27, %s5038_s29  ;;  %v4932_v27 = vld [vmem:[#allocation2 + $0xd0] sm:$0xff] }
 0x1c6   : > { %v6467_v7 = vpop.permute.xlu1 %1180 }
 0x1c7   : > { %9498 = vst [vmem:[#allocation159_spill] sm:$0xff] %v6467_v7  ;;  %v6471_v20 = vpop.permute.xlu0 %1186  ;;  %v4931_v7 = vld [vmem:[#allocation2 + $0xe8] sm:$0xff] }
 0x1c8   : > { %1360 = vrot.lane.b32.xlu1 %v4928_v3, %s5038_s29  ;;  %9499 = vst [vmem:[#allocation160_spill] sm:$0xff] %v6471_v20 }
 0x1c9   : > { %1366 = vrot.lane.b32.xlu0 %v4929_v59, %s5038_s29  ;;  %v1809_v59 = vld [vmem:[%s9157_s1 + $0x20] sm:$0xf] }
 0x1ca   : > { %v6473_v21 = vpop.permute.xlu1 %1184  ;;  %4677 = vmatprep.subr.msk.mxu0 %vm1914_vm5, %v1809_v59  ;;  %4859 = vmatprep.subr.msk.mxu1 %vm1914_vm5, %v1809_v59 }
 0x1cb   : > { %9500 = vst [vmem:[#allocation161_spill] sm:$0xff] %v6473_v21  ;;  %v6477_v52 = vpop.permute.xlu0 %1190  ;;  %v4933_v21 = vld [vmem:[#allocation2 + $0x108] sm:$0xff]  ;;  %4678 = vmatpush3.msk.msra.mxu0 %vm1914_vm5, %v1809_v59  ;;  %4864 = vmatpush3.msk.msra.mxu1 %vm1914_vm5, %v1809_v59 }
 0x1cc   : > { %1364 = vrot.lane.b32.xlu1 %v4930_v62, %s5038_s29  ;;  %9501 = vst [vmem:[#allocation162_spill] sm:$0xff] %v6477_v52  ;;  %v1806_v59 = vld [vmem:[%s9157_s1 + $0x8] sm:$0xff]  ;;  %v1805_v52 = vld [vmem:[%s9157_s1] sm:$0xff] }
 0x1cd   : > { %1370 = vrot.lane.b32.xlu0 %v4931_v7, %s5038_s29  ;;  %v4934_v7 = vld [vmem:[#allocation2 + $0xf0] sm:$0xff] }
 0x1ce   : > { %v6479_v13 = vpop.permute.xlu1 %1188 }
 0x1cf   : > { %9502 = vst [vmem:[#allocation163_spill] sm:$0xff] %v6479_v13  ;;  %v6483_v3 = vpop.permute.xlu0 %1194 }
 0x1d0   : > { %1368 = vrot.lane.b32.xlu1 %v4932_v27, %s5038_s29  ;;  %9503 = vst [vmem:[#allocation164_spill] sm:$0xff] %v6483_v3  ;;  %v4935_v3 = vld [vmem:[#allocation2 + $0x128] sm:$0xff] }
 0x1d1   : > { %1374 = vrot.lane.b32.xlu0 %v4933_v21, %s5038_s29  ;;  %v1808_v21 = vld [vmem:[%s9157_s1 + $0x18] sm:$0xff] }
 0x1d2   : > { %v6485_v20 = vpop.permute.xlu1 %1192  ;;  %4679 = vmatprep.subr.mxu0 %v1808_v21  ;;  %4860 = vmatprep.subr.mxu1 %v1808_v21 }
 0x1d3   : > { %9504 = vst [vmem:[#allocation165_spill] sm:$0xff] %v6485_v20  ;;  %v6494_v62 = vpop.permute.xlu0 %1198  ;;  %4680 = vmatpush3.msra.mxu0 %v1808_v21  ;;  %4865 = vmatpush3.msra.mxu1 %v1808_v21 }
 0x1d4   : > { %1372 = vrot.lane.b32.xlu1 %v4934_v7, %s5038_s29  ;;  %9505 = vst [vmem:[#allocation166_spill] sm:$0xff] %v6494_v62  ;;  %v1807_v7 = vld [vmem:[%s9157_s1 + $0x10] sm:$0xff] }
 0x1d5   : > { %1378 = vrot.lane.b32.xlu0 %v4935_v3, %s5038_s29  ;;  %4681 = vmatprep.subr.mxu0 %v1807_v7  ;;  %v4936_v62 = vld [vmem:[#allocation2 + $0x110] sm:$0xff] }
 0x1d6   : > { %v6501_v27 = vpop.permute.xlu1 %1196  ;;  %4682 = vmatpush3.msra.mxu0 %v1807_v7  ;;  %4861 = vmatprep.subr.mxu1 %v1807_v7 }
 0x1d7   : > { %9506 = vst [vmem:[#allocation167_spill] sm:$0xff] %v6501_v27  ;;  %v6508_v20 = vpop.permute.xlu0 %1202  ;;  %4683 = vmatprep.subr.mxu0 %v1806_v59  ;;  %v4937_v27 = vld [vmem:[#allocation2 + $0x148] sm:$0xff]  ;;  %4866 = vmatpush3.msra.mxu1 %v1807_v7  ;;  %v4942_v7 = vld [vmem:[#allocation2 + $0x170] sm:$0xff] }
 0x1d8   : > { %1376 = vrot.lane.b32.xlu1 %v4936_v62, %s5038_s29  ;;  %9507 = vst [vmem:[#allocation168_spill] sm:$0xff] %v6508_v20  ;;  %4684 = vmatpush3.msra.mxu0 %v1806_v59  ;;  %v4938_v62 = vld [vmem:[#allocation2 + $0x130] sm:$0xff] }
 0x1d9   : > { %1382 = vrot.lane.b32.xlu0 %v4937_v27, %s5038_s29  ;;  %4685 = vmatprep.subr.mxu0 %v1805_v52  ;;  %v4940_v27 = vld [vmem:[#allocation2 + $0x150] sm:$0xff] }
 0x1da   : > { %v6513_v3 = vpop.permute.xlu1 %1200  ;;  %4686 = vmatpush3.msra.mxu0 %v1805_v52  ;;  %4862 = vmatprep.subr.mxu1 %v1806_v59 }
 0x1db   : > { %9508 = vst [vmem:[#allocation169_spill] sm:$0xff] %v6513_v3  ;;  %v6520_v20 = vpop.permute.xlu0 %1206  ;;  %v4939_v3 = vld [vmem:[#allocation2 + $0x168] sm:$0xff]  ;;  %4867 = vmatpush3.msra.mxu1 %v1806_v59 }
 0x1dc   : > { %1380 = vrot.lane.b32.xlu1 %v4938_v62, %s5038_s29  ;;  %9509 = vst [vmem:[#allocation170_spill] sm:$0xff] %v6520_v20  ;;  %4863 = vmatprep.subr.mxu1 %v1805_v52  ;;  %v4941_v62 = vld [vmem:[#allocation2 + $0x188] sm:$0xff] }
 0x1dd   : > { %1386 = vrot.lane.b32.xlu0 %v4939_v3, %s5038_s29  ;;  %4868 = vmatpush3.msra.mxu1 %v1805_v52 }
 0x1de   : > { %v6522_v21 = vpop.permute.xlu1 %1204 }
 0x1df   : > { %9510 = vst [vmem:[#allocation171_spill] sm:$0xff] %v6522_v21  ;;  %v6526_v13 = vpop.permute.xlu0 %1210 }
 0x1e0   : > { %1384 = vrot.lane.b32.xlu1 %v4940_v27, %s5038_s29  ;;  %9511 = vst [vmem:[#allocation172_spill] sm:$0xff] %v6526_v13 }
 0x1e1   : > { %1390 = vrot.lane.b32.xlu0 %v4941_v62, %s5038_s29 }
 0x1e2   : > { %v6528_v30 = vpop.permute.xlu1 %1208 }
 0x1e3   : > { %9512 = vst [vmem:[#allocation173_spill] sm:$0xff] %v6528_v30  ;;  %v6532_v20 = vpop.permute.xlu0 %1214 }
 0x1e4   : > { %1388 = vrot.lane.b32.xlu1 %v4942_v7, %s5038_s29  ;;  %9513 = vst [vmem:[#allocation174_spill] sm:$0xff] %v6532_v20 }
 0x1e5   : > { %1448 = vrot.lane.b32.xlu0 %v5627_v37, %s5039_s8 }
 0x1e6   : > { %v6534_v3 = vpop.permute.xlu1 %1212 }
 0x1e7   : > { %9514 = vst [vmem:[#allocation175_spill] sm:$0xff] %v6534_v3  ;;  %v6540_v52 = vpop.permute.xlu0 %1218  ;;  %v4948_v3 = vld [vmem:[#allocation2 + $0x1e8] sm:$0xff] }
 0x1e8   : > { %1446 = vrot.lane.b32.xlu1 %v5609_v22, %s5039_s8  ;;  %9515 = vst [vmem:[#allocation176_spill] sm:$0xff] %v6540_v52 }
 0x1e9   : > { %1452 = vrot.lane.b32.xlu0 %v5639_v63, %s5039_s8 }
 0x1ea   : > { %v6542_v59 = vpop.permute.xlu1 %1216 }
 0x1eb   : > { %9516 = vst [vmem:[#allocation177_spill] sm:$0xff] %v6542_v59  ;;  %v6548_v27 = vpop.permute.xlu0 %1254  ;;  %v4946_v59 = vld [vmem:[#allocation2 + $0x1c8] sm:$0xff] }
 0x1ec   : > { %1450 = vrot.lane.b32.xlu1 %v5620_v31, %s5039_s8 }
 0x1ed   : > { %1456 = vrot.lane.b32.xlu0 %v5651_v12, %s5039_s8 }
 0x1ee   : > { %v6550_v62 = vpop.permute.xlu1 %1220 }
 0x1ef   : > { %9517 = vst [vmem:[#allocation178_spill] sm:$0xff] %v6550_v62  ;;  %v6556_v22 = vpop.permute.xlu0 %1258  ;;  %v4944_v62 = vld [vmem:[#allocation2 + $0x1a8] sm:$0xff] }
 0x1f0   : > { %1454 = vrot.lane.b32.xlu1 %v5632_v40, %s5039_s8 }
 0x1f1   : > { %1460 = vrot.lane.b32.xlu0 %v5663_v19, %s5039_s8 }
 0x1f2   : > { %v6558_v37 = vpop.permute.xlu1 %1256 }
 0x1f3   : > { %v6564_v31 = vpop.permute.xlu0 %1262 }
 0x1f4   : > { %1458 = vrot.lane.b32.xlu1 %v5644_v6, %s5039_s8 }
 0x1f5   : > { %1464 = vrot.lane.b32.xlu0 %v5675_v32, %s5039_s8 }
 0x1f6   : > { %v6566_v63 = vpop.permute.xlu1 %1260 }
 0x1f7   : > { %v6572_v40 = vpop.permute.xlu0 %1266 }
 0x1f8   : > { %1462 = vrot.lane.b32.xlu1 %v5656_v16, %s5039_s8 }
 0x1f9   : > { %1468 = vrot.lane.b32.xlu0 %v5687_v2, %s5039_s8 }
 0x1fa   : > { %v6574_v12 = vpop.permute.xlu1 %1264 }
 0x1fb   : > { %v6580_v6 = vpop.permute.xlu0 %1270 }
 0x1fc   : > { %1466 = vrot.lane.b32.xlu1 %v5668_v24, %s5039_s8 }
 0x1fd   : > { %1472 = vrot.lane.b32.xlu0 %v5699_v17, %s5039_s8 }
 0x1fe   : > { %v6582_v19 = vpop.permute.xlu1 %1268 }
 0x1ff   : > { %v6588_v16 = vpop.permute.xlu0 %1274 }
 0x200   : > { %1470 = vrot.lane.b32.xlu1 %v5680_v39, %s5039_s8 }
 0x201   : > { %1476 = vrot.lane.b32.xlu0 %v9421_v48, %s5039_s8 }
 0x202   : > { %v6590_v32 = vpop.permute.xlu1 %1272 }
 0x203   : > { %v6596_v24 = vpop.permute.xlu0 %1278 }
 0x204   : > { %1474 = vrot.lane.b32.xlu1 %v5692_v11, %s5039_s8 }
 0x205   : > { %1480 = vrot.lane.b32.xlu0 %v9425_v43, %s5039_s8  ;;  %v4943_v43 = vld [vmem:[#allocation2 + $0x190] sm:$0xff] }
 0x206   : > { %v6598_v2 = vpop.permute.xlu1 %1276 }
 0x207   : > { %v6604_v39 = vpop.permute.xlu0 %1282 }
 0x208   : > { %1478 = vrot.lane.b32.xlu1 %v5704_v23, %s5039_s8 }
 0x209   : > { %1484 = vrot.lane.b32.xlu0 %v9429_v50, %s5039_s8 }
 0x20a   : > { %v6606_v17 = vpop.permute.xlu1 %1280 }
 0x20b   : > { %v6612_v11 = vpop.permute.xlu0 %1286 }
 0x20c   : > { %1482 = vrot.lane.b32.xlu1 %v9424_v46, %s5039_s8  ;;  %9518 = vst [vmem:[#allocation179_spill] sm:$0xff] %v6612_v11  ;;  %v9545_v11 = vld [vmem:[#allocation18_spill] sm:$0xff] }
 0x20d   : > { %1486 = vrot.lane.b32.xlu0 %v9428_v47, %s5039_s8  ;;  %v4945_v47 = vld [vmem:[#allocation2 + $0x1b0] sm:$0xff] }
 0x20e   : > { %v6614_v48 = vpop.permute.xlu1 %1284 }
 0x20f   : > { %9519 = vst [vmem:[#allocation180_spill] sm:$0xff] %v6614_v48  ;;  %v6619_v23 = vpop.permute.xlu0 %1290  ;;  %v9553_v48 = vld [vmem:[#allocation32_spill] sm:$0xff] }
 0x210   : > { %1392 = vrot.lane.b32.xlu1 %v4943_v43, %s5038_s29  ;;  %9520 = vst [vmem:[#allocation181_spill] sm:$0xff] %v6619_v23 }
 0x211   : > { %1394 = vrot.lane.b32.xlu0 %v4944_v62, %s5038_s29 }
 0x212   : > { %v6621_v7 = vpop.permute.xlu1 %1288 }
 0x213   : > { %9521 = vst [vmem:[#allocation182_spill] sm:$0xff] %v6621_v7  ;;  %v6626_v46 = vpop.permute.xlu0 %1294 }
 0x214   : > { %1488 = vrot.lane.b32.xlu1 %v9433_v42, %s5039_s8  ;;  %9522 = vst [vmem:[#allocation183_spill] sm:$0xff] %v6626_v46 }
 0x215   : > { %1490 = vrot.lane.b32.xlu0 %v9432_v45, %s5039_s8  ;;  %v4947_v45 = vld [vmem:[#allocation2 + $0x1d0] sm:$0xff] }
 0x216   : > { %v6628_v50 = vpop.permute.xlu1 %1292 }
 0x217   : > { %9523 = vst [vmem:[#allocation184_spill] sm:$0xff] %v6628_v50  ;;  %v6633_v43 = vpop.permute.xlu0 %1298  ;;  %v9543_v50 = vld [vmem:[#allocation15_spill] sm:$0xff] }
 0x218   : > { %1396 = vrot.lane.b32.xlu1 %v4945_v47, %s5038_s29  ;;  %9524 = vst [vmem:[#allocation185_spill] sm:$0xff] %v6633_v43  ;;  %v9540_v43 = vld [vmem:[#allocation7_spill] sm:$0xff] }
 0x219   : > { %1398 = vrot.lane.b32.xlu0 %v4946_v59, %s5038_s29 }
 0x21a   : > { %v6635_v52 = vpop.permute.xlu1 %1296 }
 0x21b   : > { %9525 = vst [vmem:[#allocation186_spill] sm:$0xff] %v6635_v52  ;;  %v6640_v42 = vpop.permute.xlu0 %1302  ;;  %v9541_v52 = vrot.slane %v9540_v43, 7  ;;  %v9549_v43 = vld [vmem:[#allocation77_spill] sm:$0xff] }
 0x21c   : > { %1492 = vrot.lane.b32.xlu1 %v9436_v51, %s5039_s8  ;;  %9526 = vst [vmem:[#allocation187_spill] sm:$0xff] %v6640_v42  ;;  %v416_v42 = vld [vmem:[#allocation2] sm:$0xff] }
 0x21d   : > { %1494 = vrot.lane.b32.xlu0 %v9435_v49, %s5039_s8  ;;  %v4949_v49 = vld [vmem:[#allocation2 + $0x1f0] sm:$0xff] }
 0x21e   : > { %v6642_v62 = vpop.permute.xlu1 %1300 }
 0x21f   : > { %9527 = vst [vmem:[#allocation188_spill] sm:$0xff] %v6642_v62  ;;  %v6647_v47 = vpop.permute.xlu0 %1306 }
 0x220   : > { %1400 = vrot.lane.b32.xlu1 %v4947_v45, %s5038_s29  ;;  %9528 = vst [vmem:[#allocation189_spill] sm:$0xff] %v6647_v47  ;;  %v6666_v47 = vld [vmem:[%s9159_s3 + $0x20] sm:$0xf] }
 0x221   : > { %1402 = vrot.lane.b32.xlu0 %v4948_v3, %s5038_s29  ;;  %9533 = vst [vmem:[#allocation194_spill] sm:$0xff] %v6666_v47  ;;  %4735 = vmatprep.subr.msk.mxu1 %vm1914_vm5, %v6666_v47 }
 0x222   : > { %v6649_v20 = vpop.permute.xlu1 %1304 }
 0x223   : > { %9529 = vst [vmem:[#allocation190_spill] sm:$0xff] %v6649_v20  ;;  %v6654_v51 = vpop.permute.xlu0 %1310 }
 0x224   : > { %1496 = vrot.lane.b32.xlu1 %v9438_v15, %s5039_s8  ;;  %9530 = vst [vmem:[#allocation191_spill] sm:$0xff] %v6654_v51 }
 0x225   : > { %1498 = vrot.lane.b32.xlu0 %v9437_v28, %s5039_s8 }
 0x226   : > { %v6656_v59 = vpop.permute.xlu1 %1308 }
 0x227   : > { %9531 = vst [vmem:[#allocation192_spill] sm:$0xff] %v6656_v59  ;;  %v6661_v45 = vpop.permute.xlu0 %1314 }
 0x228   : > { %1404 = vrot.lane.b32.xlu1 %v4949_v49, %s5038_s29  ;;  %9532 = vst [vmem:[#allocation193_spill] sm:$0xff] %v6661_v45  ;;  %v769_v49 = vrot.slane %v6418_v25, 1  ;;  %v770_v45 = vrot.slane %v6433_v36, 1 }
 0x229   : > { %1406 = vrot.lane.b32.xlu0 %v5996_v10, %s5038_s29 }
 0x22a   : > { %v6668_v3 = vpop.permute.xlu1 %1312 }
 0x22b   : > { %9534 = vst [vmem:[#allocation195_spill] sm:$0xff] %v6668_v3  ;;  %v6676_v28 = vpop.permute.xlu0 %1350 }
 0x22c   : > { %1500 = vrot.lane.b32.xlu1 %v9439_v8, %s5039_s8  ;;  %v487_v8 = vld [vmem:[#allocation2 + $0x238] sm:$0x1] }
 0x22d   : > { %1502 = vrot.lane.b32.xlu0 %v6297_v35, %s5039_s8  ;;  %v772_v51 = vrot.slane %v487_v8, 1 }
 0x22e   : > { %v6678_v15 = vpop.permute.xlu1 %1316 }
 0x22f   : > { %9535 = vst [vmem:[#allocation196_spill] sm:$0xff] %v6678_v15  ;;  %v6686_v10 = vpop.permute.xlu0 %1354  ;;  %v771_v15 = vsel %vm665_vm4, %v769_v49, %v770_v45 }
 0x230   : > { %1408 = vrot.lane.b32.xlu1 %v6022_v0, %s5038_s29 }
 0x231   : > { %1410 = vrot.lane.b32.xlu0 %v6418_v25, %s5038_s29  ;;  %v773_v25 = vsel %vm665_vm4, %v770_v45, %v772_v51 }
 0x232   : > { %v6688_v3 = vpop.permute.xlu1 %1352 }
 0x233   : > { %v6695_v35 = vpop.permute.xlu0 %1358 }
 0x234   : > { %1504 = vrot.lane.b32.xlu1 %v6312_v18, %s5039_s8 }
 0x235   : > { %1506 = vrot.lane.b32.xlu0 %v771_v15, %s5039_s8 }
 0x236   : > { %v6697_v59 = vpop.permute.xlu1 %1356 }
 0x237   : > { %v6702_v0 = vpop.permute.xlu0 %1362 }
 0x238   : > { %1412 = vrot.lane.b32.xlu1 %v6433_v36, %s5038_s29  ;;  %s5040_s29 = smov 40  }
 0x23a   : > { %v6705_v13 = vpop.permute.xlu1 %1360 }
 0x23b   : > { %v6708_v49 = vpop.permute.xlu0 %1366 }
 0x23c   : > { %1508 = vrot.lane.b32.xlu1 %v773_v25, %s5039_s8  ;;  %v537_v25 = vrot.slane %v416_v42, 7 }
 0x23e   : > { %v6710_v18 = vpop.permute.xlu1 %1364  ;;  %v539_v46 = vsel %vm536_vm2, %v537_v25, %v9541_v52  ;;  %v9550_v25 = vld [vmem:[#allocation22_spill] sm:$0xff] }
 0x23f   : > { %v6712_v8 = vpop.permute.xlu0 %1370  ;;  %v1542_v23 = vsel %vm277_vm0, %v539_v46, %v9543_v50  ;;  %v9551_v46 = vld [vmem:[#allocation83_spill] sm:$0xff] }
 0x240   : > { %v1575_v52 = vsel %vm1574_vm3, %v1542_v23, %v9549_v43  ;;  %v9555_v43 = vld [vmem:[#allocation81_spill] sm:$0xff] }
 0x242   : > { %v6714_v20 = vpop.permute.xlu1 %1368 }
 0x243   : > { %v6716_v15 = vpop.permute.xlu0 %1374 }
 0x246   : > { %v6718_v30 = vpop.permute.xlu1 %1372 }
 0x247   : > { %v6720_v36 = vpop.permute.xlu0 %1378 }
 0x248   : > { %9536 = vst [vmem:[#allocation197_spill] sm:$0xff] %v6720_v36  ;;  %v9548_v36 = vld [vmem:[#allocation26_spill] sm:$0xff] }
 0x24a   : > { %v6722_v51 = vpop.permute.xlu1 %1376 }
 0x24b   : > { %v6724_v45 = vpop.permute.xlu0 %1382 }
 0x24c   : > { %9537 = vst [vmem:[#allocation198_spill] sm:$0xff] %v6724_v45  ;;  %v9546_v45 = vld [vmem:[#allocation8_spill] sm:$0xff] }
 0x24d   : > { %v1543_v42 = vsel %vm277_vm0, %v9546_v45, %v9545_v11  ;;  %v9552_v45 = vld [vmem:[#allocation24_spill] sm:$0xff] }
 0x24e   : > { %v6726_v62 = vpop.permute.xlu1 %1380  ;;  %v1576_v50 = vsel %vm1574_vm3, %v1543_v42, %v9551_v46 }
 0x24f   : > { %9538 = vst [vmem:[#allocation199_spill] sm:$0xff] %v6726_v62  ;;  %v6728_v21 = vpop.permute.xlu0 %1386  ;;  %v9547_v62 = vld [vmem:[#allocation20_spill] sm:$0xff]  ;;  %v1609_v23 = vsel %vm1607_vm6, %v1576_v50, %v6162_v58 }
 0x250   : > { %9539 = vst [vmem:[#allocation200_spill] sm:$0xff] %v6728_v21  ;;  %v1544_v21 = vsel %vm277_vm0, %v9548_v36, %v9547_v62  ;;  %v1545_v62 = vsel %vm277_vm0, %v9553_v48, %v9552_v45 }
 0x252   : > { %v6733_v47 = vpop.permute.xlu1 %1384 }
 0x253   : > { %9542 = vst [vmem:[#allocation7_spill] sm:$0xff] %v6733_v47  ;;  %v6737_v7 = vpop.permute.xlu0 %1390  ;;  %v1546_v47 = vsel %vm277_vm0, %v9442_v56, %v9550_v25  ;;  %v9554_v56 = vld [vmem:[#allocation25_spill] sm:$0xff] }
 0x254   : > { %9544 = vst [vmem:[#allocation15_spill] sm:$0xff] %v6737_v7  ;;  %v1608_v7 = vsel %vm1607_vm6, %v1575_v52, %v6152_v55  ;;  %v1548_v42 = vsel %vm277_vm0, %v9445_v38, %v9554_v56  ;;  %v1577_v55 = vsel %vm1574_vm3, %v1544_v21, %v9555_v43  ;;  %v1642_v52 = vsel %vm1640_vm7, %v1609_v23, %v6292_v34 }
 0x255   : > { %v1641_v36 = vsel %vm1640_vm7, %v1608_v7, %v6280_v33  ;;  %v1675_v58 = vsel %vm1673_vm8, %v1642_v52, %v6429_v9  ;;  %v9556_v7 = vld [vmem:[#allocation86_spill] sm:$0xff]  ;;  %v1610_v21 = vsel %vm1607_vm6, %v1577_v55, %v6160_v57  ;;  %v9557_v57 = vld [vmem:[#allocation28_spill] sm:$0xff] }
 0x256   : > { %v6754_v11 = vpop.permute.xlu1 %1388  ;;  %v1674_v48 = vsel %vm1673_vm8, %v1641_v36, %v6416_v4  ;;  %v1578_v38 = vsel %vm1574_vm3, %v1545_v62, %v9556_v7  ;;  %v1708_v34 = vsel %vm1706_vm9, %v1675_v58, %v6558_v37  ;;  %v1547_v37 = vsel %vm277_vm0, %v9446_v14, %v9557_v57  ;;  %v9559_v36 = vld [vmem:[#allocation85_spill] sm:$0xff]  ;;  %v9563_v58 = vld [vmem:[#allocation151_spill] sm:$0xff]  ;;  %v9565_v7 = vld [vmem:[#allocation42_spill] sm:$0xff] }
 0x257   : > { %v1449_v25 = vpop.permute.xlu0 %1448  ;;  %v1707_v33 = vsel %vm1706_vm9, %v1674_v48, %v6548_v27  ;;  %v1611_v9 = vsel %vm1607_vm6, %v1578_v38, %v6170_v61  ;;  %v1643_v27 = vsel %vm1640_vm7, %v1610_v21, %v6290_v44  ;;  %v1741_v50 = vsel %vm1739_vm10, %v1708_v34, %v6688_v3  ;;  %v9558_v3 = vld [vmem:[#allocation29_spill] sm:$0xff]  ;;  %v9561_v48 = vld [vmem:[#allocation40_spill] sm:$0xff]  ;;  %v9569_v57 = vld [vmem:[#allocation114_spill] sm:$0xff] }
 0x258   : > { %v1740_v4 = vsel %vm1739_vm10, %v1707_v33, %v6676_v28  ;;  %v1644_v28 = vsel %vm1640_vm7, %v1611_v9, %v6303_v53  ;;  %v1676_v62 = vsel %vm1673_vm8, %v1643_v27, %v6427_v54  ;;  %v6801_v61 = vsel %vm1772_vm11, %v1741_v50, %v1449_v25  ;;  %v9562_v25 = vld [vmem:[#allocation17_spill] sm:$0xff]  ;;  %v9566_v21 = vld [vmem:[#allocation88_spill] sm:$0xff]  ;;  %v9568_v27 = vld [vmem:[#allocation90_spill] sm:$0xff] }
 0x259   : > { %v1550_v23 = vsel %vm277_vm0, %v9449_v41, %v9558_v3  ;;  %v1579_v14 = vsel %vm1574_vm3, %v1546_v47, %v9559_v36  ;;  %v1677_v53 = vsel %vm1673_vm8, %v1644_v28, %v6441_v5  ;;  %v1709_v54 = vsel %vm1706_vm9, %v1676_v62, %v6556_v22 }
 0x25a   : > { %v1447_v46 = vpop.permute.xlu1 %1446  ;;  %v1580_v56 = vsel %vm1574_vm3, %v1547_v37, %v6050_v26  ;;  %v1612_v43 = vsel %vm1607_vm6, %v1579_v14, %v6168_v60  ;;  %v1710_v41 = vsel %vm1706_vm9, %v1677_v53, %v6566_v63  ;;  %v1742_v47 = vsel %vm1739_vm10, %v1709_v54, %v6686_v10  ;;  %v9560_v60 = vld [vmem:[#allocation31_spill] sm:$0xff] }
 0x25b   : > { %v6791_v45 = vsel %vm1772_vm11, %v1740_v4, %v1447_v46  ;;  %v1453_v44 = vpop.permute.xlu0 %1452  ;;  %v1613_v5 = vsel %vm1607_vm6, %v1580_v56, %v6178_v1  ;;  %v1645_v22 = vsel %vm1640_vm7, %v1612_v43, %v6301_v29  ;;  %v1743_v52 = vsel %vm1739_vm10, %v1710_v41, %v6697_v59  ;;  %v9564_v59 = vld [vmem:[#allocation33_spill] sm:$0xff]  ;;  %v9572_v54 = vld [vmem:[#allocation35_spill] sm:$0xff]  ;;  %v9573_v56 = vld [vmem:[#allocation44_spill] sm:$0xff] }
 0x25c   : > { %4687 = vmatprep.mubr.msk.f32.mxu0 %vm1817_vm12, %v6791_v45  ;;  %v1549_v63 = vsel %vm277_vm0, %v9561_v48, %v9560_v60  ;;  %v1646_v10 = vsel %vm1640_vm7, %v1613_v5, %v9562_v25  ;;  %v1678_v33 = vsel %vm1673_vm8, %v1645_v22, %v9563_v58  ;;  %v6841_v1 = vsel %vm1772_vm11, %v1743_v52, %v1453_v44  ;;  %v9567_v4 = vld [vmem:[#allocation153_spill] sm:$0xff]  ;;  %v9570_v44 = vld [vmem:[#allocation116_spill] sm:$0xff]  ;;  %v9577_v22 = vld [vmem:[#allocation46_spill] sm:$0xff] }
 0x25d   : > { %4688 = vmatmul.mubr.msk.f32.vlgmr.msra.gmra.mxu0 %vm1817_vm12, %v6801_v61  ;;  %v1552_v38 = vsel %vm277_vm0, %v9565_v7, %v9564_v59  ;;  %v1581_v34 = vsel %vm1574_vm3, %v1548_v42, %v9566_v21  ;;  %v1679_v46 = vsel %vm1673_vm8, %v1646_v10, %v9567_v4  ;;  %v1711_v9 = vsel %vm1706_vm9, %v1678_v33, %v6564_v31  ;;  %v9571_v31 = vld [vmem:[#allocation16_spill] sm:$0xff]  ;;  %v9574_v43 = vld [vmem:[#allocation21_spill] sm:$0xff] }
 0x25e   : > { %v1451_v55 = vpop.permute.xlu1 %1450  ;;  %v1582_v50 = vsel %vm1574_vm3, %v1549_v63, %v9568_v27  ;;  %v1614_v37 = vsel %vm1607_vm6, %v1581_v34, %v9569_v57  ;;  %v1712_v28 = vsel %vm1706_vm9, %v1679_v46, %v6574_v12  ;;  %v1744_v42 = vsel %vm1739_vm10, %v1711_v9, %v6695_v35  ;;  %v9575_v41 = vld [vmem:[#allocation152_spill] sm:$0xff]  ;;  %v9578_v60 = vld [vmem:[#allocation89_spill] sm:$0xff]  ;;  %v9579_v63 = vld [vmem:[#allocation155_spill] sm:$0xff] }
 0x25f   : > { %v6831_v26 = vsel %vm1772_vm11, %v1742_v47, %v1451_v55  ;;  %v1457_v29 = vpop.permute.xlu0 %1456  ;;  %v1615_v3 = vsel %vm1607_vm6, %v1582_v50, %v9570_v44  ;;  %v1647_v36 = vsel %vm1640_vm7, %v1614_v37, %v9571_v31  ;;  %v1745_v14 = vsel %vm1739_vm10, %v1712_v28, %v6705_v13  ;;  %v9576_v13 = vld [vmem:[#allocation37_spill] sm:$0xff]  ;;  %v9580_v58 = vld [vmem:[#allocation92_spill] sm:$0xff]  ;;  %v9582_v34 = vld [vmem:[#allocation118_spill] sm:$0xff] }
 0x260   : > { %4690 = vmatprep.mubr.msk.f32.mxu0 %vm1817_vm12, %v6831_v26  ;;  %v1551_v12 = vsel %vm277_vm0, %v9573_v56, %v9572_v54  ;;  %v1648_v35 = vsel %vm1640_vm7, %v1615_v3, %v9574_v43  ;;  %v1680_v47 = vsel %vm1673_vm8, %v1647_v36, %v9575_v41  ;;  %v6881_v55 = vsel %vm1772_vm11, %v1745_v14, %v1457_v29  ;;  %v9581_v29 = vld [vmem:[#allocation115_spill] sm:$0xff]  ;;  %v9585_v57 = vld [vmem:[#allocation48_spill] sm:$0xff]  ;;  %v9587_v28 = vld [vmem:[#allocation154_spill] sm:$0xff] }
 0x261   : > { %4691 = vmatmul.mubr.msk.f32.gmra.mxu0 %vm1817_vm12, %v6841_v1  ;;  %v1554_v52 = vsel %vm277_vm0, %v9577_v22, %v9576_v13  ;;  %v1583_v48 = vsel %vm1574_vm3, %v1550_v23, %v9578_v60  ;;  %v1681_v25 = vsel %vm1673_vm8, %v1648_v35, %v9579_v63  ;;  %v1713_v10 = vsel %vm1706_vm9, %v1680_v47, %v6572_v40  ;;  %v9583_v40 = vld [vmem:[#allocation19_spill] sm:$0xff]  ;;  %v9589_v3 = vld [vmem:[#allocation50_spill] sm:$0xff]  ;;  %v9591_v54 = vld [vmem:[#allocation157_spill] sm:$0xff] }
 0x262   : > { %v1455_v62 = vpop.permute.xlu1 %1454  ;;  %v1584_v33 = vsel %vm1574_vm3, %v1551_v12, %v9580_v58  ;;  %v1616_v59 = vsel %vm1607_vm6, %v1583_v48, %v9581_v29  ;;  %v1714_v7 = vsel %vm1706_vm9, %v1681_v25, %v6582_v19  ;;  %v1746_v23 = vsel %vm1739_vm10, %v1713_v10, %v6702_v0  ;;  %v9584_v50 = vld [vmem:[#allocation39_spill] sm:$0xff]  ;;  %v9592_v43 = vld [vmem:[#allocation94_spill] sm:$0xff]  ;;  %v9593_v41 = vld [vmem:[#allocation117_spill] sm:$0xff] }
 0x263   : > { %v6871_v53 = vsel %vm1772_vm11, %v1744_v42, %v1455_v62  ;;  %v1461_v5 = vpop.permute.xlu0 %1460  ;;  %v1617_v4 = vsel %vm1607_vm6, %v1584_v33, %v9582_v34  ;;  %v1649_v46 = vsel %vm1640_vm7, %v1616_v59, %v9583_v40  ;;  %v1747_v9 = vsel %vm1739_vm10, %v1714_v7, %v6710_v18  ;;  %v9586_v37 = vld [vmem:[#allocation27_spill] sm:$0xff]  ;;  %v9588_v18 = vld [vmem:[#allocation41_spill] sm:$0xff]  ;;  %v9594_v22 = vld [vmem:[#allocation120_spill] sm:$0xff] }
 0x264   : > { %4693 = vmatprep.mubr.msk.f32.mxu0 %vm1817_vm12, %v6871_v53  ;;  %v1553_v19 = vsel %vm277_vm0, %v9585_v57, %v9584_v50  ;;  %v1650_v0 = vsel %vm1640_vm7, %v1617_v4, %v9586_v37  ;;  %v1682_v42 = vsel %vm1673_vm8, %v1649_v46, %v9587_v28  ;;  %v6921_v62 = vsel %vm1772_vm11, %v1747_v9, %v1461_v5  ;;  %v9590_v36 = vld [vmem:[#allocation91_spill] sm:$0xff]  ;;  %v9597_v58 = vld [vmem:[#allocation52_spill] sm:$0xff]  ;;  %v9598_v33 = vld [vmem:[#allocation34_spill] sm:$0xff] }
 0x265   : > { %4694 = vmatmul.mubr.msk.f32.gmra.mxu0 %vm1817_vm12, %v6881_v55  ;;  %v1556_v31 = vsel %vm277_vm0, %v9589_v3, %v9588_v18  ;;  %v1585_v14 = vsel %vm1574_vm3, %v1552_v38, %v9590_v36  ;;  %v1683_v56 = vsel %vm1673_vm8, %v1650_v0, %v9591_v54  ;;  %v1715_v12 = vsel %vm1706_vm9, %v1682_v42, %v6580_v6  ;;  %v9595_v6 = vld [vmem:[#allocation23_spill] sm:$0xff]  ;;  %v9599_v29 = vld [vmem:[#allocation156_spill] sm:$0xff]  ;;  %v9602_v4 = vld [vmem:[#allocation93_spill] sm:$0xff] }
 0x266   : > { %v1459_v21 = vpop.permute.xlu1 %1458  ;;  %v1586_v35 = vsel %vm1574_vm3, %v1553_v19, %v9592_v43  ;;  %v1618_v47 = vsel %vm1607_vm6, %v1585_v14, %v9593_v41  ;;  %v1716_v5 = vsel %vm1706_vm9, %v1683_v56, %v6590_v32  ;;  %v1748_v38 = vsel %vm1739_vm10, %v1715_v12, %v6708_v49  ;;  %v9596_v10 = vld [vmem:[#allocation43_spill] sm:$0xff]  ;;  %v9604_v57 = vld [vmem:[#allocation96_spill] sm:$0xff]  ;;  %v9610_v12 = vld [vmem:[#allocation38_spill] sm:$0xff] }
 0x267   : > { %v6911_v27 = vsel %vm1772_vm11, %v1746_v23, %v1459_v21  ;;  %v1465_v44 = vpop.permute.xlu0 %1464  ;;  %v1619_v60 = vsel %vm1607_vm6, %v1586_v35, %v9594_v22  ;;  %v1651_v48 = vsel %vm1640_vm7, %v1618_v47, %v9595_v6  ;;  %v1749_v63 = vsel %vm1739_vm10, %v1716_v5, %v6714_v20  ;;  %v9600_v20 = vld [vmem:[#allocation45_spill] sm:$0xff]  ;;  %v9601_v21 = vld [vmem:[#allocation54_spill] sm:$0xff]  ;;  %v9603_v46 = vld [vmem:[#allocation159_spill] sm:$0xff] }
 0x268   : > { %4696 = vmatprep.mubr.msk.f32.mxu0 %vm1817_vm12, %v6911_v27  ;;  %v1555_v32 = vsel %vm277_vm0, %v9597_v58, %v9596_v10  ;;  %v1652_v49 = vsel %vm1640_vm7, %v1619_v60, %v9598_v33  ;;  %v1684_v59 = vsel %vm1673_vm8, %v1651_v48, %v9599_v29  ;;  %v6961_v7 = vsel %vm1772_vm11, %v1749_v63, %v1465_v44  ;;  %v9605_v37 = vld [vmem:[#allocation119_spill] sm:$0xff]  ;;  %v9606_v44 = vld [vmem:[#allocation122_spill] sm:$0xff]  ;;  %v9609_v56 = vld [vmem:[#allocation56_spill] sm:$0xff] }
 0x269   : > { %4697 = vmatmul.mubr.msk.f32.gmra.mxu0 %vm1817_vm12, %v6921_v62  ;;  %v1558_v34 = vsel %vm277_vm0, %v9601_v21, %v9600_v20  ;;  %v1587_v40 = vsel %vm1574_vm3, %v1554_v52, %v9602_v4  ;;  %v1685_v9 = vsel %vm1673_vm8, %v1652_v49, %v9603_v46  ;;  %v1717_v50 = vsel %vm1706_vm9, %v1684_v59, %v6588_v16  ;;  %v9607_v16 = vld [vmem:[#allocation30_spill] sm:$0xff]  ;;  %v9608_v54 = vld [vmem:[#allocation47_spill] sm:$0xff]  ;;  %v9615_v60 = vld [vmem:[#allocation161_spill] sm:$0xff] }
 0x26a   : > { %v1463_v13 = vpop.permute.xlu1 %1462  ;;  %v1588_v19 = vsel %vm1574_vm3, %v1555_v32, %v9604_v57  ;;  %v1620_v0 = vsel %vm1607_vm6, %v1587_v40, %v9605_v37  ;;  %v1718_v28 = vsel %vm1706_vm9, %v1685_v9, %v6598_v2  ;;  %v1750_v52 = vsel %vm1739_vm10, %v1717_v50, %v6712_v8  ;;  %v9611_v43 = vld [vmem:[#allocation158_spill] sm:$0xff]  ;;  %v9617_v58 = vld [vmem:[#allocation121_spill] sm:$0xff]  ;;  %v9618_v29 = vld [vmem:[#allocation124_spill] sm:$0xff] }
 0x26b   : > { %v6951_v25 = vsel %vm1772_vm11, %v1748_v38, %v1463_v13  ;;  %v1469_v23 = vpop.permute.xlu0 %1468  ;;  %v1621_v18 = vsel %vm1607_vm6, %v1588_v19, %v9606_v44  ;;  %v1653_v3 = vsel %vm1640_vm7, %v1620_v0, %v9607_v16  ;;  %v1751_v36 = vsel %vm1739_vm10, %v1718_v28, %v6718_v30  ;;  %v9612_v30 = vld [vmem:[#allocation49_spill] sm:$0xff]  ;;  %v9613_v5 = vld [vmem:[#allocation58_spill] sm:$0xff]  ;;  %v9614_v13 = vld [vmem:[#allocation95_spill] sm:$0xff] }
 0x26c   : > { %4699 = vmatprep.mubr.msk.f32.mxu0 %vm1817_vm12, %v6951_v25  ;;  %v1557_v2 = vsel %vm277_vm0, %v9609_v56, %v9608_v54  ;;  %v1654_v8 = vsel %vm1640_vm7, %v1621_v18, %v9610_v12  ;;  %v1686_v35 = vsel %vm1673_vm8, %v1653_v3, %v9611_v43  ;;  %v7001_v41 = vsel %vm1772_vm11, %v1751_v36, %v1469_v23  ;;  %v9616_v63 = vld [vmem:[#allocation98_spill] sm:$0xff]  ;;  %v9620_v4 = vld [vmem:[#allocation51_spill] sm:$0xff]  ;;  %v9621_v40 = vld [vmem:[#allocation60_spill] sm:$0xff] }
 0x26d   : > { %4700 = vmatmul.mubr.msk.f32.gmra.mxu0 %vm1817_vm12, %v6961_v7  ;;  %v1560_v38 = vsel %vm277_vm0, %v9613_v5, %v9612_v30  ;;  %v1589_v22 = vsel %vm1574_vm3, %v1556_v31, %v9614_v13  ;;  %v1687_v6 = vsel %vm1673_vm8, %v1654_v8, %v9615_v60  ;;  %v1719_v48 = vsel %vm1706_vm9, %v1686_v35, %v6596_v24  ;;  %v9619_v24 = vld [vmem:[#allocation36_spill] sm:$0xff]  ;;  %v9622_v46 = vld [vmem:[#allocation135_spill] sm:$0xff]  ;;  %v9625_v37 = vld [vmem:[#allocation62_spill] sm:$0xff] }
 0x26e   : > { %v1467_v42 = vpop.permute.xlu1 %1466  ;;  %v1590_v10 = vsel %vm1574_vm3, %v1557_v2, %v9616_v63  ;;  %v1622_v32 = vsel %vm1607_vm6, %v1589_v22, %v9617_v58  ;;  %v1720_v33 = vsel %vm1706_vm9, %v1687_v6, %v6606_v17  ;;  %v1752_v31 = vsel %vm1739_vm10, %v1719_v48, %v6716_v15  ;;  %v9623_v9 = vld [vmem:[#allocation160_spill] sm:$0xff]  ;;  %v9626_v28 = vld [vmem:[#allocation97_spill] sm:$0xff]  ;;  %v9629_v36 = vld [vmem:[#allocation123_spill] sm:$0xff] }
 0x26f   : > { %v6991_v14 = vsel %vm1772_vm11, %v1750_v52, %v1467_v42  ;;  %v1473_v47 = vpop.permute.xlu0 %1472  ;;  %v1623_v59 = vsel %vm1607_vm6, %v1590_v10, %v9618_v29  ;;  %v1655_v23 = vsel %vm1640_vm7, %v1622_v32, %v9619_v24  ;;  %v1753_v20 = vsel %vm1739_vm10, %v1720_v33, %v6722_v51  ;;  %v9624_v51 = vld [vmem:[#allocation53_spill] sm:$0xff]  ;;  %v9627_v42 = vld [vmem:[#allocation163_spill] sm:$0xff]  ;;  %v9628_v16 = vld [vmem:[#allocation100_spill] sm:$0xff] }
 0x270   : > { %4702 = vmatprep.mubr.msk.f32.mxu0 %vm1817_vm12, %v6991_v14  ;;  %v1559_v17 = vsel %vm277_vm0, %v9621_v40, %v9620_v4  ;;  %v1656_v15 = vsel %vm1640_vm7, %v1623_v59, %v9622_v46  ;;  %v1688_v50 = vsel %vm1673_vm8, %v1655_v23, %v9623_v9  ;;  %v7041_v57 = vsel %vm1772_vm11, %v1753_v20, %v1473_v47  ;;  %v9630_v56 = vld [vmem:[#allocation180_spill] sm:$0xff]  ;;  %v9631_v12 = vld [vmem:[#allocation197_spill] sm:$0xff]  ;;  %v9632_v43 = vld [vmem:[#allocation126_spill] sm:$0xff] }
 0x271   : > { %4703 = vmatmul.mubr.msk.f32.gmra.mxu0 %vm1817_vm12, %v7001_v41  ;;  %v1562_v0 = vsel %vm277_vm0, %v9625_v37, %v9624_v51  ;;  %v1591_v52 = vsel %vm1574_vm3, %v1558_v34, %v9626_v28  ;;  %v1689_v44 = vsel %vm1673_vm8, %v1656_v15, %v9627_v42  ;;  %v1721_v18 = vsel %vm1706_vm9, %v1688_v50, %v6604_v39  ;;  %v9633_v39 = vld [vmem:[#allocation134_spill] sm:$0xff]  ;;  %v9634_v30 = vld [vmem:[#allocation199_spill] sm:$0xff]  ;;  %v9636_v60 = vld [vmem:[#allocation64_spill] sm:$0xff] }
 0x272   : > { %v1471_v49 = vpop.permute.xlu1 %1470  ;;  %v1592_v3 = vsel %vm1574_vm3, %v1559_v17, %v9628_v16  ;;  %v1624_v54 = vsel %vm1607_vm6, %v1591_v52, %v9629_v36  ;;  %v1722_v2 = vsel %vm1706_vm9, %v1689_v44, %v9630_v56  ;;  %v1754_v34 = vsel %vm1739_vm10, %v1721_v18, %v9631_v12  ;;  %v9635_v22 = vld [vmem:[#allocation55_spill] sm:$0xff]  ;;  %v9637_v48 = vld [vmem:[#allocation137_spill] sm:$0xff]  ;;  %v9638_v10 = vld [vmem:[#allocation162_spill] sm:$0xff] }
 0x273   : > { %v7031_v21 = vsel %vm1772_vm11, %v1752_v31, %v1471_v49  ;;  %v1477_v19 = vpop.permute.xlu0 %1476  ;;  %v1625_v35 = vsel %vm1607_vm6, %v1592_v3, %v9632_v43  ;;  %v1657_v47 = vsel %vm1640_vm7, %v1624_v54, %v9633_v39  ;;  %v1755_v5 = vsel %vm1739_vm10, %v1722_v2, %v9634_v30  ;;  %v9639_v31 = vld [vmem:[#allocation99_spill] sm:$0xff]  ;;  %v9640_v29 = vld [vmem:[#allocation101_spill] sm:$0xff]  ;;  %v9643_v40 = vld [vmem:[#allocation102_spill] sm:$0xff] }
 0x274   : > { %4705 = vmatprep.mubr.msk.f32.mxu0 %vm1817_vm12, %v7031_v21  ;;  %v1561_v6 = vsel %vm277_vm0, %v9636_v60, %v9635_v22  ;;  %v1658_v63 = vsel %vm1640_vm7, %v1625_v35, %v9637_v48  ;;  %v1690_v58 = vsel %vm1673_vm8, %v1657_v47, %v9638_v10  ;;  %v7081_v32 = vsel %vm1772_vm11, %v1755_v5, %v1477_v19  ;;  %v9641_v24 = vld [vmem:[#allocation165_spill] sm:$0xff]  ;;  %v9642_v20 = vld [vmem:[#allocation179_spill] sm:$0xff]  ;;  %v9645_v9 = vld [vmem:[#allocation182_spill] sm:$0xff] }
 0x275   : > { %4706 = vmatmul.mubr.msk.f32.gmra.mxu0 %vm1817_vm12, %v7041_v57  ;;  %v1593_v49 = vsel %vm1574_vm3, %v1560_v38, %v9639_v31  ;;  %v1595_v59 = vsel %vm1574_vm3, %v1562_v0, %v9640_v29  ;;  %v1691_v23 = vsel %vm1673_vm8, %v1658_v63, %v9641_v24  ;;  %v1723_v4 = vsel %vm1706_vm9, %v1690_v58, %v9642_v20  ;;  %v9644_v46 = vld [vmem:[#allocation125_spill] sm:$0xff]  ;;  %v9646_v50 = vld [vmem:[#allocation198_spill] sm:$0xff]  ;;  %v9647_v37 = vld [vmem:[#allocation128_spill] sm:$0xff] }
 0x276   : > { %v1475_v8 = vpop.permute.xlu1 %1474  ;;  %v1594_v17 = vsel %vm1574_vm3, %v1561_v6, %v9643_v40  ;;  %v1626_v15 = vsel %vm1607_vm6, %v1593_v49, %v9644_v46  ;;  %v1724_v38 = vsel %vm1706_vm9, %v1691_v23, %v9645_v9  ;;  %v1756_v19 = vsel %vm1739_vm10, %v1723_v4, %v9646_v50  ;;  %v9648_v28 = vld [vmem:[#allocation136_spill] sm:$0xff]  ;;  %v9649_v42 = vld [vmem:[#allocation7_spill] sm:$0xff]  ;;  %v9653_v43 = vld [vmem:[#allocation138_spill] sm:$0xff] }
 0x277   : > { %v7071_v13 = vsel %vm1772_vm11, %v1754_v34, %v1475_v8  ;;  %v1481_v33 = vpop.permute.xlu0 %1480  ;;  %v1627_v0 = vsel %vm1607_vm6, %v1594_v17, %v9647_v37  ;;  %v1659_v52 = vsel %vm1640_vm7, %v1626_v15, %v9648_v28  ;;  %v1757_v44 = vsel %vm1739_vm10, %v1724_v38, %v9649_v42  ;;  %v9650_v16 = vld [vmem:[#allocation127_spill] sm:$0xff]  ;;  %v9652_v56 = vld [vmem:[#allocation164_spill] sm:$0xff]  ;;  %v2178_v8 = vld [vmem:[%s9159_s3 + $0x18] sm:$0xff] }
 0x278   : > { %4708 = vmatprep.mubr.msk.f32.mxu0 %vm1817_vm12, %v7071_v13  ;;  %v1628_v3 = vsel %vm1607_vm6, %v1595_v59, %v9650_v16  ;;  %v9651_v36 = vld [vmem:[#allocation139_spill] sm:$0xff]  ;;  %v1692_v2 = vsel %vm1673_vm8, %v1659_v52, %v9652_v56  ;;  %v7119_v12 = vsel %vm1772_vm11, %v1757_v44, %v1481_v33  ;;  %v9655_v30 = vld [vmem:[#allocation181_spill] sm:$0xff]  ;;  %v9656_v22 = vld [vmem:[#allocation166_spill] sm:$0xff] }
 0x279   : > { %4709 = vmatmul.mubr.msk.f32.gmra.mxu0 %vm1817_vm12, %v7081_v32  ;;  %v1660_v54 = vsel %vm1640_vm7, %v1627_v0, %v9651_v36  ;;  %v1661_v35 = vsel %vm1640_vm7, %v1628_v3, %v9653_v43  ;;  %v9654_v39 = vld [vmem:[#allocation167_spill] sm:$0xff]  ;;  %v1725_v5 = vsel %vm1706_vm9, %v1692_v2, %v9655_v30  ;;  %v9657_v6 = vld [vmem:[#allocation184_spill] sm:$0xff]  ;;  %v9659_v33 = vld [vmem:[#allocation194_spill] sm:$0xff] }
 0x27a   : > { %v1479_v51 = vpop.permute.xlu1 %1478  ;;  %v1693_v47 = vsel %vm1673_vm8, %v1660_v54, %v9654_v39  ;;  %v1694_v60 = vsel %vm1673_vm8, %v1661_v35, %v9656_v22  ;;  %v9658_v63 = vld [vmem:[#allocation200_spill] sm:$0xff]  ;;  %v2177_v31 = vld [vmem:[%s9159_s3 + $0x10] sm:$0xff]  ;;  %v9660_v49 = vld [vmem:[#allocation183_spill] sm:$0xff] }
 0x27b   : > { %v7110_v18 = vsel %vm1772_vm11, %v1756_v19, %v1479_v51  ;;  %v1485_v34 = vpop.permute.xlu0 %1484  ;;  %v1726_v48 = vsel %vm1706_vm9, %v1693_v47, %v9657_v6  ;;  %v1758_v10 = vsel %vm1739_vm10, %v1725_v5, %v9658_v63  ;;  %v1727_v29 = vsel %vm1706_vm9, %v1694_v60, %v9660_v49  ;;  %v9661_v23 = vld [vmem:[#allocation59_spill] sm:$0xff]  ;;  %v9662_v20 = vld [vmem:[#allocation68_spill] sm:$0xff]  ;;  %v9665_v19 = vld [vmem:[#allocation57_spill] sm:$0xff] }
 0x27c   : > { %4711 = vmatprep.mubr.msk.f32.mxu1 %vm1817_vm12, %v7110_v18  ;;  %v1759_v59 = vsel %vm1739_vm10, %v1726_v48, %v6754_v11  ;;  %v1563_v4 = vsel %vm277_vm0, %v9662_v20, %v9661_v23  ;;  %v9663_v40 = vld [vmem:[#allocation15_spill] sm:$0xff]  ;;  %v2176_v11 = vld [vmem:[%s9159_s3 + $0x8] sm:$0xff]  ;;  %v9666_v51 = vld [vmem:[#allocation66_spill] sm:$0xff] }
 0x27d   : > { %4712 = vmatmul.mubr.msk.f32.vlgmr.msra.gmra.mxu1 %vm1817_vm12, %v7119_v12  ;;  %v1760_v17 = vsel %vm1739_vm10, %v1727_v29, %v9663_v40  ;;  %v7158_v46 = vsel %vm1772_vm11, %v1759_v59, %v1485_v34  ;;  %v9664_v9 = vld [vmem:[#allocation104_spill] sm:$0xff]  ;;  %v1564_v37 = vsel %vm277_vm0, %v9666_v51, %v9665_v19  ;;  %v9667_v0 = vld [vmem:[#allocation130_spill] sm:$0xff]  ;;  %v2175_v42 = vld [vmem:[%s9159_s3] sm:$0xff] }
 0x27e   : > { %v1483_v58 = vpop.permute.xlu1 %1482  ;;  %4736 = vmatpush3.msk.msra.mxu1 %vm1914_vm5, %v9659_v33  ;;  %v1596_v38 = vsel %vm1574_vm3, %v1563_v4, %v9664_v9  ;;  %v9668_v44 = vld [vmem:[#allocation103_spill] sm:$0xff]  ;;  %v9669_v3 = vld [vmem:[#allocation141_spill] sm:$0xff]  ;;  %v9672_v43 = vld [vmem:[#allocation140_spill] sm:$0xff]  ;;  %vm3921_vm5 = vcmask 588800  }
 0x27f   : > { %v7150_v24 = vsel %vm1772_vm11, %v1758_v10, %v1483_v58  ;;  %4737 = vmatprep.subr.mxu1 %v2178_v8  ;;  %v1487_v15 = vpop.permute.xlu0 %1486  ;;  %v1629_v28 = vsel %vm1607_vm6, %v1596_v38, %v9667_v0  ;;  %v1597_v16 = vsel %vm1574_vm3, %v1564_v37, %v9668_v44  ;;  %v9670_v54 = vld [vmem:[#allocation129_spill] sm:$0xff]  ;;  %v9673_v39 = vld [vmem:[#allocation186_spill] sm:$0xff]  ;;  %v9674_v30 = vld [vmem:[#allocation168_spill] sm:$0xff] }
 0x280   : > { %4714 = vmatprep.mubr.msk.f32.mxu1 %vm1817_vm12, %v7150_v24  ;;  %4738 = vmatpush3.msra.mxu1 %v2178_v8  ;;  %v7168_v50 = vsel %vm1772_vm11, %v1760_v17, %v1487_v15  ;;  %v1662_v36 = vsel %vm1640_vm7, %v1629_v28, %v9669_v3  ;;  %v1630_v56 = vsel %vm1607_vm6, %v1597_v16, %v9670_v54  ;;  %v9671_v2 = vld [vmem:[#allocation169_spill] sm:$0xff]  ;;  %v9676_v10 = vld [vmem:[#allocation63_spill] sm:$0xff]  ;;  %v9677_v58 = vld [vmem:[#allocation72_spill] sm:$0xff] }
 0x281   : > { %4715 = vmatmul.mubr.msk.f32.gmra.mxu1 %vm1817_vm12, %v7158_v46  ;;  %4739 = vmatprep.subr.mxu1 %v2177_v31  ;;  %v1695_v34 = vsel %vm1673_vm8, %v1662_v36, %v9671_v2  ;;  %v1663_v35 = vsel %vm1640_vm7, %v1630_v56, %v9672_v43  ;;  %v9675_v6 = vld [vmem:[#allocation185_spill] sm:$0xff]  ;;  %v1565_v33 = vsel %vm277_vm0, %v9677_v58, %v9676_v10  ;;  %v9678_v29 = vld [vmem:[#allocation106_spill] sm:$0xff]  ;;  %v9681_v17 = vld [vmem:[#allocation132_spill] sm:$0xff] }
 0x282   : > { %v1393_v52 = vpop.permute.xlu1 %1392  ;;  %4717 = vmatprep.mubr.msk.f32.mxu1 %vm1817_vm12, %v7168_v50  ;;  %4740 = vmatpush3.msra.mxu1 %v2177_v31  ;;  %v1728_v47 = vsel %vm1706_vm9, %v1695_v34, %v9673_v39  ;;  %v1696_v5 = vsel %vm1673_vm8, %v1663_v35, %v9674_v30  ;;  %v1598_v59 = vsel %vm1574_vm3, %v1565_v33, %v9678_v29  ;;  %v9679_v20 = vld [vmem:[#allocation61_spill] sm:$0xff]  ;;  %v9680_v4 = vld [vmem:[#allocation70_spill] sm:$0xff]  ;;  %v9683_v19 = vld [vmem:[#allocation143_spill] sm:$0xff] }
 0x283   : > { %4741 = vmatprep.subr.mxu1 %v2176_v11  ;;  %v1395_v8 = vpop.permute.xlu0 %1394  ;;  %v1761_v22 = vsel %vm1739_vm10, %v1728_v47, %v1393_v52  ;;  %v1729_v48 = vsel %vm1706_vm9, %v1696_v5, %v9675_v6  ;;  %v1566_v40 = vsel %vm277_vm0, %v9680_v4, %v9679_v20  ;;  %v1631_v15 = vsel %vm1607_vm6, %v1598_v59, %v9681_v17  ;;  %v9682_v9 = vld [vmem:[#allocation105_spill] sm:$0xff]  ;;  %v9684_v37 = vld [vmem:[#allocation131_spill] sm:$0xff]  ;;  %v9686_v44 = vld [vmem:[#allocation142_spill] sm:$0xff] }
 0x284   : > { %4742 = vmatpush3.msra.mxu1 %v2176_v11  ;;  %v1762_v31 = vsel %vm1739_vm10, %v1729_v48, %v1395_v8  ;;  %v1599_v38 = vsel %vm1574_vm3, %v1566_v40, %v9682_v9  ;;  %v1664_v51 = vsel %vm1640_vm7, %v1631_v15, %v9683_v19  ;;  %v9685_v28 = vld [vmem:[#allocation171_spill] sm:$0xff]  ;;  %v9687_v3 = vld [vmem:[#allocation188_spill] sm:$0xff]  ;;  %v9688_v54 = vld [vmem:[#allocation170_spill] sm:$0xff] }
 0x285   : > { %4743 = vmatprep.subr.mxu1 %v2175_v42  ;;  %v1632_v0 = vsel %vm1607_vm6, %v1599_v38, %v9684_v37  ;;  %v1697_v52 = vsel %vm1673_vm8, %v1664_v51, %v9685_v28  ;;  %v9689_v8 = vld [vmem:[#allocation187_spill] sm:$0xff]  ;;  %v9691_v47 = vld [vmem:[#allocation76_spill] sm:$0xff]  ;;  %v9693_v10 = vld [vmem:[#allocation65_spill] sm:$0xff] }
 0x286   : > { %v1489_v60 = vpop.permute.xlu1 %1488  ;;  %4744 = vmatpush3.msra.mxu1 %v2175_v42  ;;  %v1665_v16 = vsel %vm1640_vm7, %v1632_v0, %v9686_v44  ;;  %v1730_v36 = vsel %vm1706_vm9, %v1697_v52, %v9687_v3  ;;  %v9690_v39 = vld [vmem:[#allocation67_spill] sm:$0xff]  ;;  %v9694_v58 = vld [vmem:[#allocation74_spill] sm:$0xff]  ;;  %v9697_v4 = vld [vmem:[#allocation145_spill] sm:$0xff] }
 0x287   : > { %v7200_v63 = vsel %vm1772_vm11, %v1761_v22, %v1489_v60  ;;  %v1491_v49 = vpop.permute.xlu0 %1490  ;;  %v1698_v56 = vsel %vm1673_vm8, %v1665_v16, %v9688_v54  ;;  %v1567_v30 = vsel %vm277_vm0, %v9691_v47, %v9690_v39  ;;  %v9692_v60 = vld [vmem:[#allocation108_spill] sm:$0xff]  ;;  %v1568_v33 = vsel %vm277_vm0, %v9694_v58, %v9693_v10  ;;  %v9696_v59 = vld [vmem:[#allocation107_spill] sm:$0xff]  ;;  %v9698_v17 = vld [vmem:[#allocation9_spill] sm:$0xff] }
 0x288   : > { %4718 = vmatmul.mubr.msk.f32.gmra.mxu1 %vm1817_vm12, %v7200_v63  ;;  %v7211_v23 = vsel %vm1772_vm11, %v1762_v31, %v1491_v49  ;;  %v1731_v43 = vsel %vm1706_vm9, %v1698_v56, %v9689_v8  ;;  %v1600_v6 = vsel %vm1574_vm3, %v1567_v30, %v9692_v60  ;;  %v9695_v31 = vld [vmem:[#allocation133_spill] sm:$0xff]  ;;  %v1601_v20 = vsel %vm1574_vm3, %v1568_v33, %v9696_v59  ;;  %v9700_v19 = vld [vmem:[#allocation144_spill] sm:$0xff]  ;;  %v9701_v37 = vld [vmem:[#allocation190_spill] sm:$0xff] }
 0x289   : > { %4720 = vmatprep.mubr.msk.f32.mxu1 %vm1817_vm12, %v7211_v23  ;;  %v1633_v49 = vsel %vm1607_vm6, %v1600_v6, %v9695_v31  ;;  %v1634_v15 = vsel %vm1607_vm6, %v1601_v20, %v9698_v17  ;;  %v9702_v28 = vld [vmem:[#allocation172_spill] sm:$0xff]  ;;  %v9703_v16 = vld [vmem:[#allocation189_spill] sm:$0xff]  ;;  %v9704_v54 = vld [vmem:[#allocation71_spill] sm:$0xff] }
 0x28a   : > { %v1397_v11 = vpop.permute.xlu1 %1396  ;;  %v1666_v40 = vsel %vm1640_vm7, %v1633_v49, %v9697_v4  ;;  %v1667_v51 = vsel %vm1640_vm7, %v1634_v15, %v9700_v19  ;;  %v9705_v56 = vld [vmem:[#allocation80_spill] sm:$0xff]  ;;  %v9707_v30 = vld [vmem:[#allocation69_spill] sm:$0xff]  ;;  %v9709_v60 = vld [vmem:[#allocation11_spill] sm:$0xff] }
 0x28b   : > { %v1399_v42 = vpop.permute.xlu0 %1398  ;;  %v1763_v2 = vsel %vm1739_vm10, %v1730_v36, %v1397_v11  ;;  %v9699_v11 = vld [vmem:[#allocation173_spill] sm:$0xff]  ;;  %v1700_v52 = vsel %vm1673_vm8, %v1667_v51, %v9702_v28  ;;  %v9711_v31 = vld [vmem:[#allocation147_spill] sm:$0xff]  ;;  %v9714_v17 = vld [vmem:[#allocation146_spill] sm:$0xff] }
 0x28c   : > { %v1764_v5 = vsel %vm1739_vm10, %v1731_v43, %v1399_v42  ;;  %v1699_v9 = vsel %vm1673_vm8, %v1666_v40, %v9699_v11  ;;  %v1733_v3 = vsel %vm1706_vm9, %v1700_v52, %v9703_v16  ;;  %v9706_v43 = vld [vmem:[#allocation110_spill] sm:$0xff]  ;;  %v9710_v58 = vld [vmem:[#allocation109_spill] sm:$0xff]  ;;  %v9713_v20 = vld [vmem:[#allocation175_spill] sm:$0xff] }
 0x28d   : > { %v1732_v0 = vsel %vm1706_vm9, %v1699_v9, %v9701_v37  ;;  %v9715_v11 = vld [vmem:[#allocation192_spill] sm:$0xff] }
 0x28e   : > { %v1493_v34 = vpop.permute.xlu1 %1492 }
 0x28f   : > { %v7238_v35 = vsel %vm1772_vm11, %v1763_v2, %v1493_v34  ;;  %v1495_v22 = vpop.permute.xlu0 %1494  ;;  %v1569_v2 = vsel %vm277_vm0, %v9705_v56, %v9704_v54  ;;  %v9720_v56 = vld [vmem:[#allocation112_spill] sm:$0xff] }
 0x290   : > { %4721 = vmatmul.mubr.msk.f32.gmra.mxu1 %vm1817_vm12, %v7238_v35  ;;  %v7249_v48 = vsel %vm1772_vm11, %v1764_v5, %v1495_v22  ;;  %v1602_v39 = vsel %vm1574_vm3, %v1569_v2, %v9706_v43  ;;  %v9708_v5 = vld [vmem:[#allocation78_spill] sm:$0xff] }
 0x291   : > { %4723 = vmatprep.mubr.msk.f32.mxu1 %vm1817_vm12, %v7249_v48  ;;  %v1570_v22 = vsel %vm277_vm0, %v9708_v5, %v9707_v30  ;;  %v1635_v6 = vsel %vm1607_vm6, %v1602_v39, %v9709_v60  ;;  %v9722_v43 = vld [vmem:[#allocation82_spill] sm:$0xff]  ;;  %v9723_v30 = vld [vmem:[#allocation13_spill] sm:$0xff]  ;;  %v9724_v60 = vmov 0.0  }
 0x292   : > { %v1401_v29 = vpop.permute.xlu1 %1400  ;;  %v1603_v33 = vsel %vm1574_vm3, %v1570_v22, %v9710_v58  ;;  %v1668_v49 = vsel %vm1640_vm7, %v1635_v6, %v9711_v31  ;;  %2419 = vst.msk [vmem:[#allocation3 + $0x18] sm:$0x1] %vm2418_vm13, %v9724_v60  ;;  %2423 = vst.msk [vmem:[#allocation3 + $0x38] sm:$0x1] %vm2418_vm13, %v9724_v60  ;;  %v9725_v6 = vld [vmem:[#allocation111_spill] sm:$0xff]  ;;  %v9726_v58 = vld [vmem:[#allocation149_spill] sm:$0xff] }
 0x293   : > { %v1403_v38 = vpop.permute.xlu0 %1402  ;;  %v1765_v42 = vsel %vm1739_vm10, %v1732_v0, %v1401_v29  ;;  %v9712_v29 = vld [vmem:[#allocation10_spill] sm:$0xff]  ;;  %v1701_v4 = vsel %vm1673_vm8, %v1668_v49, %v9713_v20  ;;  %v9717_v0 = vld [vmem:[#allocation191_spill] sm:$0xff]  ;;  %2427 = vst.msk [vmem:[#allocation3 + $0x58] sm:$0x1] %vm2418_vm13, %v9724_v60  ;;  %2431 = vst.msk [vmem:[#allocation3 + $0x78] sm:$0x1] %vm2418_vm13, %v9724_v60 }
 0x294   : > { %v1766_v34 = vsel %vm1739_vm10, %v1733_v3, %v1403_v38  ;;  %v1636_v59 = vsel %vm1607_vm6, %v1603_v33, %v9712_v29  ;;  %v1734_v9 = vsel %vm1706_vm9, %v1701_v4, %v9715_v11  ;;  %v9716_v38 = vld [vmem:[#allocation174_spill] sm:$0xff]  ;;  %2435 = vst.msk [vmem:[#allocation3 + $0x98] sm:$0x1] %vm2418_vm13, %v9724_v60  ;;  %2439 = vst.msk [vmem:[#allocation3 + $0xb8] sm:$0x1] %vm2418_vm13, %v9724_v60  ;;  %v9727_v31 = vld [vmem:[#allocation12_spill] sm:$0xff] }
 0x295   : > { %v1669_v15 = vsel %vm1640_vm7, %v1636_v59, %v9714_v17  ;;  %2443 = vst.msk [vmem:[#allocation3 + $0xd8] sm:$0x1] %vm2418_vm13, %v9724_v60  ;;  %2447 = vst.msk [vmem:[#allocation3 + $0xf8] sm:$0x1] %vm2418_vm13, %v9724_v60  ;;  %v9728_v29 = vld [vmem:[#allocation177_spill] sm:$0xff]  ;;  %v9729_v4 = vld [vmem:[#allocation148_spill] sm:$0xff] }
 0x296   : > { %v1497_v44 = vpop.permute.xlu1 %1496  ;;  %v1702_v19 = vsel %vm1673_vm8, %v1669_v15, %v9716_v38  ;;  %2451 = vst.msk [vmem:[#allocation3 + $0x118] sm:$0x1] %vm2418_vm13, %v9724_v60  ;;  %2455 = vst.msk [vmem:[#allocation3 + $0x138] sm:$0x1] %vm2418_vm13, %v9724_v60  ;;  %v9730_v17 = vld [vmem:[#allocation195_spill] sm:$0xff]  ;;  %v7382_v11 = vld [vmem:[#allocation3 + $0x10] sm:$0xff] }
 0x297   : > { %v7276_v36 = vsel %vm1772_vm11, %v1765_v42, %v1497_v44  ;;  %v1499_v8 = vpop.permute.xlu0 %1498  ;;  %v1735_v28 = vsel %vm1706_vm9, %v1702_v19, %v9717_v0  ;;  %v9718_v42 = vld [vmem:[#allocation75_spill] sm:$0xff]  ;;  %v9719_v44 = vld [vmem:[#allocation84_spill] sm:$0xff]  ;;  %2459 = vst.msk [vmem:[#allocation3 + $0x158] sm:$0x1] %vm2418_vm13, %v9724_v60  ;;  %2463 = vst.msk [vmem:[#allocation3 + $0x178] sm:$0x1] %vm2418_vm13, %v9724_v60  ;;  %2879 = vrot.lane.b32.xlu1 %v7382_v11, %s5033_s19 }
 0x298   : > { %4724 = vmatmul.mubr.msk.f32.gmra.mxu1 %vm1817_vm12, %v7276_v36  ;;  %v7287_v47 = vsel %vm1772_vm11, %v1766_v34, %v1499_v8  ;;  %v1571_v16 = vsel %vm277_vm0, %v9719_v44, %v9718_v42  ;;  %v9721_v8 = vld [vmem:[#allocation73_spill] sm:$0xff]  ;;  %2467 = vst.msk [vmem:[#allocation3 + $0x198] sm:$0x1] %vm2418_vm13, %v9724_v60  ;;  %2471 = vst.msk [vmem:[#allocation3 + $0x1b8] sm:$0x1] %vm2418_vm13, %v9724_v60  ;;  %v7392_v42 = vld [vmem:[#allocation3 + $0x8] sm:$0xff] }
 0x299   : > { %4726 = vmatprep.mubr.msk.f32.mxu1 %vm1817_vm12, %v7287_v47  ;;  %v1604_v2 = vsel %vm1574_vm3, %v1571_v16, %v9720_v56  ;;  %v1572_v39 = vsel %vm277_vm0, %v9722_v43, %v9721_v8  ;;  %2475 = vst.msk [vmem:[#allocation3 + $0x1d8] sm:$0x1] %vm2418_vm13, %v9724_v60  ;;  %2479 = vst.msk [vmem:[#allocation3 + $0x1f8] sm:$0x1] %vm2418_vm13, %v9724_v60  ;;  %v9734_v44 = vld [vmem:[#allocation79_spill] sm:$0xff]  ;;  %2877 = vrot.lane.b32.xlu0 %v7392_v42, %s5033_s19 }
 0x29a   : > { %v1405_v10 = vpop.permute.xlu1 %1404  ;;  %v1637_v5 = vsel %vm1607_vm6, %v1604_v2, %v9723_v30  ;;  %2483 = vst.msk [vmem:[#allocation3 + $0x218] sm:$0x1] %vm2418_vm13, %v9724_v60  ;;  %2487 = vst.msk [vmem:[#allocation3 + $0x238] sm:$0x1] %vm2418_vm13, %v9724_v60  ;;  %v9735_v16 = vld [vmem:[#allocation87_spill] sm:$0xff]  ;;  %v9736_v2 = vld [vmem:[#allocation113_spill] sm:$0xff] }
 0x29b   : > { %v1407_v40 = vpop.permute.xlu0 %1406  ;;  %v1767_v51 = vsel %vm1739_vm10, %v1734_v9, %v1405_v10  ;;  %v1605_v10 = vsel %vm1574_vm3, %v1572_v39, %v9725_v6  ;;  %v1670_v33 = vsel %vm1640_vm7, %v1637_v5, %v9726_v58  ;;  %v9731_v9 = vld [vmem:[#allocation176_spill] sm:$0xff]  ;;  %9733 = vst [vmem:[#allocation18_spill] sm:$0xff] %v7392_v42  ;;  %v9737_v39 = vld [vmem:[#allocation14_spill] sm:$0xff] }
 0x29c   : > { %v1768_v3 = vsel %vm1739_vm10, %v1735_v28, %v1407_v40  ;;  %v1638_v49 = vsel %vm1607_vm6, %v1605_v10, %v9727_v31  ;;  %v1703_v59 = vsel %vm1673_vm8, %v1670_v33, %v9728_v29  ;;  %v9739_v6 = vld [vmem:[#allocation178_spill] sm:$0xff]  ;;  %v9740_v58 = vld [vmem:[#allocation196_spill] sm:$0xff] }
 0x29d   : > { %v1671_v40 = vsel %vm1640_vm7, %v1638_v49, %v9729_v4  ;;  %v1736_v15 = vsel %vm1706_vm9, %v1703_v59, %v9730_v17 }
 0x29e   : > { %v1501_v37 = vpop.permute.xlu1 %1500  ;;  %v1704_v38 = vsel %vm1673_vm8, %v1671_v40, %v9731_v9 }
 0x29f   : > { %v7314_v52 = vsel %vm1772_vm11, %v1767_v51, %v1501_v37  ;;  %v1503_v54 = vpop.permute.xlu0 %1502  ;;  %v9732_v37 = vld [vmem:[#allocation193_spill] sm:$0xff] }
 0x2a0   : > { %4727 = vmatmul.mubr.msk.f32.gmra.mxu1 %vm1817_vm12, %v7314_v52  ;;  %v7325_v34 = vsel %vm1772_vm11, %v1768_v3, %v1503_v54  ;;  %v1737_v0 = vsel %vm1706_vm9, %v1704_v38, %v9732_v37  ;;  %v1573_v3 = vsel %vm277_vm0, %v9735_v16, %v9734_v44  ;;  %vm3839_vm0 = vcmask 457728  }
 0x2a1   : > { %4729 = vmatprep.mubr.msk.f32.mxu1 %vm1817_vm12, %v7325_v34  ;;  %v1606_v8 = vsel %vm1574_vm3, %v1573_v3, %v9736_v2 }
 0x2a2   : > { %v1409_v22 = vpop.permute.xlu1 %1408  ;;  %v1639_v30 = vsel %vm1607_vm6, %v1606_v8, %v9737_v39 }
 0x2a3   : > { %v1411_v20 = vpop.permute.xlu0 %1410  ;;  %v1769_v19 = vsel %vm1739_vm10, %v1736_v15, %v1409_v22  ;;  %v9738_v22 = vld [vmem:[#allocation150_spill] sm:$0xff] }
 0x2a4   : > { %v1770_v54 = vsel %vm1739_vm10, %v1737_v0, %v1411_v20  ;;  %v1672_v60 = vsel %vm1640_vm7, %v1639_v30, %v9738_v22 }
 0x2a5   : > { %v1705_v10 = vsel %vm1673_vm8, %v1672_v60, %v9739_v6 }
 0x2a6   : > { %v1505_v51 = vpop.permute.xlu1 %1504  ;;  %v1738_v33 = vsel %vm1706_vm9, %v1705_v10, %v9740_v58 }
 0x2a7   : > { %v1802_v28 = vsel %vm1772_vm11, %v1769_v19, %v1505_v51  ;;  %v1507_v56 = vpop.permute.xlu0 %1506 }
 0x2a8   : > { %4730 = vmatmul.mubr.msk.f32.gmra.mxu1 %vm1817_vm12, %v1802_v28  ;;  %v1803_v43 = vsel %vm1772_vm11, %v1770_v54, %v1507_v56 }
 0x2a9   : > { %4732 = vmatprep.mubr.msk.f32.mxu1 %vm1817_vm12, %v1803_v43 }
 0x2aa   : > { %v1413_v5 = vpop.permute.xlu1 %1412 }
 0x2ab   : > { %v1771_v31 = vsel %vm1739_vm10, %v1738_v33, %v1413_v5 }
 0x2ae   : > { %v1509_v49 = vpop.permute.xlu1 %1508 }
 0x2af   : > { %v1804_v29 = vsel %vm1772_vm11, %v1771_v31, %v1509_v49 }
 0x2b0   : > { %4733 = vmatmul.mubr.msk.f32.gmra.mxu1 %vm1817_vm12, %v1804_v29 }
 0x2b1   : > { %4745 = vmatprep.mubr.msk.f32.mxu1 %vm1817_vm12, %v6791_v45  ;;  %v2769_v45 = vrot.slane %v7392_v42, 1 }
 0x2b4   : > { %4746 = vmatmul.mubr.msk.f32.vlgmr.msra.gmra.mxu1 %vm1817_vm12, %v6801_v61  ;;  %v2770_v61 = vrot.slane %v7382_v11, 1 }
 0x2b5   : > { %4748 = vmatprep.mubr.msk.f32.mxu1 %vm1817_vm12, %v6831_v26 }
 0x2b6   : > { %v7482_v26 = vsel %vm665_vm4, %v2769_v45, %v2770_v61 }
 0x2b8   : > { %4749 = vmatmul.mubr.msk.f32.gmra.mxu1 %vm1817_vm12, %v6841_v1  ;;  %v2644_v1 = vrot.slane %v7382_v11, 7 }
 0x2b9   : > { %4751 = vmatprep.mubr.msk.f32.mxu1 %vm1817_vm12, %v6871_v53  ;;  %v9246_v53 = vrot.slane %v7392_v42, 7 }
 0x2bc   : > { %4752 = vmatmul.mubr.msk.f32.gmra.mxu1 %vm1817_vm12, %v6881_v55  ;;  %v7489_v55 = vsel %vm536_vm2, %v9246_v53, %v2644_v1  ;;  %v2572_v53 = vld [vmem:[#allocation3 + $0x198] sm:$0x1] }
 0x2bd   : > { %4754 = vmatprep.mubr.msk.f32.mxu1 %vm1817_vm12, %v6911_v27  ;;  %9741 = vst [vmem:[#allocation8_spill] sm:$0xff] %v7489_v55  ;;  %v7494_v27 = vld [vmem:[%s9158_s2] ss:$0 sm:$0xff] }
 0x2c0   : > { %4755 = vmatmul.mubr.msk.f32.gmra.mxu1 %vm1817_vm12, %v6921_v62 }
 0x2c1   : > { %4757 = vmatprep.mubr.msk.f32.mxu1 %vm1817_vm12, %v6951_v25 }
 0x2c4   : > { %4758 = vmatmul.mubr.msk.f32.gmra.mxu1 %vm1817_vm12, %v6961_v7 }
 0x2c5   : > { %4760 = vmatprep.mubr.msk.f32.mxu1 %vm1817_vm12, %v6991_v14 }
 0x2c8   : > { %4761 = vmatmul.mubr.msk.f32.gmra.mxu1 %vm1817_vm12, %v7001_v41 }
 0x2c9   : > { %4763 = vmatprep.mubr.msk.f32.mxu1 %vm1817_vm12, %v7031_v21 }
 0x2cc   : > { %4764 = vmatmul.mubr.msk.f32.gmra.mxu1 %vm1817_vm12, %v7041_v57 }
 0x2cd   : > { %4766 = vmatprep.mubr.msk.f32.mxu1 %vm1817_vm12, %v7071_v13 }
 0x2d0   : > { %4767 = vmatmul.mubr.msk.f32.gmra.mxu1 %vm1817_vm12, %v7081_v32 }
 0x2d1   : > { %4769 = vmatprep.mubr.msk.f32.mxu1 %vm1817_vm12, %v7110_v18 }
 0x2d4   : > { %4770 = vmatmul.mubr.msk.f32.gmra.mxu1 %vm1817_vm12, %v7119_v12 }
 0x2d5   : > { %4772 = vmatprep.mubr.msk.f32.mxu1 %vm1817_vm12, %v7150_v24 }
 0x2d8   : > { %4773 = vmatmul.mubr.msk.f32.gmra.mxu1 %vm1817_vm12, %v7158_v46 }
 0x2d9   : > { %4775 = vmatprep.mubr.msk.f32.mxu1 %vm1817_vm12, %v7168_v50 }
 0x2dc   : > { %4776 = vmatmul.mubr.msk.f32.gmra.mxu1 %vm1817_vm12, %v7200_v63 }
 0x2dd   : > { %4778 = vmatprep.mubr.msk.f32.mxu1 %vm1817_vm12, %v7211_v23 }
 0x2e0   : > { %4779 = vmatmul.mubr.msk.f32.gmra.mxu1 %vm1817_vm12, %v7238_v35 }
 0x2e1   : > { %4781 = vmatprep.mubr.msk.f32.mxu1 %vm1817_vm12, %v7249_v48 }
 0x2e4   : > { %4782 = vmatmul.mubr.msk.f32.gmra.mxu1 %vm1817_vm12, %v7276_v36 }
 0x2e5   : > { %4784 = vmatprep.mubr.msk.f32.mxu1 %vm1817_vm12, %v7287_v47 }
 0x2e8   : > { %4785 = vmatmul.mubr.msk.f32.gmra.mxu1 %vm1817_vm12, %v7314_v52 }
 0x2e9   : > { %4787 = vmatprep.mubr.msk.f32.mxu1 %vm1817_vm12, %v7325_v34 }
 0x2ec   : > { %4788 = vmatmul.mubr.msk.f32.gmra.mxu1 %vm1817_vm12, %v1802_v28 }
 0x2ed   : > { %4790 = vmatprep.mubr.msk.f32.mxu1 %vm1817_vm12, %v1803_v43 }
 0x2f0   : > { %4791 = vmatmul.mubr.msk.f32.gmra.mxu1 %vm1817_vm12, %v1804_v29 }
 0x31d   : > { %v4689_v62 = vpop.f32.mrf.mxu0 }
 0x31e   : > { %v1990_v25 = vadd.f32 %v4689_v62, %v7494_v27 }
 0x31f   : > { %v1984_v7 = vpop.f32.mrf.mxu0 }
 0x320   : > { %v2144_v14 = vmax.f32 %v1990_v25, 0.0  ;;  %v1985_v41 = vadd.f32 %v7494_v27, %v1984_v7 }
 0x321   : > { %v4692_v21 = vpop.f32.mrf.mxu0 }
 0x322   : > { %2490 = vst.msk [vmem:[#allocation3 + $0x30] sm:$0xff] %vm1574_vm3, %v2144_v14  ;;  %v2143_v57 = vmax.f32 %v1985_v41, 0.0  ;;  %v2000_v13 = vadd.f32 %v4692_v21, %v7494_v27 }
 0x323   : > { %v1994_v32 = vpop.f32.mrf.mxu0 }
 0x324   : > { %2489 = vst.msk [vmem:[#allocation3 + $0x28] sm:$0xff] %vm1574_vm3, %v2143_v57  ;;  %v2146_v18 = vmax.f32 %v2000_v13, 0.0  ;;  %v1995_v12 = vadd.f32 %v7494_v27, %v1994_v32 }
 0x325   : > { %v4695_v24 = vpop.f32.mrf.mxu0 }
 0x326   : > { %2492 = vst.msk [vmem:[#allocation3 + $0x50] sm:$0xff] %vm1574_vm3, %v2146_v18  ;;  %v2145_v46 = vmax.f32 %v1995_v12, 0.0  ;;  %v2010_v50 = vadd.f32 %v4695_v24, %v7494_v27 }
 0x327   : > { %v2004_v63 = vpop.f32.mrf.mxu0 }
 0x328   : > { %2491 = vst.msk [vmem:[#allocation3 + $0x48] sm:$0xff] %vm1574_vm3, %v2145_v46  ;;  %v2148_v23 = vmax.f32 %v2010_v50, 0.0  ;;  %v2005_v35 = vadd.f32 %v7494_v27, %v2004_v63 }
 0x329   : > { %v4698_v48 = vpop.f32.mrf.mxu0  ;;  %v7506_v36 = vld [vmem:[#allocation3 + $0x30] sm:$0xff] }
 0x32a   : > { %2494 = vst.msk [vmem:[#allocation3 + $0x70] sm:$0xff] %vm1574_vm3, %v2148_v23  ;;  %v2147_v47 = vmax.f32 %v2005_v35, 0.0  ;;  %v2020_v52 = vadd.f32 %v4698_v48, %v7494_v27  ;;  %2883 = vrot.lane.b32.xlu1 %v7506_v36, %s5033_s19 }
 0x32b   : > { %v2014_v34 = vpop.f32.mrf.mxu0  ;;  %v7512_v59 = vld [vmem:[#allocation3 + $0x28] sm:$0xff] }
 0x32c   : > { %2493 = vst.msk [vmem:[#allocation3 + $0x68] sm:$0xff] %vm1574_vm3, %v2147_v47  ;;  %v2150_v20 = vmax.f32 %v2020_v52, 0.0  ;;  %v2015_v4 = vadd.f32 %v7494_v27, %v2014_v34  ;;  %2881 = vrot.lane.b32.xlu0 %v7512_v59, %s5033_s19 }
 0x32d   : > { %v4701_v40 = vpop.f32.mrf.mxu0  ;;  %v7518_v17 = vld [vmem:[#allocation3 + $0x50] sm:$0xff] }
 0x32e   : > { %2496 = vst.msk [vmem:[#allocation3 + $0x90] sm:$0xff] %vm1574_vm3, %v2150_v20  ;;  %v2149_v15 = vmax.f32 %v2015_v4, 0.0  ;;  %v2030_v9 = vadd.f32 %v4701_v40, %v7494_v27  ;;  %2887 = vrot.lane.b32.xlu1 %v7518_v17, %s5033_s19 }
 0x32f   : > { %v2024_v38 = vpop.f32.mrf.mxu0  ;;  %v7524_v19 = vld [vmem:[#allocation3 + $0x48] sm:$0xff] }
 0x330   : > { %2495 = vst.msk [vmem:[#allocation3 + $0x88] sm:$0xff] %vm1574_vm3, %v2149_v15  ;;  %v2152_v51 = vmax.f32 %v2030_v9, 0.0  ;;  %v2025_v37 = vadd.f32 %v7494_v27, %v2024_v38  ;;  %2885 = vrot.lane.b32.xlu0 %v7524_v19, %s5033_s19 }
 0x331   : > { %v4704_v0 = vpop.f32.mrf.mxu0  ;;  %v7530_v28 = vld [vmem:[#allocation3 + $0x70] sm:$0xff] }
 0x332   : > { %2498 = vst.msk [vmem:[#allocation3 + $0xb0] sm:$0xff] %vm1574_vm3, %v2152_v51  ;;  %v2151_v44 = vmax.f32 %v2025_v37, 0.0  ;;  %v2040_v16 = vadd.f32 %v4704_v0, %v7494_v27  ;;  %2891 = vrot.lane.b32.xlu1 %v7530_v28, %s5033_s19 }
 0x333   : > { %v2034_v3 = vpop.f32.mrf.mxu0  ;;  %v7536_v54 = vld [vmem:[#allocation3 + $0x68] sm:$0xff] }
 0x334   : > { %2497 = vst.msk [vmem:[#allocation3 + $0xa8] sm:$0xff] %vm1574_vm3, %v2151_v44  ;;  %v2154_v56 = vmax.f32 %v2040_v16, 0.0  ;;  %v2035_v2 = vadd.f32 %v7494_v27, %v2034_v3  ;;  %2889 = vrot.lane.b32.xlu0 %v7536_v54, %s5033_s19 }
 0x335   : > { %v4707_v8 = vpop.f32.mrf.mxu0  ;;  %v7542_v43 = vld [vmem:[#allocation3 + $0x90] sm:$0xff] }
 0x336   : > { %2500 = vst.msk [vmem:[#allocation3 + $0xd0] sm:$0xff] %vm1574_vm3, %v2154_v56  ;;  %v2153_v39 = vmax.f32 %v2035_v2, 0.0  ;;  %v2050_v30 = vadd.f32 %v4707_v8, %v7494_v27  ;;  %2895 = vrot.lane.b32.xlu1 %v7542_v43, %s5033_s19 }
 0x337   : > { %v2044_v5 = vpop.f32.mrf.mxu0  ;;  %v7548_v22 = vld [vmem:[#allocation3 + $0x88] sm:$0xff] }
 0x338   : > { %2499 = vst.msk [vmem:[#allocation3 + $0xc8] sm:$0xff] %vm1574_vm3, %v2153_v39  ;;  %v2156_v60 = vmax.f32 %v2050_v30, 0.0  ;;  %v2045_v6 = vadd.f32 %v7494_v27, %v2044_v5  ;;  %2893 = vrot.lane.b32.xlu0 %v7548_v22, %s5033_s19 }
 0x339   : > { %v4710_v10 = vpop.f32.mrf.mxu0  ;;  %v7554_v58 = vld [vmem:[#allocation3 + $0xb0] sm:$0xff] }
 0x33a   : > { %2502 = vst.msk [vmem:[#allocation3 + $0xf0] sm:$0xff] %vm1574_vm3, %v2156_v60  ;;  %v2155_v33 = vmax.f32 %v2045_v6, 0.0  ;;  %v2060_v31 = vadd.f32 %v4710_v10, %v7494_v27  ;;  %2899 = vrot.lane.b32.xlu1 %v7554_v58, %s5033_s19 }
 0x33b   : > { %v2054_v49 = vpop.f32.mrf.mxu0  ;;  %v7560_v29 = vld [vmem:[#allocation3 + $0xa8] sm:$0xff] }
 0x33c   : > { %2501 = vst.msk [vmem:[#allocation3 + $0xe8] sm:$0xff] %vm1574_vm3, %v2155_v33  ;;  %v2158_v45 = vmax.f32 %v2060_v31, 0.0  ;;  %v2055_v1 = vadd.f32 %v7494_v27, %v2054_v49  ;;  %2897 = vrot.lane.b32.xlu0 %v7560_v29, %s5033_s19 }
 0x33d   : > { %v4713_v62 = vpop.f32.mrf.mxu1  ;;  %v7566_v25 = vld [vmem:[#allocation3 + $0xd0] sm:$0xff] }
 0x33e   : > { %2504 = vst.msk [vmem:[#allocation3 + $0x110] sm:$0xff] %vm1574_vm3, %v2158_v45  ;;  %v2157_v7 = vmax.f32 %v2055_v1, 0.0  ;;  %v2070_v14 = vadd.f32 %v4713_v62, %v7494_v27  ;;  %2903 = vrot.lane.b32.xlu1 %v7566_v25, %s5033_s19 }
 0x33f   : > { %v2064_v41 = vpop.f32.mrf.mxu1  ;;  %v7572_v21 = vld [vmem:[#allocation3 + $0xc8] sm:$0xff] }
 0x340   : > { %2503 = vst.msk [vmem:[#allocation3 + $0x108] sm:$0xff] %vm1574_vm3, %v2157_v7  ;;  %v2160_v57 = vmax.f32 %v2070_v14, 0.0  ;;  %v2065_v13 = vadd.f32 %v7494_v27, %v2064_v41  ;;  %2901 = vrot.lane.b32.xlu0 %v7572_v21, %s5033_s19 }
 0x341   : > { %v4716_v32 = vpop.f32.mrf.mxu1  ;;  %v7578_v18 = vld [vmem:[#allocation3 + $0xf0] sm:$0xff] }
 0x342   : > { %2506 = vst.msk [vmem:[#allocation3 + $0x130] sm:$0xff] %vm1574_vm3, %v2160_v57  ;;  %v2159_v12 = vmax.f32 %v2065_v13, 0.0  ;;  %v2080_v24 = vadd.f32 %v4716_v32, %v7494_v27  ;;  %2907 = vrot.lane.b32.xlu1 %v7578_v18, %s5033_s19 }
 0x343   : > { %v2074_v46 = vpop.f32.mrf.mxu1  ;;  %v7584_v50 = vld [vmem:[#allocation3 + $0xe8] sm:$0xff] }
 0x344   : > { %2505 = vst.msk [vmem:[#allocation3 + $0x128] sm:$0xff] %vm1574_vm3, %v2159_v12  ;;  %v2162_v63 = vmax.f32 %v2080_v24, 0.0  ;;  %v2075_v23 = vadd.f32 %v7494_v27, %v2074_v46  ;;  %2905 = vrot.lane.b32.xlu0 %v7584_v50, %s5033_s19 }
 0x345   : > { %v7590_v35 = vld [vmem:[#allocation3 + $0x110] sm:$0xff] }
 0x346   : > { %2508 = vst.msk [vmem:[#allocation3 + $0x150] sm:$0xff] %vm1574_vm3, %v2162_v63  ;;  %v2161_v48 = vmax.f32 %v2075_v23, 0.0  ;;  %2911 = vrot.lane.b32.xlu1 %v7590_v35, %s5033_s19 }
 0x347   : > { %v7595_v47 = vld [vmem:[#allocation3 + $0x108] sm:$0xff] }
 0x348   : > { %2507 = vst.msk [vmem:[#allocation3 + $0x148] sm:$0xff] %vm1574_vm3, %v2161_v48  ;;  %v4719_v52 = vpop.f32.mrf.mxu1  ;;  %2909 = vrot.lane.b32.xlu0 %v7595_v47, %s5033_s19 }
 0x349   : > { %v2090_v34 = vadd.f32 %v4719_v52, %v7494_v27  ;;  %v7601_v20 = vld [vmem:[#allocation3 + $0x130] sm:$0xff] }
 0x34a   : > { %v2084_v4 = vpop.f32.mrf.mxu1  ;;  %2915 = vrot.lane.b32.xlu1 %v7601_v20, %s5033_s19 }
 0x34b   : > { %v2164_v40 = vmax.f32 %v2090_v34, 0.0  ;;  %v2085_v15 = vadd.f32 %v7494_v27, %v2084_v4  ;;  %v7606_v9 = vld [vmem:[#allocation3 + $0x128] sm:$0xff]  ;;  %v2524_v34 = vld [vmem:[#allocation3 + $0x18] sm:$0x1] }
 0x34c   : > { %2913 = vrot.lane.b32.xlu0 %v7606_v9, %s5033_s19 }
 0x34d   : > { %2510 = vst.msk [vmem:[#allocation3 + $0x170] sm:$0xff] %vm1574_vm3, %v2164_v40  ;;  %v2163_v38 = vmax.f32 %v2085_v15, 0.0  ;;  %v7611_v51 = vld [vmem:[#allocation3 + $0x150] sm:$0xff] }
 0x34e   : > { %2919 = vrot.lane.b32.xlu1 %v7611_v51, %s5033_s19 }
 0x34f   : > { %2509 = vst.msk [vmem:[#allocation3 + $0x168] sm:$0xff] %vm1574_vm3, %v2163_v38  ;;  %v7616_v37 = vld [vmem:[#allocation3 + $0x148] sm:$0xff]  ;;  %v2772_v38 = vrot.slane %v2524_v34, 1  ;;  %v2789_v34 = vrot.slane %v7548_v22, 1 }
 0x350   : > { %v4722_v0 = vpop.f32.mrf.mxu1  ;;  %2917 = vrot.lane.b32.xlu0 %v7616_v37, %s5033_s19 }
 0x351   : > { %v2100_v44 = vadd.f32 %v4722_v0, %v7494_v27 }
 0x352   : > { %v2094_v16 = vpop.f32.mrf.mxu1 }
 0x353   : > { %v2166_v3 = vmax.f32 %v2100_v44, 0.0  ;;  %v2095_v56 = vadd.f32 %v7494_v27, %v2094_v16 }
 0x354   : > { %v7622_v2 = vld [vmem:[#allocation3 + $0x170] sm:$0xff] }
 0x355   : > { %2512 = vst.msk [vmem:[#allocation3 + $0x190] sm:$0xff] %vm1574_vm3, %v2166_v3  ;;  %v2165_v8 = vmax.f32 %v2095_v56, 0.0  ;;  %2923 = vrot.lane.b32.xlu1 %v7622_v2, %s5033_s19  ;;  %v2528_v56 = vld [vmem:[#allocation3 + $0x38] sm:$0x1] }
 0x356   : > { %v7627_v39 = vld [vmem:[#allocation3 + $0x168] sm:$0xff] }
 0x357   : > { %2511 = vst.msk [vmem:[#allocation3 + $0x188] sm:$0xff] %vm1574_vm3, %v2165_v8  ;;  %2921 = vrot.lane.b32.xlu0 %v7627_v39, %s5033_s19 }
 0x358   : > { %v4725_v30 = vpop.f32.mrf.mxu1 }
 0x359   : > { %v2110_v5 = vadd.f32 %v4725_v30, %v7494_v27  ;;  %v2773_v30 = vsel %vm665_vm4, %v2770_v61, %v2772_v38  ;;  %v2780_v61 = vrot.slane %v7518_v17, 1  ;;  %v2548_v38 = vld [vmem:[#allocation3 + $0xd8] sm:$0x1] }
 0x35a   : > { %v2104_v60 = vpop.f32.mrf.mxu1 }
 0x35b   : > { %v2168_v6 = vmax.f32 %v2110_v5, 0.0  ;;  %v2105_v10 = vadd.f32 %v7494_v27, %v2104_v60  ;;  %v2777_v5 = vrot.slane %v2528_v56, 1  ;;  %v2532_v60 = vld [vmem:[#allocation3 + $0x58] sm:$0x1]  ;;  %v2800_v56 = vrot.slane %v7566_v25, 1 }
 0x35c   : > { %v7634_v33 = vld [vmem:[#allocation3 + $0x190] sm:$0xff] }
 0x35d   : > { %2514 = vst.msk [vmem:[#allocation3 + $0x1b0] sm:$0xff] %vm1574_vm3, %v2168_v6  ;;  %v2167_v31 = vmax.f32 %v2105_v10, 0.0  ;;  %2927 = vrot.lane.b32.xlu1 %v7634_v33, %s5033_s19  ;;  %v2774_v6 = vrot.slane %v7512_v59, 1  ;;  %v2782_v10 = vrot.slane %v2532_v60, 1  ;;  %v2799_v60 = vrot.slane %v7572_v21, 1 }
 0x35e   : > { %v7639_v49 = vld [vmem:[#allocation3 + $0x188] sm:$0xff] }
 0x35f   : > { %2513 = vst.msk [vmem:[#allocation3 + $0x1a8] sm:$0xff] %vm1574_vm3, %v2167_v31  ;;  %2925 = vrot.lane.b32.xlu0 %v7639_v49, %s5033_s19  ;;  %v2536_v31 = vld [vmem:[#allocation3 + $0x78] sm:$0x1] }
 0x360   : > { %v4728_v45 = vpop.f32.mrf.mxu1 }
 0x361   : > { %v2120_v1 = vadd.f32 %v4728_v45, %v7494_v27 }
 0x362   : > { %v2114_v62 = vpop.f32.mrf.mxu1 }
 0x363   : > { %v2170_v7 = vmax.f32 %v2120_v1, 0.0  ;;  %v2115_v14 = vadd.f32 %v7494_v27, %v2114_v62  ;;  %v2779_v1 = vrot.slane %v7524_v19, 1  ;;  %v2785_v62 = vrot.slane %v7530_v28, 1 }
 0x364   : > { %v7646_v41 = vld [vmem:[#allocation3 + $0x1b0] sm:$0xff] }
 0x365   : > { %2516 = vst.msk [vmem:[#allocation3 + $0x1d0] sm:$0xff] %vm1574_vm3, %v2170_v7  ;;  %v2169_v57 = vmax.f32 %v2115_v14, 0.0  ;;  %2931 = vrot.lane.b32.xlu1 %v7646_v41, %s5033_s19  ;;  %v2787_v7 = vrot.slane %v2536_v31, 1  ;;  %v2540_v14 = vld [vmem:[#allocation3 + $0x98] sm:$0x1] }
 0x366   : > { %v7651_v13 = vld [vmem:[#allocation3 + $0x1a8] sm:$0xff]  ;;  %v2556_v31 = vld [vmem:[#allocation3 + $0x118] sm:$0x1] }
 0x367   : > { %2515 = vst.msk [vmem:[#allocation3 + $0x1c8] sm:$0xff] %vm1574_vm3, %v2169_v57  ;;  %2929 = vrot.lane.b32.xlu0 %v7651_v13, %s5033_s19  ;;  %v7707_v57 = vsel %vm665_vm4, %v2779_v1, %v2780_v61  ;;  %v7755_v1 = vsel %vm665_vm4, %v2799_v60, %v2800_v56 }
 0x368   : > { %v4731_v32 = vpop.f32.mrf.mxu1 }
 0x369   : > { %v2130_v12 = vadd.f32 %v4731_v32, %v7494_v27  ;;  %v2784_v32 = vrot.slane %v7536_v54, 1 }
 0x36a   : > { %v2124_v24 = vpop.f32.mrf.mxu1 }
 0x36b   : > { %v2172_v46 = vmax.f32 %v2130_v12, 0.0  ;;  %v2125_v63 = vadd.f32 %v7494_v27, %v2124_v24  ;;  %v7713_v12 = vsel %vm665_vm4, %v2785_v62, %v2787_v7  ;;  %v2790_v24 = vrot.slane %v7542_v43, 1 }
 0x36c   : > { %v7658_v23 = vld [vmem:[#allocation3 + $0x1d0] sm:$0xff] }
 0x36d   : > { %2518 = vst.msk [vmem:[#allocation3 + $0x1f0] sm:$0xff] %vm1574_vm3, %v2172_v46  ;;  %v2171_v48 = vmax.f32 %v2125_v63, 0.0  ;;  %2935 = vrot.lane.b32.xlu1 %v7658_v23, %s5033_s19  ;;  %v2792_v46 = vrot.slane %v2540_v14, 1  ;;  %v2544_v63 = vld [vmem:[#allocation3 + $0xb8] sm:$0x1]  ;;  %v2810_v14 = vrot.slane %v7590_v35, 1 }
 0x36e   : > { %v7663_v52 = vld [vmem:[#allocation3 + $0x1c8] sm:$0xff] }
 0x36f   : > { %2517 = vst.msk [vmem:[#allocation3 + $0x1e8] sm:$0xff] %vm1574_vm3, %v2171_v48  ;;  %2933 = vrot.lane.b32.xlu0 %v7663_v52, %s5033_s19  ;;  %v7719_v48 = vsel %vm665_vm4, %v2784_v32, %v2785_v62  ;;  %v2804_v62 = vrot.slane %v7584_v50, 1  ;;  %v2812_v32 = vrot.slane %v2556_v31, 1 }
 0x370   : > { %v4734_v4 = vpop.f32.mrf.mxu1 }
 0x371   : > { %v2140_v40 = vadd.f32 %v4734_v4, %v7494_v27  ;;  %v7725_v4 = vsel %vm665_vm4, %v2790_v24, %v2792_v46 }
 0x372   : > { %v2134_v15 = vpop.f32.mrf.mxu1 }
 0x373   : > { %v2174_v0 = vmax.f32 %v2140_v40, 0.0  ;;  %v2135_v44 = vadd.f32 %v7494_v27, %v2134_v15  ;;  %v2775_v27 = vrot.slane %v7506_v36, 1  ;;  %v2795_v40 = vrot.slane %v7554_v58, 1 }
 0x374   : > { %v7670_v16 = vld [vmem:[#allocation3 + $0x1f0] sm:$0xff]  ;;  %v2797_v15 = vrot.slane %v2544_v63, 1  ;;  %v2809_v63 = vrot.slane %v7595_v47, 1 }
 0x375   : > { %2520 = vst.msk [vmem:[#allocation3 + $0x210] sm:$0xff] %vm1574_vm3, %v2174_v0  ;;  %v2173_v3 = vmax.f32 %v2135_v44, 0.0  ;;  %2939 = vrot.lane.b32.xlu1 %v7670_v16, %s5033_s19  ;;  %v7689_v11 = vsel %vm665_vm4, %v2775_v27, %v2777_v5  ;;  %v7695_v45 = vsel %vm665_vm4, %v2774_v6, %v2775_v27  ;;  %v7731_v0 = vsel %vm665_vm4, %v2789_v34, %v2790_v24  ;;  %v2552_v27 = vld [vmem:[#allocation3 + $0xf8] sm:$0x1]  ;;  %v7772_v34 = vpop.permute.xlu1 %2879 }
 0x376   : > { %v7675_v8 = vld [vmem:[#allocation3 + $0x1e8] sm:$0xff]  ;;  %v2794_v44 = vrot.slane %v7560_v29, 1  ;;  %v2560_v24 = vld [vmem:[#allocation3 + $0x138] sm:$0x1]  ;;  %9743 = vst [vmem:[#allocation26_spill] sm:$0xff] %v7772_v34 }
 0x377   : > { %9742 = vst [vmem:[#allocation20_spill] sm:$0xff] %v7675_v8  ;;  %2519 = vst.msk [vmem:[#allocation3 + $0x208] sm:$0xff] %vm1574_vm3, %v2173_v3  ;;  %2937 = vrot.lane.b32.xlu0 %v7675_v8, %s5033_s19  ;;  %v7737_v3 = vsel %vm665_vm4, %v2795_v40, %v2797_v15  ;;  %v2815_v15 = vrot.slane %v7601_v20, 1 }
 0x378   : > { %v7743_v5 = vsel %vm665_vm4, %v2794_v44, %v2795_v40  ;;  %v7775_v40 = vsel %vm665_vm4, %v2810_v14, %v2812_v32  ;;  %v7780_v44 = vpop.permute.xlu0 %2877  ;;  %v2819_v32 = vrot.slane %v7616_v37, 1 }
 0x379   : > { %2975 = vrot.lane.b32.xlu1 %v2773_v30, %s5035_s21  ;;  %v2802_v30 = vrot.slane %v2548_v38, 1  ;;  %9744 = vst [vmem:[#allocation77_spill] sm:$0xff] %v7775_v40  ;;  %v2817_v38 = vrot.slane %v2560_v24, 1  ;;  %9745 = vst [vmem:[#allocation22_spill] sm:$0xff] %v7780_v44  ;;  %v2677_v44 = vrot.slane %v7584_v50, 7 }
 0x37b   : > { %2973 = vrot.lane.b32.xlu0 %v7482_v26, %s5035_s21  ;;  %v7701_v26 = vsel %vm665_vm4, %v2780_v61, %v2782_v10  ;;  %v7749_v6 = vsel %vm665_vm4, %v2800_v56, %v2802_v30  ;;  %v2805_v61 = vrot.slane %v7578_v18, 1  ;;  %v2807_v10 = vrot.slane %v2552_v27, 1  ;;  %v2564_v56 = vld [vmem:[#allocation3 + $0x158] sm:$0x1] }
 0x37c   : > { %v7783_v30 = vsel %vm665_vm4, %v2809_v63, %v2810_v14  ;;  %v2814_v27 = vrot.slane %v7606_v9, 1  ;;  %v7789_v60 = vsel %vm665_vm4, %v2815_v15, %v2817_v38  ;;  %v2825_v38 = vrot.slane %v7622_v2, 1 }
 0x37d   : > { %2979 = vrot.lane.b32.xlu1 %v7689_v11, %s5035_s21  ;;  %v7761_v7 = vsel %vm665_vm4, %v2805_v61, %v2807_v10  ;;  %v7767_v46 = vsel %vm665_vm4, %v2804_v62, %v2805_v61  ;;  %9746 = vst [vmem:[#allocation83_spill] sm:$0xff] %v7783_v30  ;;  %9747 = vst [vmem:[#allocation24_spill] sm:$0xff] %v7789_v60  ;;  %v2820_v61 = vrot.slane %v7611_v51, 1  ;;  %v2822_v10 = vrot.slane %v2564_v56, 1  ;;  %v2568_v62 = vld [vmem:[#allocation3 + $0x178] sm:$0x1] }
 0x37e   : > { %v7797_v14 = vsel %vm665_vm4, %v2814_v27, %v2815_v15  ;;  %v2827_v56 = vrot.slane %v2568_v62, 1  ;;  %v2824_v27 = vrot.slane %v7627_v39, 1  ;;  %v2832_v62 = vrot.slane %v2572_v53, 1 }
 0x37f   : > { %2977 = vrot.lane.b32.xlu0 %v7695_v45, %s5035_s21  ;;  %9749 = vst [vmem:[#allocation25_spill] sm:$0xff] %v7797_v14  ;;  %v7805_v63 = vsel %vm665_vm4, %v2820_v61, %v2822_v10  ;;  %v7811_v15 = vsel %vm665_vm4, %v2819_v32, %v2820_v61  ;;  %v2576_v61 = vld [vmem:[#allocation3 + $0x1b8] sm:$0x1] }
 0x380   : > { %9751 = vst [vmem:[#allocation86_spill] sm:$0xff] %v7805_v63  ;;  %9752 = vst [vmem:[#allocation28_spill] sm:$0xff] %v7811_v15  ;;  %v7819_v10 = vsel %vm665_vm4, %v2825_v38, %v2827_v56  ;;  %v7827_v32 = vsel %vm665_vm4, %v2824_v27, %v2825_v38  ;;  %v2837_v53 = vrot.slane %v2576_v61, 1  ;;  %v2834_v27 = vrot.slane %v7651_v13, 1 }
 0x381   : > { %2983 = vrot.lane.b32.xlu1 %v7701_v26, %s5035_s21  ;;  %9754 = vst [vmem:[#allocation85_spill] sm:$0xff] %v7819_v10  ;;  %9756 = vst [vmem:[#allocation40_spill] sm:$0xff] %v7827_v32  ;;  %v2840_v61 = vrot.slane %v7658_v23, 1 }
 0x383   : > { %2981 = vrot.lane.b32.xlu0 %v7707_v57, %s5035_s21 }
 0x385   : > { %2987 = vrot.lane.b32.xlu1 %v7713_v12, %s5035_s21 }
 0x387   : > { %2985 = vrot.lane.b32.xlu0 %v7719_v48, %s5035_s21 }
 0x389   : > { %2991 = vrot.lane.b32.xlu1 %v7725_v4, %s5035_s21 }
 0x38b   : > { %2989 = vrot.lane.b32.xlu0 %v7731_v0, %s5035_s21 }
 0x38d   : > { %2995 = vrot.lane.b32.xlu1 %v7737_v3, %s5035_s21 }
 0x38f   : > { %2993 = vrot.lane.b32.xlu0 %v7743_v5, %s5035_s21 }
 0x391   : > { %2999 = vrot.lane.b32.xlu1 %v7749_v6, %s5035_s21 }
 0x393   : > { %2997 = vrot.lane.b32.xlu0 %v7755_v1, %s5035_s21 }
 0x395   : > { %3003 = vrot.lane.b32.xlu1 %v7761_v7, %s5035_s21 }
 0x397   : > { %3001 = vrot.lane.b32.xlu0 %v7767_v46, %s5035_s21 }
 0x399   : > { %3007 = vrot.lane.b32.xlu1 %v7775_v40, %s5035_s21 }
 0x39b   : > { %3005 = vrot.lane.b32.xlu0 %v7783_v30, %s5035_s21 }
 0x39c   : > { %v7792_v31 = vpop.permute.xlu1 %2883 }
 0x39d   : > { %9748 = vst [vmem:[#allocation32_spill] sm:$0xff] %v7792_v31  ;;  %3011 = vrot.lane.b32.xlu1 %v7789_v60, %s5035_s21 }
 0x39e   : > { %v7800_v24 = vpop.permute.xlu0 %2881 }
 0x39f   : > { %9750 = vst [vmem:[#allocation81_spill] sm:$0xff] %v7800_v24  ;;  %3009 = vrot.lane.b32.xlu0 %v7797_v14, %s5035_s21  ;;  %v2830_v14 = vrot.slane %v7634_v33, 1  ;;  %v2545_v24 = vld [vmem:[#allocation3 + $0xc0] sm:$0xff] }
 0x3a0   : > { %v7814_v60 = vpop.permute.xlu1 %2887 }
 0x3a1   : > { %3015 = vrot.lane.b32.xlu1 %v7805_v63, %s5035_s21  ;;  %9753 = vst [vmem:[#allocation29_spill] sm:$0xff] %v7814_v60  ;;  %v2829_v63 = vrot.slane %v7639_v49, 1  ;;  %v7833_v56 = vsel %vm665_vm4, %v2830_v14, %v2832_v62 }
 0x3a2   : > { %v7822_v31 = vpop.permute.xlu0 %2885  ;;  %9757 = vst [vmem:[#allocation17_spill] sm:$0xff] %v7833_v56 }
 0x3a3   : > { %3013 = vrot.lane.b32.xlu0 %v7811_v15, %s5035_s21  ;;  %9755 = vst [vmem:[#allocation31_spill] sm:$0xff] %v7822_v31  ;;  %v2835_v15 = vrot.slane %v7646_v41, 1  ;;  %v7841_v38 = vsel %vm665_vm4, %v2829_v63, %v2830_v14  ;;  %v2839_v63 = vrot.slane %v7663_v52, 1 }
 0x3a4   : > { %v7836_v60 = vpop.permute.xlu1 %2891  ;;  %9759 = vst [vmem:[#allocation33_spill] sm:$0xff] %v7841_v38 }
 0x3a5   : > { %3019 = vrot.lane.b32.xlu1 %v7819_v10, %s5035_s21  ;;  %9758 = vst [vmem:[#allocation151_spill] sm:$0xff] %v7836_v60  ;;  %v2580_v10 = vld [vmem:[#allocation3 + $0x1d8] sm:$0x1]  ;;  %v7849_v62 = vsel %vm665_vm4, %v2835_v15, %v2837_v53  ;;  %v7855_v14 = vsel %vm665_vm4, %v2834_v27, %v2835_v15  ;;  %v7871_v15 = vsel %vm665_vm4, %v2839_v63, %v2840_v61  ;;  %v2844_v27 = vrot.slane %v7675_v8, 1 }
 0x3a6   : > { %v7844_v31 = vpop.permute.xlu0 %2889  ;;  %9761 = vst [vmem:[#allocation88_spill] sm:$0xff] %v7849_v62  ;;  %9762 = vst [vmem:[#allocation153_spill] sm:$0xff] %v7855_v14 }
 0x3a7   : > { %3017 = vrot.lane.b32.xlu0 %v7827_v32, %s5035_s21  ;;  %9760 = vst [vmem:[#allocation42_spill] sm:$0xff] %v7844_v31  ;;  %v2842_v32 = vrot.slane %v2580_v10, 1  ;;  %9766 = vst [vmem:[#allocation16_spill] sm:$0xff] %v7871_v15 }
 0x3a8   : > { %v7858_v60 = vpop.permute.xlu1 %2895 }
 0x3a9   : > { %3023 = vrot.lane.b32.xlu1 %v7833_v56, %s5035_s21  ;;  %v2584_v56 = vld [vmem:[#allocation3 + $0x1f8] sm:$0x1]  ;;  %9763 = vst [vmem:[#allocation90_spill] sm:$0xff] %v7858_v60  ;;  %v7863_v53 = vsel %vm665_vm4, %v2840_v61, %v2842_v32  ;;  %v2647_v32 = vrot.slane %v7512_v59, 7 }
 0x3aa   : > { %9764 = vst [vmem:[#allocation114_spill] sm:$0xff] %v7863_v53  ;;  %v2847_v10 = vrot.slane %v2584_v56, 1  ;;  %v7866_v31 = vpop.permute.xlu0 %2893  ;;  %v2649_v56 = vrot.slane %v7506_v36, 7 }
 0x3ab   : > { %3021 = vrot.lane.b32.xlu0 %v7841_v38, %s5035_s21  ;;  %v2845_v38 = vrot.slane %v7670_v16, 1  ;;  %9765 = vst [vmem:[#allocation116_spill] sm:$0xff] %v7866_v31  ;;  %v2662_v31 = vrot.slane %v7548_v22, 7 }
 0x3ac   : > { %v7880_v16 = vpop.permute.xlu1 %2899 }
 0x3ad   : > { %3027 = vrot.lane.b32.xlu1 %v7849_v62, %s5035_s21  ;;  %v2525_v62 = vld [vmem:[#allocation3 + $0x20] sm:$0xff]  ;;  %9768 = vst [vmem:[#allocation44_spill] sm:$0xff] %v7880_v16  ;;  %v7886_v63 = vsel %vm665_vm4, %v2844_v27, %v2845_v38 }
 0x3ae   : > { %v2646_v61 = vrot.slane %v2525_v62, 7  ;;  %9769 = vst [vmem:[#allocation21_spill] sm:$0xff] %v7886_v63  ;;  %v7888_v60 = vpop.permute.xlu0 %2897  ;;  %v2533_v27 = vld [vmem:[#allocation3 + $0x60] sm:$0xff] }
 0x3af   : > { %3025 = vrot.lane.b32.xlu0 %v7855_v14, %s5035_s21  ;;  %v7878_v14 = vsel %vm665_vm4, %v2845_v38, %v2847_v10  ;;  %9770 = vst [vmem:[#allocation152_spill] sm:$0xff] %v7888_v60  ;;  %v7893_v10 = vsel %vm536_vm2, %v2647_v32, %v2649_v56  ;;  %v2654_v38 = vrot.slane %v7518_v17, 7 }
 0x3b0   : > { %9767 = vst [vmem:[#allocation35_spill] sm:$0xff] %v7878_v14  ;;  %9771 = vst [vmem:[#allocation37_spill] sm:$0xff] %v7893_v10  ;;  %v7902_v16 = vpop.permute.xlu1 %2903 }
 0x3b1   : > { %3031 = vrot.lane.b32.xlu1 %v7863_v53, %s5035_s21  ;;  %v2529_v53 = vld [vmem:[#allocation3 + $0x40] sm:$0xff]  ;;  %9773 = vst [vmem:[#allocation89_spill] sm:$0xff] %v7902_v16 }
 0x3b2   : > { %v2651_v62 = vrot.slane %v2529_v53, 7  ;;  %v7910_v60 = vpop.permute.xlu0 %2901  ;;  %v2659_v53 = vrot.slane %v7530_v28, 7  ;;  %v2537_v16 = vld [vmem:[#allocation3 + $0x80] sm:$0xff] }
 0x3b3   : > { %3029 = vrot.lane.b32.xlu0 %v7871_v15, %s5035_s21  ;;  %v2652_v15 = vrot.slane %v7524_v19, 7  ;;  %9774 = vst [vmem:[#allocation155_spill] sm:$0xff] %v7910_v60  ;;  %v2541_v60 = vld [vmem:[#allocation3 + $0xa0] sm:$0xff] }
 0x3b5   : > { %3035 = vrot.lane.b32.xlu1 %v7878_v14, %s5035_s21  ;;  %v7899_v14 = vsel %vm536_vm2, %v2646_v61, %v2647_v32  ;;  %v7907_v56 = vsel %vm536_vm2, %v2652_v15, %v2654_v38  ;;  %v7915_v32 = vsel %vm536_vm2, %v2651_v62, %v2652_v15  ;;  %v2656_v61 = vrot.slane %v2533_v27, 7 }
 0x3b6   : > { %9772 = vst [vmem:[#allocation46_spill] sm:$0xff] %v7899_v14  ;;  %v2664_v62 = vrot.slane %v7542_v43, 7  ;;  %v2661_v27 = vrot.slane %v2537_v16, 7  ;;  %v2666_v16 = vrot.slane %v2541_v60, 7  ;;  %v2674_v60 = vrot.slane %v7566_v25, 7 }
 0x3b7   : > { %3033 = vrot.lane.b32.xlu0 %v7886_v63, %s5035_s21  ;;  %v2657_v63 = vrot.slane %v7536_v54, 7  ;;  %s269_s21 = sand.u32 1, %s5021_s25  }
 0x3b8   : > { %s4451_s15 = sshll.u32 %s269_s21, 8  ;;  %s9115_s28 = scalar_lea.sflag [#allocation5], %s269_s21 }
 0x3b9   : > { %3071 = vrot.lane.b32.xlu1 %v7893_v10, %s5037_s23  ;;  %v7921_v38 = vsel %vm536_vm2, %v2657_v63, %v2659_v53  ;;  %v7924_v10 = vpop.permute.xlu1 %2907  ;;  %v7929_v15 = vsel %vm536_vm2, %v2656_v61, %v2657_v63  ;;  %v7937_v53 = vsel %vm536_vm2, %v2662_v31, %v2664_v62  ;;  %v7943_v63 = vsel %vm536_vm2, %v2661_v27, %v2662_v31  ;;  %s8845_s16 = scalar_lea.vmem [#allocation4], %s4451_s15 }
 0x3ba   : > { %9775 = vst [vmem:[#allocation92_spill] sm:$0xff] %v7924_v10  ;;  %v2667_v10 = vrot.slane %v7560_v29, 7  ;;  %v2669_v61 = vrot.slane %v7554_v58, 7  ;;  %v2671_v27 = vrot.slane %v2545_v24, 7 }
 0x3bb   : > { %3069 = vrot.lane.b32.xlu0 %v7899_v14, %s5037_s23  ;;  %v7932_v14 = vpop.permute.xlu0 %2905 }
 0x3bc   : > { %9776 = vst [vmem:[#allocation115_spill] sm:$0xff] %v7932_v14  ;;  %v7951_v62 = vsel %vm536_vm2, %v2667_v10, %v2669_v61  ;;  %v2672_v14 = vrot.slane %v7572_v21, 7  ;;  %v7959_v31 = vsel %vm536_vm2, %v2666_v16, %v2667_v10  ;;  %v2679_v16 = vrot.slane %v7578_v18, 7 }
 0x3bd   : > { %3075 = vrot.lane.b32.xlu1 %v7907_v56, %s5037_s23  ;;  %v7946_v40 = vpop.permute.xlu1 %2911  ;;  %v2684_v18 = vrot.slane %v7590_v35, 7  ;;  %v2689_v35 = vrot.slane %v7601_v20, 7  ;;  %v2694_v20 = vrot.slane %v7611_v51, 7  ;;  %v2699_v51 = vrot.slane %v7622_v2, 7 }
 0x3be   : > { %9777 = vst [vmem:[#allocation118_spill] sm:$0xff] %v7946_v40  ;;  %v2549_v40 = vld [vmem:[#allocation3 + $0xe0] sm:$0xff]  ;;  %v7965_v61 = vsel %vm536_vm2, %v2672_v14, %v2674_v60  ;;  %v7973_v10 = vsel %vm536_vm2, %v2671_v27, %v2672_v14  ;;  %v7981_v60 = vsel %vm536_vm2, %v2677_v44, %v2679_v16  ;;  %v2704_v2 = vrot.slane %v7634_v33, 7 }
 0x3bf   : > { %3073 = vrot.lane.b32.xlu0 %v7915_v32, %s5037_s23  ;;  %v7954_v30 = vpop.permute.xlu0 %2909  ;;  %9779 = vst [vmem:[#allocation39_spill] sm:$0xff] %v7965_v61  ;;  %v2676_v24 = vrot.slane %v2549_v40, 7  ;;  %9782 = vst [vmem:[#allocation154_spill] sm:$0xff] %v7981_v60  ;;  %v2557_v27 = vld [vmem:[#allocation3 + $0x120] sm:$0xff]  ;;  %v2709_v33 = vrot.slane %v7646_v41, 7  ;;  %v2714_v41 = vrot.slane %v7658_v23, 7 }
 0x3c0   : > { %9778 = vst [vmem:[#allocation19_spill] sm:$0xff] %v7954_v30  ;;  %v2553_v30 = vld [vmem:[#allocation3 + $0x100] sm:$0xff]  ;;  %v3912_v23 = vld [vmem:[%s9161_s5 + $0x38] sm:$0xff] }
 0x3c1   : > { %3079 = vrot.lane.b32.xlu1 %v7921_v38, %s5037_s23  ;;  %v7968_v55 = vpop.permute.xlu1 %2915  ;;  %v7987_v14 = vsel %vm536_vm2, %v2676_v24, %v2677_v44  ;;  %v2681_v40 = vrot.slane %v2553_v30, 7  ;;  %v2686_v30 = vrot.slane %v2557_v27, 7  ;;  %v2561_v24 = vld [vmem:[#allocation3 + $0x140] sm:$0xff] }
 0x3c2   : > { %9780 = vst [vmem:[#allocation48_spill] sm:$0xff] %v7968_v55  ;;  %v2682_v55 = vrot.slane %v7595_v47, 7  ;;  %9783 = vst [vmem:[#allocation41_spill] sm:$0xff] %v7987_v14  ;;  %v2687_v47 = vrot.slane %v7606_v9, 7  ;;  %v2692_v9 = vrot.slane %v7616_v37, 7  ;;  %v2565_v27 = vld [vmem:[#allocation3 + $0x160] sm:$0xff] }
 0x3c3   : > { %3077 = vrot.lane.b32.xlu0 %v7929_v15, %s5037_s23  ;;  %v7976_v34 = vpop.permute.xlu0 %2913  ;;  %v2697_v37 = vrot.slane %v7627_v39, 7  ;;  %v2702_v39 = vrot.slane %v7639_v49, 7  ;;  %v2707_v49 = vrot.slane %v7651_v13, 7  ;;  %v2712_v13 = vrot.slane %v7663_v52, 7 }
 0x3c4   : > { %9781 = vst [vmem:[#allocation27_spill] sm:$0xff] %v7976_v34  ;;  %v7995_v16 = vsel %vm536_vm2, %v2682_v55, %v2684_v18  ;;  %v8003_v44 = vsel %vm536_vm2, %v2681_v40, %v2682_v55  ;;  %v8011_v18 = vsel %vm536_vm2, %v2687_v47, %v2689_v35  ;;  %v8019_v55 = vsel %vm536_vm2, %v2686_v30, %v2687_v47 }
 0x3c5   : > { %3083 = vrot.lane.b32.xlu1 %v7937_v53, %s5037_s23  ;;  %v7990_v42 = vpop.permute.xlu1 %2919  ;;  %v2691_v40 = vrot.slane %v2561_v24, 7  ;;  %v8027_v35 = vsel %vm536_vm2, %v2692_v9, %v2694_v20  ;;  %v2696_v30 = vrot.slane %v2565_v27, 7  ;;  %v2569_v24 = vld [vmem:[#allocation3 + $0x180] sm:$0xff]  ;;  %v8043_v20 = vsel %vm536_vm2, %v2697_v37, %v2699_v51 }
 0x3c6   : > { %9784 = vst [vmem:[#allocation50_spill] sm:$0xff] %v7990_v42  ;;  %v2573_v27 = vld [vmem:[#allocation3 + $0x1a0] sm:$0xff]  ;;  %v8059_v51 = vsel %vm536_vm2, %v2702_v39, %v2704_v2  ;;  %v8075_v2 = vsel %vm536_vm2, %v2707_v49, %v2709_v33  ;;  %v8094_v52 = vsel %vm536_vm2, %v2712_v13, %v2714_v41  ;;  %v3911_v41 = vld [vmem:[%s9161_s5 + $0x30] sm:$0xff] }
 0x3c7   : > { %3081 = vrot.lane.b32.xlu0 %v7943_v63, %s5037_s23  ;;  %v7998_v34 = vpop.permute.xlu0 %2917  ;;  %v8035_v47 = vsel %vm536_vm2, %v2691_v40, %v2692_v9  ;;  %v8051_v9 = vsel %vm536_vm2, %v2696_v30, %v2697_v37  ;;  %v2701_v40 = vrot.slane %v2569_v24, 7  ;;  %v2706_v30 = vrot.slane %v2573_v27, 7  ;;  %v2577_v24 = vld [vmem:[#allocation3 + $0x1c0] sm:$0xff]  ;;  %9796 = vst [vmem:[#allocation54_spill] sm:$0xff] %v8094_v52 }
 0x3c8   : > { %9785 = vst [vmem:[#allocation91_spill] sm:$0xff] %v7998_v34  ;;  %v3913_v27 = vld [vmem:[%s9161_s5 + $0x40] sm:$0xff] }
 0x3c9   : > { %3087 = vrot.lane.b32.xlu1 %v7951_v62, %s5037_s23  ;;  %v8006_v42 = vpop.permute.xlu1 %2923  ;;  %v8067_v37 = vsel %vm536_vm2, %v2701_v40, %v2702_v39  ;;  %v8083_v39 = vsel %vm536_vm2, %v2706_v30, %v2707_v49  ;;  %v2711_v40 = vrot.slane %v2577_v24, 7  ;;  %4793 = vmatprep.subr.mxu0 %v3913_v27  ;;  %v9283_v24 = vrot.slane %v7675_v8, 7 }
 0x3ca   : > { %9786 = vst [vmem:[#allocation157_spill] sm:$0xff] %v8006_v42  ;;  %4794 = vmatpush3.msra.mxu0 %v3913_v27 }
 0x3cb   : > { %3085 = vrot.lane.b32.xlu0 %v7959_v31, %s5037_s23  ;;  %v8014_v34 = vpop.permute.xlu0 %2921  ;;  %4795 = vmatprep.subr.mxu0 %v3912_v23  ;;  %v8104_v30 = vsel %vm536_vm2, %v2711_v40, %v2712_v13  ;;  %v3910_v13 = vld [vmem:[%s9161_s5 + $0x28] sm:$0xff] }
 0x3cc   : > { %9787 = vst [vmem:[#allocation94_spill] sm:$0xff] %v8014_v34  ;;  %9797 = vst [vmem:[#allocation93_spill] sm:$0xff] %v8104_v30  ;;  %4796 = vmatpush3.msra.mxu0 %v3912_v23  ;;  %v3909_v23 = vld [vmem:[%s9161_s5 + $0x20] sm:$0xff] }
 0x3cd   : > { %3091 = vrot.lane.b32.xlu1 %v7965_v61, %s5037_s23  ;;  %4797 = vmatprep.subr.mxu0 %v3911_v41 }
 0x3ce   : > { %4798 = vmatpush3.msra.mxu0 %v3911_v41 }
 0x3cf   : > { %3089 = vrot.lane.b32.xlu0 %v7973_v10, %s5037_s23  ;;  %v8022_v42 = vpop.permute.xlu1 %2927  ;;  %4799 = vmatprep.subr.mxu0 %v3910_v13 }
 0x3d0   : > { %9788 = vst [vmem:[#allocation117_spill] sm:$0xff] %v8022_v42  ;;  %4800 = vmatpush3.msra.mxu0 %v3910_v13 }
 0x3d1   : > { %3095 = vrot.lane.b32.xlu1 %v7981_v60, %s5037_s23  ;;  %v8030_v34 = vpop.permute.xlu0 %2925  ;;  %4801 = vmatprep.subr.mxu0 %v3909_v23 }
 0x3d2   : > { %9789 = vst [vmem:[#allocation120_spill] sm:$0xff] %v8030_v34  ;;  %4802 = vmatpush3.msra.mxu0 %v3909_v23  ;;  %v3906_v23 = vld [vmem:[%s9161_s5 + $0x8] sm:$0xff] }
 0x3d3   : > { %3093 = vrot.lane.b32.xlu0 %v7987_v14, %s5037_s23 }
 0x3d5   : > { %3099 = vrot.lane.b32.xlu1 %v7995_v16, %s5037_s23 }
 0x3d7   : > { %3097 = vrot.lane.b32.xlu0 %v8003_v44, %s5037_s23  ;;  %v8038_v42 = vpop.permute.xlu1 %2931 }
 0x3d8   : > { %9790 = vst [vmem:[#allocation23_spill] sm:$0xff] %v8038_v42 }
 0x3d9   : > { %3103 = vrot.lane.b32.xlu1 %v8011_v18, %s5037_s23  ;;  %v8046_v34 = vpop.permute.xlu0 %2929 }
 0x3da   : > { %9791 = vst [vmem:[#allocation43_spill] sm:$0xff] %v8046_v34 }
 0x3db   : > { %3101 = vrot.lane.b32.xlu0 %v8019_v55, %s5037_s23 }
 0x3dd   : > { %3107 = vrot.lane.b32.xlu1 %v8027_v35, %s5037_s23 }
 0x3df   : > { %3105 = vrot.lane.b32.xlu0 %v8035_v47, %s5037_s23  ;;  %v8054_v42 = vpop.permute.xlu1 %2935 }
 0x3e0   : > { %9792 = vst [vmem:[#allocation52_spill] sm:$0xff] %v8054_v42 }
 0x3e1   : > { %3111 = vrot.lane.b32.xlu1 %v8043_v20, %s5037_s23  ;;  %v8062_v34 = vpop.permute.xlu0 %2933 }
 0x3e2   : > { %9793 = vst [vmem:[#allocation34_spill] sm:$0xff] %v8062_v34 }
 0x3e3   : > { %3109 = vrot.lane.b32.xlu0 %v8051_v9, %s5037_s23 }
 0x3e5   : > { %3115 = vrot.lane.b32.xlu1 %v8059_v51, %s5037_s23 }
 0x3e7   : > { %v8070_v42 = vpop.permute.xlu1 %2939  ;;  %3113 = vrot.lane.b32.xlu0 %v8067_v37, %s5037_s23 }
 0x3e8   : > { %9794 = vst [vmem:[#allocation156_spill] sm:$0xff] %v8070_v42  ;;  %v2581_v42 = vld [vmem:[#allocation3 + $0x1e0] sm:$0xff] }
 0x3e9   : > { %v8078_v34 = vpop.permute.xlu0 %2937  ;;  %3119 = vrot.lane.b32.xlu1 %v8075_v2, %s5037_s23 }
 0x3ea   : > { %9795 = vst [vmem:[#allocation45_spill] sm:$0xff] %v8078_v34  ;;  %v2716_v34 = vrot.slane %v2581_v42, 7 }
 0x3eb   : > { %v8089_v33 = vpop.permute.xlu1 %2975  ;;  %3117 = vrot.lane.b32.xlu0 %v8083_v39, %s5037_s23 }
 0x3ec   : > { %v8124_v42 = vsel %vm536_vm2, %v2716_v34, %v9283_v24  ;;  %v3907_v34 = vld [vmem:[%s9161_s5 + $0x10] sm:$0xff] }
 0x3ed   : > { %v8099_v49 = vpop.permute.xlu0 %2973  ;;  %3123 = vrot.lane.b32.xlu1 %v8094_v52, %s5037_s23  ;;  %9798 = vst [vmem:[#allocation159_spill] sm:$0xff] %v8124_v42 }
 0x3ef   : > { %v8110_v27 = vpop.permute.xlu1 %2979  ;;  %3121 = vrot.lane.b32.xlu0 %v8104_v30, %s5037_s23 }
 0x3f1   : > { %v8117_v40 = vpop.permute.xlu0 %2977  ;;  %3165 = vrot.lane.b32.xlu1 %v7512_v59, %s5039_s8  ;;  %v3908_v59 = vld [vmem:[%s9161_s5 + $0x18] sm:$0xff] }
 0x3f2   : > { %4803 = vmatprep.subr.mxu0 %v3908_v59 }
 0x3f3   : > { %v8129_v41 = vpop.permute.xlu1 %2983  ;;  %3125 = vrot.lane.b32.xlu0 %v8124_v42, %s5037_s23  ;;  %4804 = vmatpush3.msra.mxu0 %v3908_v59 }
 0x3f4   : > { %4805 = vmatprep.subr.mxu0 %v3907_v34 }
 0x3f5   : > { %v8136_v8 = vpop.permute.xlu0 %2981  ;;  %3261 = vrot.lane.b32.xlu1 %v7695_v45, %s5040_s29  ;;  %4806 = vmatpush3.msra.mxu0 %v3907_v34  ;;  %v3905_v45 = vld [vmem:[%s9161_s5] sm:$0xff] }
 0x3f6   : > { %4807 = vmatprep.subr.mxu0 %v3906_v23 }
 0x3f7   : > { %v8143_v13 = vpop.permute.xlu1 %2987  ;;  %3167 = vrot.lane.b32.xlu0 %v7506_v36, %s5039_s8  ;;  %4808 = vmatpush3.msra.mxu0 %v3906_v23 }
 0x3f8   : > { %4809 = vmatprep.subr.mxu0 %v3905_v45 }
 0x3f9   : > { %v8150_v24 = vpop.permute.xlu0 %2985  ;;  %3357 = vrot.lane.b32.xlu1 %v7915_v32, %s5041_s18  ;;  %4810 = vmatpush3.msra.mxu0 %v3905_v45 }
 0x3fb   : > { %v8157_v59 = vpop.permute.xlu1 %2991  ;;  %3263 = vrot.lane.b32.xlu0 %v7689_v11, %s5040_s29 }
 0x3fd   : > { %v8161_v36 = vpop.permute.xlu0 %2989  ;;  %3453 = vrot.lane.b32.xlu1 %v7524_v19, %s5042_s9 }
 0x3ff   : > { %v8165_v34 = vpop.permute.xlu1 %2995  ;;  %3359 = vrot.lane.b32.xlu0 %v7907_v56, %s5041_s18 }
 0x401   : > { %v8169_v23 = vpop.permute.xlu0 %2993  ;;  %3455 = vrot.lane.b32.xlu1 %v7518_v17, %s5042_s9 }
 0x403   : > { %v8173_v42 = vpop.permute.xlu1 %2999  ;;  %3169 = vrot.lane.b32.xlu0 %v7524_v19, %s5039_s8 }
 0x404   : > { %9799 = vst [vmem:[#allocation96_spill] sm:$0xff] %v8173_v42 }
 0x405   : > { %v8177_v11 = vpop.permute.xlu0 %2997  ;;  %3171 = vrot.lane.b32.xlu1 %v7518_v17, %s5039_s8 }
 0x406   : > { %9800 = vst [vmem:[#allocation119_spill] sm:$0xff] %v8177_v11 }
 0x407   : > { %v8181_v45 = vpop.permute.xlu1 %3003  ;;  %3549 = vrot.lane.b32.xlu0 %v7707_v57, %s5043_s13 }
 0x408   : > { %9801 = vst [vmem:[#allocation122_spill] sm:$0xff] %v8181_v45 }
 0x409   : > { %v8185_v52 = vpop.permute.xlu0 %3001  ;;  %3551 = vrot.lane.b32.xlu1 %v7701_v26, %s5043_s13 }
 0x40a   : > { %9802 = vst [vmem:[#allocation30_spill] sm:$0xff] %v8185_v52 }
 0x40b   : > { %v8189_v42 = vpop.permute.xlu1 %3007  ;;  %3265 = vrot.lane.b32.xlu0 %v7707_v57, %s5040_s29 }
 0x40c   : > { %9803 = vst [vmem:[#allocation47_spill] sm:$0xff] %v8189_v42 }
 0x40d   : > { %v8193_v19 = vpop.permute.xlu0 %3005  ;;  %3361 = vrot.lane.b32.xlu1 %v7929_v15, %s5041_s18 }
 0x40e   : > { %9804 = vst [vmem:[#allocation56_spill] sm:$0xff] %v8193_v19 }
 0x40f   : > { %v8197_v17 = vpop.permute.xlu1 %3011  ;;  %3267 = vrot.lane.b32.xlu0 %v7701_v26, %s5040_s29 }
 0x410   : > { %9805 = vst [vmem:[#allocation38_spill] sm:$0xff] %v8197_v17 }
 0x411   : > { %v8201_v45 = vpop.permute.xlu0 %3009  ;;  %3457 = vrot.lane.b32.xlu1 %v7536_v54, %s5042_s9 }
 0x412   : > { %9806 = vst [vmem:[#allocation158_spill] sm:$0xff] %v8201_v45 }
 0x413   : > { %v8205_v52 = vpop.permute.xlu1 %3015  ;;  %3363 = vrot.lane.b32.xlu0 %v7921_v38, %s5041_s18 }
 0x414   : > { %9807 = vst [vmem:[#allocation49_spill] sm:$0xff] %v8205_v52 }
 0x415   : > { %v8209_v57 = vpop.permute.xlu0 %3013  ;;  %3459 = vrot.lane.b32.xlu1 %v7530_v28, %s5042_s9 }
 0x416   : > { %9808 = vst [vmem:[#allocation58_spill] sm:$0xff] %v8209_v57 }
 0x417   : > { %v8213_v42 = vpop.permute.xlu1 %3019  ;;  %3173 = vrot.lane.b32.xlu0 %v7536_v54, %s5039_s8 }
 0x418   : > { %9809 = vst [vmem:[#allocation95_spill] sm:$0xff] %v8213_v42 }
 0x419   : > { %v8217_v26 = vpop.permute.xlu0 %3017  ;;  %3175 = vrot.lane.b32.xlu1 %v7530_v28, %s5039_s8 }
 0x41a   : > { %9810 = vst [vmem:[#allocation161_spill] sm:$0xff] %v8217_v26 }
 0x41b   : > { %v8221_v17 = vpop.permute.xlu1 %3023  ;;  %3553 = vrot.lane.b32.xlu0 %v7719_v48, %s5043_s13 }
 0x41c   : > { %9811 = vst [vmem:[#allocation98_spill] sm:$0xff] %v8221_v17 }
 0x41d   : > { %v8225_v52 = vpop.permute.xlu0 %3021  ;;  %3555 = vrot.lane.b32.xlu1 %v7713_v12, %s5043_s13 }
 0x41e   : > { %9812 = vst [vmem:[#allocation121_spill] sm:$0xff] %v8225_v52 }
 0x41f   : > { %v8229_v57 = vpop.permute.xlu1 %3027  ;;  %3269 = vrot.lane.b32.xlu0 %v7719_v48, %s5040_s29 }
 0x420   : > { %9813 = vst [vmem:[#allocation124_spill] sm:$0xff] %v8229_v57 }
 0x421   : > { %v8233_v54 = vpop.permute.xlu0 %3025  ;;  %3365 = vrot.lane.b32.xlu1 %v7943_v63, %s5041_s18 }
 0x422   : > { %9814 = vst [vmem:[#allocation36_spill] sm:$0xff] %v8233_v54 }
 0x423   : > { %v8237_v28 = vpop.permute.xlu1 %3031  ;;  %3271 = vrot.lane.b32.xlu0 %v7713_v12, %s5040_s29 }
 0x424   : > { %9815 = vst [vmem:[#allocation51_spill] sm:$0xff] %v8237_v28 }
 0x425   : > { %v8241_v17 = vpop.permute.xlu0 %3029  ;;  %3461 = vrot.lane.b32.xlu1 %v7548_v22, %s5042_s9 }
 0x426   : > { %9816 = vst [vmem:[#allocation60_spill] sm:$0xff] %v8241_v17 }
 0x427   : > { %v8245_v52 = vpop.permute.xlu1 %3035  ;;  %3367 = vrot.lane.b32.xlu0 %v7937_v53, %s5041_s18 }
 0x428   : > { %9817 = vst [vmem:[#allocation135_spill] sm:$0xff] %v8245_v52 }
 0x429   : > { %v8249_v48 = vpop.permute.xlu0 %3033  ;;  %3463 = vrot.lane.b32.xlu1 %v7542_v43, %s5042_s9 }
 0x42a   : > { %9818 = vst [vmem:[#allocation160_spill] sm:$0xff] %v8249_v48 }
 0x42b   : > { %v8253_v57 = vpop.permute.xlu1 %3071  ;;  %3177 = vrot.lane.b32.xlu0 %v7548_v22, %s5039_s8 }
 0x42d   : > { %v8257_v12 = vpop.permute.xlu0 %3069  ;;  %3179 = vrot.lane.b32.xlu1 %v7542_v43, %s5039_s8 }
 0x42f   : > { %v8261_v28 = vpop.permute.xlu1 %3075  ;;  %3557 = vrot.lane.b32.xlu0 %v7731_v0, %s5043_s13 }
 0x431   : > { %3559 = vrot.lane.b32.xlu1 %v7725_v4, %s5043_s13  ;;  %v8267_v48 = vpop.permute.xlu0 %3073 }
 0x433   : > { %v8269_v52 = vpop.permute.xlu1 %3079  ;;  %3273 = vrot.lane.b32.xlu0 %v7731_v0, %s5040_s29 }
 0x435   : > { %3369 = vrot.lane.b32.xlu1 %v7959_v31, %s5041_s18  ;;  %v8275_v22 = vpop.permute.xlu0 %3077 }
 0x437   : > { %v8277_v43 = vpop.permute.xlu1 %3083  ;;  %3275 = vrot.lane.b32.xlu0 %v7725_v4, %s5040_s29 }
 0x439   : > { %3465 = vrot.lane.b32.xlu1 %v7560_v29, %s5042_s9  ;;  %v8283_v17 = vpop.permute.xlu0 %3081 }
 0x43b   : > { %v8285_v54 = vpop.permute.xlu1 %3087  ;;  %3371 = vrot.lane.b32.xlu0 %v7951_v62, %s5041_s18 }
 0x43d   : > { %3467 = vrot.lane.b32.xlu1 %v7554_v58, %s5042_s9  ;;  %v8291_v0 = vpop.permute.xlu0 %3085 }
 0x43f   : > { %v8293_v42 = vpop.permute.xlu1 %3091  ;;  %3181 = vrot.lane.b32.xlu0 %v7560_v29, %s5039_s8 }
 0x441   : > { %3183 = vrot.lane.b32.xlu1 %v7554_v58, %s5039_s8  ;;  %v8299_v4 = vpop.permute.xlu0 %3089 }
 0x443   : > { %v8301_v26 = vpop.permute.xlu1 %3095  ;;  %3561 = vrot.lane.b32.xlu0 %v7743_v5, %s5043_s13 }
 0x444   : > { %9819 = vst [vmem:[#allocation53_spill] sm:$0xff] %v8301_v26 }
 0x445   : > { %3563 = vrot.lane.b32.xlu1 %v7737_v3, %s5043_s13  ;;  %v8307_v45 = vpop.permute.xlu0 %3093 }
 0x446   : > { %9820 = vst [vmem:[#allocation62_spill] sm:$0xff] %v8307_v45 }
 0x447   : > { %v8309_v19 = vpop.permute.xlu1 %3099  ;;  %3277 = vrot.lane.b32.xlu0 %v7743_v5, %s5040_s29 }
 0x448   : > { %9821 = vst [vmem:[#allocation97_spill] sm:$0xff] %v8309_v19 }
 0x449   : > { %3373 = vrot.lane.b32.xlu1 %v7973_v10, %s5041_s18  ;;  %v8315_v58 = vpop.permute.xlu0 %3097 }
 0x44a   : > { %9822 = vst [vmem:[#allocation163_spill] sm:$0xff] %v8315_v58 }
 0x44b   : > { %v8317_v29 = vpop.permute.xlu1 %3103  ;;  %3279 = vrot.lane.b32.xlu0 %v7737_v3, %s5040_s29  ;;  %v4950_v3 = vld [vmem:[#allocation3 + $0xd0] sm:$0xff] }
 0x44c   : > { %9823 = vst [vmem:[#allocation100_spill] sm:$0xff] %v8317_v29 }
 0x44d   : > { %3469 = vrot.lane.b32.xlu1 %v7572_v21, %s5042_s9  ;;  %v8323_v26 = vpop.permute.xlu0 %3101 }
 0x44e   : > { %9824 = vst [vmem:[#allocation123_spill] sm:$0xff] %v8323_v26 }
 0x44f   : > { %v8325_v45 = vpop.permute.xlu1 %3107  ;;  %3375 = vrot.lane.b32.xlu0 %v7965_v61, %s5041_s18  ;;  %v9840_v61 = vld [vmem:[#allocation22_spill] sm:$0xff] }
 0x450   : > { %9825 = vst [vmem:[#allocation180_spill] sm:$0xff] %v8325_v45 }
 0x451   : > { %3471 = vrot.lane.b32.xlu1 %v7566_v25, %s5042_s9  ;;  %v8331_v5 = vpop.permute.xlu0 %3105 }
 0x452   : > { %9826 = vst [vmem:[#allocation197_spill] sm:$0xff] %v8331_v5 }
 0x453   : > { %v8333_v19 = vpop.permute.xlu1 %3111  ;;  %3185 = vrot.lane.b32.xlu0 %v7572_v21, %s5039_s8 }
 0x454   : > { %9827 = vst [vmem:[#allocation126_spill] sm:$0xff] %v8333_v19  ;;  %v4952_v19 = vld [vmem:[#allocation3 + $0xe8] sm:$0xff] }
 0x455   : > { %3187 = vrot.lane.b32.xlu1 %v4950_v3, %s5039_s8  ;;  %v8338_v29 = vpop.permute.xlu0 %3109 }
 0x456   : > { %9828 = vst [vmem:[#allocation134_spill] sm:$0xff] %v8338_v29 }
 0x457   : > { %v8340_v26 = vpop.permute.xlu1 %3115  ;;  %3565 = vrot.lane.b32.xlu0 %v7755_v1, %s5043_s13 }
 0x458   : > { %9829 = vst [vmem:[#allocation199_spill] sm:$0xff] %v8340_v26 }
 0x459   : > { %3567 = vrot.lane.b32.xlu1 %v7749_v6, %s5043_s13  ;;  %v8346_v25 = vpop.permute.xlu0 %3113 }
 0x45a   : > { %9830 = vst [vmem:[#allocation55_spill] sm:$0xff] %v8346_v25 }
 0x45b   : > { %v8348_v45 = vpop.permute.xlu1 %3119  ;;  %3281 = vrot.lane.b32.xlu0 %v7755_v1, %s5040_s29  ;;  %v4951_v1 = vld [vmem:[#allocation3 + $0xf0] sm:$0xff] }
 0x45c   : > { %9831 = vst [vmem:[#allocation64_spill] sm:$0xff] %v8348_v45 }
 0x45d   : > { %3377 = vrot.lane.b32.xlu1 %v7987_v14, %s5041_s18  ;;  %v8354_v21 = vpop.permute.xlu0 %3117  ;;  %v9839_v14 = vld [vmem:[#allocation8_spill] sm:$0xff] }
 0x45e   : > { %9832 = vst [vmem:[#allocation137_spill] sm:$0xff] %v8354_v21 }
 0x45f   : > { %v8356_v3 = vpop.permute.xlu1 %3123  ;;  %3283 = vrot.lane.b32.xlu0 %v7749_v6, %s5040_s29 }
 0x460   : > { %9833 = vst [vmem:[#allocation162_spill] sm:$0xff] %v8356_v3  ;;  %v2521_v3 = vld [vmem:[#allocation3] sm:$0xff] }
 0x461   : > { %3473 = vrot.lane.b32.xlu1 %v7584_v50, %s5042_s9  ;;  %v8362_v26 = vpop.permute.xlu0 %3121 }
 0x462   : > { %9834 = vst [vmem:[#allocation99_spill] sm:$0xff] %v8362_v26  ;;  %v2641_v26 = vrot.slane %v2521_v3, 7 }
 0x463   : > { %v3166_v25 = vpop.permute.xlu1 %3165  ;;  %3379 = vrot.lane.b32.xlu0 %v7981_v60, %s5041_s18  ;;  %v9838_v60 = vld [vmem:[#allocation26_spill] sm:$0xff] }
 0x464   : > { %v3646_v3 = vsel %vm1574_vm3, %v9839_v14, %v9838_v60  ;;  %v4953_v14 = vld [vmem:[#allocation3 + $0x108] sm:$0xff] }
 0x465   : > { %3475 = vrot.lane.b32.xlu1 %v4951_v1, %s5042_s9  ;;  %v8367_v45 = vpop.permute.xlu0 %3125 }
 0x466   : > { %9835 = vst [vmem:[#allocation101_spill] sm:$0xff] %v8367_v45  ;;  %v9836_v45 = vld [vmem:[#allocation18_spill] sm:$0xff] }
 0x467   : > { %v3262_v21 = vpop.permute.xlu1 %3261  ;;  %3189 = vrot.lane.b32.xlu0 %v4952_v19, %s5039_s8  ;;  %v9837_v58 = vrot.slane %v9836_v45, 7 }
 0x469   : > { %3191 = vrot.lane.b32.xlu1 %v4951_v1, %s5039_s8  ;;  %v3168_v6 = vpop.permute.xlu0 %3167  ;;  %v2643_v19 = vsel %vm536_vm2, %v2641_v26, %v9837_v58 }
 0x46a   : > { %v3645_v11 = vsel %vm1574_vm3, %v2643_v19, %v9840_v61 }
 0x46b   : > { %v3358_v50 = vpop.permute.xlu1 %3357  ;;  %3569 = vrot.lane.b32.xlu0 %v7767_v46, %s5043_s13  ;;  %v3677_v45 = vsel %vm1640_vm7, %v3645_v11, %v8099_v49 }
 0x46c   : > { %v3709_v60 = vsel %vm1706_vm9, %v3677_v45, %v8257_v12  ;;  %v9842_v45 = vld [vmem:[#allocation77_spill] sm:$0xff] }
 0x46d   : > { %3571 = vrot.lane.b32.xlu1 %v7761_v7, %s5043_s13  ;;  %v3264_v29 = vpop.permute.xlu0 %3263 }
 0x46f   : > { %v3454_v5 = vpop.permute.xlu1 %3453  ;;  %3285 = vrot.lane.b32.xlu0 %v7767_v46, %s5040_s29  ;;  %v3678_v46 = vsel %vm1640_vm7, %v3646_v3, %v8089_v33 }
 0x470   : > { %v3710_v26 = vsel %vm1706_vm9, %v3678_v46, %v8253_v57  ;;  %v9841_v46 = vld [vmem:[#allocation83_spill] sm:$0xff] }
 0x471   : > { %3381 = vrot.lane.b32.xlu1 %v8003_v44, %s5041_s18  ;;  %v3360_v1 = vpop.permute.xlu0 %3359  ;;  %v3742_v58 = vsel %vm1772_vm11, %v3710_v26, %v3168_v6 }
 0x472   : > { %v3775_v49 = vsel %vm3773_vm14, %v3742_v58, %v3264_v29 }
 0x473   : > { %v3456_v30 = vpop.permute.xlu1 %3455  ;;  %3287 = vrot.lane.b32.xlu0 %v7761_v7, %s5040_s29  ;;  %v3741_v7 = vsel %vm1772_vm11, %v3709_v60, %v3166_v25  ;;  %v3808_v12 = vsel %vm3806_vm15, %v3775_v49, %v3360_v1  ;;  %v4954_v25 = vld [vmem:[#allocation3 + $0x110] sm:$0xff]  ;;  %v9845_v49 = vld [vmem:[#allocation32_spill] sm:$0xff] }
 0x474   : > { %v3774_v33 = vsel %vm3773_vm14, %v3741_v7, %v3262_v21  ;;  %v3841_v29 = vsel %vm3839_vm0, %v3808_v12, %v3456_v30  ;;  %v9843_v60 = vld [vmem:[#allocation81_spill] sm:$0xff] }
 0x475   : > { %3477 = vrot.lane.b32.xlu1 %v4953_v14, %s5042_s9  ;;  %v3170_v61 = vpop.permute.xlu0 %3169  ;;  %v3807_v57 = vsel %vm3806_vm15, %v3774_v33, %v3358_v50 }
 0x476   : > { %v3840_v19 = vsel %vm3839_vm0, %v3807_v57, %v3454_v5  ;;  %v9846_v57 = vld [vmem:[#allocation37_spill] sm:$0xff] }
 0x477   : > { %v3172_v11 = vpop.permute.xlu1 %3171  ;;  %3383 = vrot.lane.b32.xlu0 %v7995_v16, %s5041_s18  ;;  %v3648_v12 = vsel %vm1574_vm3, %v9846_v57, %v9845_v49 }
 0x479   : > { %3479 = vrot.lane.b32.xlu1 %v4954_v25, %s5042_s9  ;;  %v3550_v6 = vpop.permute.xlu0 %3549 }
 0x47a   : > { %v3873_v21 = vsel %vm3872_vm1, %v3840_v19, %v3550_v6  ;;  %v3680_v6 = vsel %vm1640_vm7, %v3648_v12, %v8110_v27  ;;  %v9849_v12 = vld [vmem:[#allocation31_spill] sm:$0xff] }
 0x47b   : > { %v3552_v3 = vpop.permute.xlu1 %3551  ;;  %3193 = vrot.lane.b32.xlu0 %v4953_v14, %s5039_s8  ;;  %4811 = vmatprep.mubr.msk.f32.mxu0 %vm3921_vm5, %v3873_v21  ;;  %v9844_v14 = vld [vmem:[#allocation46_spill] sm:$0xff] }
 0x47c   : > { %v3874_v50 = vsel %vm3872_vm1, %v3841_v29, %v3552_v3  ;;  %v3647_v7 = vsel %vm1574_vm3, %v9844_v14, %v9843_v60  ;;  %v3712_v29 = vsel %vm1706_vm9, %v3680_v6, %v8261_v28  ;;  %v4955_v3 = vld [vmem:[#allocation3 + $0x128] sm:$0xff] }
 0x47d   : > { %3195 = vrot.lane.b32.xlu1 %v4954_v25, %s5039_s8  ;;  %4812 = vmatmul.mubr.msk.f32.vlgmr.msra.gmra.mxu0 %vm3921_vm5, %v3874_v50  ;;  %v3266_v5 = vpop.permute.xlu0 %3265  ;;  %v3679_v33 = vsel %vm1640_vm7, %v3647_v7, %v8117_v40 }
 0x47e   : > { %v3711_v19 = vsel %vm1706_vm9, %v3679_v33, %v8267_v48  ;;  %v3744_v48 = vsel %vm1772_vm11, %v3712_v29, %v3172_v11  ;;  %v9848_v33 = vld [vmem:[#allocation24_spill] sm:$0xff] }
 0x47f   : > { %v3362_v1 = vpop.permute.xlu1 %3361  ;;  %3573 = vrot.lane.b32.xlu0 %v9841_v46, %s5043_s13  ;;  %v3743_v21 = vsel %vm1772_vm11, %v3711_v19, %v3170_v61  ;;  %v3649_v19 = vsel %vm1574_vm3, %v7915_v32, %v9849_v12 }
 0x480   : > { %v3776_v40 = vsel %vm3773_vm14, %v3743_v21, %v3266_v5  ;;  %v3681_v6 = vsel %vm1640_vm7, %v3649_v19, %v8136_v8  ;;  %v9850_v21 = vld [vmem:[#allocation29_spill] sm:$0xff] }
 0x481   : > { %3575 = vrot.lane.b32.xlu1 %v9842_v45, %s5043_s13  ;;  %v3268_v30 = vpop.permute.xlu0 %3267  ;;  %v3809_v27 = vsel %vm3806_vm15, %v3776_v40, %v3362_v1  ;;  %v3650_v29 = vsel %vm1574_vm3, %v7907_v56, %v9850_v21  ;;  %v3713_v40 = vsel %vm1706_vm9, %v3681_v6, %v8275_v22  ;;  %v9854_v6 = vld [vmem:[#allocation151_spill] sm:$0xff] }
 0x482   : > { %v3682_v32 = vsel %vm1640_vm7, %v3650_v29, %v8129_v41  ;;  %v3652_v21 = vsel %vm1574_vm3, %v7921_v38, %v9854_v6 }
 0x483   : > { %v3458_v26 = vpop.permute.xlu1 %3457  ;;  %3289 = vrot.lane.b32.xlu0 %v9841_v46, %s5040_s29  ;;  %v3777_v46 = vsel %vm3773_vm14, %v3744_v48, %v3268_v30 }
 0x484   : > { %v3842_v28 = vsel %vm3839_vm0, %v3809_v27, %v3458_v26  ;;  %v4957_v27 = vld [vmem:[#allocation3 + $0x148] sm:$0xff] }
 0x485   : > { %3385 = vrot.lane.b32.xlu1 %v8019_v55, %s5041_s18  ;;  %v3364_v58 = vpop.permute.xlu0 %3363 }
 0x486   : > { %v3810_v61 = vsel %vm3806_vm15, %v3777_v46, %v3364_v58  ;;  %v9847_v58 = vld [vmem:[#allocation25_spill] sm:$0xff]  ;;  %v3714_v46 = vsel %vm1706_vm9, %v3682_v32, %v8269_v52 }
 0x487   : > { %v3460_v25 = vpop.permute.xlu1 %3459  ;;  %3291 = vrot.lane.b32.xlu0 %v9842_v45, %s5040_s29  ;;  %v4956_v45 = vld [vmem:[#allocation3 + $0x130] sm:$0xff] }
 0x488   : > { %v3843_v11 = vsel %vm3839_vm0, %v3810_v61, %v3460_v25 }
 0x489   : > { %3481 = vrot.lane.b32.xlu1 %v4955_v3, %s5042_s9  ;;  %v3174_v50 = vpop.permute.xlu0 %3173 }
 0x48a   : > { %v3745_v48 = vsel %vm1772_vm11, %v3713_v40, %v3174_v50 }
 0x48b   : > { %v3176_v60 = vpop.permute.xlu1 %3175  ;;  %3387 = vrot.lane.b32.xlu0 %v8011_v18, %s5041_s18 }
 0x48c   : > { %v3746_v22 = vsel %vm1772_vm11, %v3714_v46, %v3176_v60 }
 0x48d   : > { %3483 = vrot.lane.b32.xlu1 %v4956_v45, %s5042_s9  ;;  %v3554_v5 = vpop.permute.xlu0 %3553 }
 0x48e   : > { %v3875_v14 = vsel %vm3872_vm1, %v3842_v28, %v3554_v5 }
 0x48f   : > { %v3556_v7 = vpop.permute.xlu1 %3555  ;;  %3197 = vrot.lane.b32.xlu0 %v4955_v3, %s5039_s8  ;;  %4814 = vmatprep.mubr.msk.f32.mxu0 %vm3921_vm5, %v3875_v14 }
 0x490   : > { %v3876_v30 = vsel %vm3872_vm1, %v3843_v11, %v3556_v7 }
 0x491   : > { %3199 = vrot.lane.b32.xlu1 %v4956_v45, %s5039_s8  ;;  %4815 = vmatmul.mubr.msk.f32.gmra.mxu0 %vm3921_vm5, %v3876_v30  ;;  %v3270_v1 = vpop.permute.xlu0 %3269  ;;  %v4958_v45 = vld [vmem:[#allocation3 + $0x150] sm:$0xff] }
 0x492   : > { %v3778_v8 = vsel %vm3773_vm14, %v3745_v48, %v3270_v1  ;;  %v4959_v48 = vld [vmem:[#allocation3 + $0x168] sm:$0xff] }
 0x493   : > { %v3366_v26 = vpop.permute.xlu1 %3365  ;;  %3577 = vrot.lane.b32.xlu0 %v9847_v58, %s5043_s13 }
 0x494   : > { %v3811_v41 = vsel %vm3806_vm15, %v3778_v8, %v3366_v26  ;;  %v9851_v26 = vld [vmem:[#allocation28_spill] sm:$0xff] }
 0x495   : > { %3579 = vrot.lane.b32.xlu1 %v9848_v33, %s5043_s13  ;;  %v3272_v49 = vpop.permute.xlu0 %3271 }
 0x496   : > { %v3779_v61 = vsel %vm3773_vm14, %v3746_v22, %v3272_v49 }
 0x497   : > { %v3462_v57 = vpop.permute.xlu1 %3461  ;;  %3293 = vrot.lane.b32.xlu0 %v9847_v58, %s5040_s29  ;;  %v9852_v58 = vld [vmem:[#allocation86_spill] sm:$0xff] }
 0x498   : > { %v3844_v52 = vsel %vm3839_vm0, %v3811_v41, %v3462_v57  ;;  %v9853_v57 = vld [vmem:[#allocation42_spill] sm:$0xff] }
 0x499   : > { %3389 = vrot.lane.b32.xlu1 %v8035_v47, %s5041_s18  ;;  %v3368_v25 = vpop.permute.xlu0 %3367  ;;  %v3651_v12 = vsel %vm1574_vm3, %v7929_v15, %v9853_v57  ;;  %v3684_v15 = vsel %vm1640_vm7, %v3652_v21, %v8143_v13 }
 0x49a   : > { %v3812_v50 = vsel %vm3806_vm15, %v3779_v61, %v3368_v25  ;;  %v3683_v25 = vsel %vm1640_vm7, %v3651_v12, %v8150_v24  ;;  %v3716_v32 = vsel %vm1706_vm9, %v3684_v15, %v8277_v43 }
 0x49b   : > { %v3464_v3 = vpop.permute.xlu1 %3463  ;;  %3295 = vrot.lane.b32.xlu0 %v9848_v33, %s5040_s29  ;;  %v3715_v29 = vsel %vm1706_vm9, %v3683_v25, %v8283_v17  ;;  %v4961_v25 = vld [vmem:[#allocation3 + $0x188] sm:$0xff] }
 0x49c   : > { %v3845_v60 = vsel %vm3839_vm0, %v3812_v50, %v3464_v3 }
 0x49d   : > { %3485 = vrot.lane.b32.xlu1 %v4957_v27, %s5042_s9  ;;  %v3178_v56 = vpop.permute.xlu0 %3177 }
 0x49e   : > { %v3747_v3 = vsel %vm1772_vm11, %v3715_v29, %v3178_v56  ;;  %v4960_v56 = vld [vmem:[#allocation3 + $0x170] sm:$0xff] }
 0x49f   : > { %v3180_v28 = vpop.permute.xlu1 %3179  ;;  %3391 = vrot.lane.b32.xlu0 %v8027_v35, %s5041_s18 }
 0x4a0   : > { %v3748_v17 = vsel %vm1772_vm11, %v3716_v32, %v3180_v28 }
 0x4a1   : > { %3487 = vrot.lane.b32.xlu1 %v4958_v45, %s5042_s9  ;;  %v3558_v5 = vpop.permute.xlu0 %3557 }
 0x4a2   : > { %v3877_v14 = vsel %vm3872_vm1, %v3844_v52, %v3558_v5  ;;  %v9855_v5 = vld [vmem:[#allocation40_spill] sm:$0xff] }
 0x4a3   : > { %v3560_v11 = vpop.permute.xlu1 %3559  ;;  %3201 = vrot.lane.b32.xlu0 %v4957_v27, %s5039_s8  ;;  %4817 = vmatprep.mubr.msk.f32.mxu0 %vm3921_vm5, %v3877_v14  ;;  %v9856_v14 = vld [vmem:[#allocation85_spill] sm:$0xff] }
 0x4a4   : > { %v3878_v7 = vsel %vm3872_vm1, %v3845_v60, %v3560_v11 }
 0x4a5   : > { %3203 = vrot.lane.b32.xlu1 %v4958_v45, %s5039_s8  ;;  %v3274_v30 = vpop.permute.xlu0 %3273  ;;  %4818 = vmatmul.mubr.msk.f32.gmra.mxu0 %vm3921_vm5, %v3878_v7  ;;  %v9857_v7 = vld [vmem:[#allocation116_spill] sm:$0xff] }
 0x4a6   : > { %v3780_v24 = vsel %vm3773_vm14, %v3747_v3, %v3274_v30  ;;  %v3653_v30 = vsel %vm1574_vm3, %v7943_v63, %v9857_v7 }
 0x4a7   : > { %v3370_v1 = vpop.permute.xlu1 %3369  ;;  %3581 = vrot.lane.b32.xlu0 %v9851_v26, %s5043_s13 }
 0x4a8   : > { %v3813_v13 = vsel %vm3806_vm15, %v3780_v24, %v3370_v1 }
 0x4a9   : > { %3583 = vrot.lane.b32.xlu1 %v9852_v58, %s5043_s13  ;;  %v3276_v33 = vpop.permute.xlu0 %3275 }
 0x4aa   : > { %v3781_v46 = vsel %vm3773_vm14, %v3748_v17, %v3276_v33 }
 0x4ab   : > { %v3466_v49 = vpop.permute.xlu1 %3465  ;;  %3297 = vrot.lane.b32.xlu0 %v9851_v26, %s5040_s29  ;;  %v3685_v26 = vsel %vm1640_vm7, %v3653_v30, %v8161_v36  ;;  %v4964_v30 = vld [vmem:[#allocation3 + $0x1b0] sm:$0xff] }
 0x4ac   : > { %v3846_v43 = vsel %vm3839_vm0, %v3813_v13, %v3466_v49  ;;  %v3717_v49 = vsel %vm1706_vm9, %v3685_v26, %v8291_v0 }
 0x4ad   : > { %3393 = vrot.lane.b32.xlu1 %v8051_v9, %s5041_s18  ;;  %v3372_v19 = vpop.permute.xlu0 %3371 }
 0x4ae   : > { %v3814_v27 = vsel %vm3806_vm15, %v3781_v46, %v3372_v19  ;;  %v9859_v46 = vld [vmem:[#allocation33_spill] sm:$0xff] }
 0x4af   : > { %v3468_v40 = vpop.permute.xlu1 %3467  ;;  %3299 = vrot.lane.b32.xlu0 %v9852_v58, %s5040_s29  ;;  %v9858_v58 = vld [vmem:[#allocation90_spill] sm:$0xff] }
 0x4b0   : > { %v3847_v28 = vsel %vm3839_vm0, %v3814_v27, %v3468_v40  ;;  %v3654_v33 = vsel %vm1574_vm3, %v7937_v53, %v9858_v58  ;;  %v4962_v40 = vld [vmem:[#allocation3 + $0x190] sm:$0xff] }
 0x4b1   : > { %3489 = vrot.lane.b32.xlu1 %v4959_v48, %s5042_s9  ;;  %v3182_v38 = vpop.permute.xlu0 %3181  ;;  %v3686_v63 = vsel %vm1640_vm7, %v3654_v33, %v8157_v59 }
 0x4b2   : > { %v3749_v12 = vsel %vm1772_vm11, %v3717_v49, %v3182_v38  ;;  %v3718_v19 = vsel %vm1706_vm9, %v3686_v63, %v8285_v54 }
 0x4b3   : > { %v3184_v8 = vpop.permute.xlu1 %3183  ;;  %3395 = vrot.lane.b32.xlu0 %v8043_v20, %s5041_s18 }
 0x4b4   : > { %v3750_v0 = vsel %vm1772_vm11, %v3718_v19, %v3184_v8  ;;  %v9860_v8 = vld [vmem:[#allocation17_spill] sm:$0xff]  ;;  %v9864_v19 = vld [vmem:[#allocation88_spill] sm:$0xff] }
 0x4b5   : > { %3491 = vrot.lane.b32.xlu1 %v4960_v56, %s5042_s9  ;;  %v3562_v22 = vpop.permute.xlu0 %3561 }
 0x4b6   : > { %v3879_v61 = vsel %vm3872_vm1, %v3846_v43, %v3562_v22  ;;  %v9861_v43 = vld [vmem:[#allocation152_spill] sm:$0xff] }
 0x4b7   : > { %v3564_v41 = vpop.permute.xlu1 %3563  ;;  %3205 = vrot.lane.b32.xlu0 %v4959_v48, %s5039_s8  ;;  %4820 = vmatprep.mubr.msk.f32.mxu0 %vm3921_vm5, %v3879_v61 }
 0x4b8   : > { %v3880_v50 = vsel %vm3872_vm1, %v3847_v28, %v3564_v41  ;;  %v9862_v28 = vld [vmem:[#allocation44_spill] sm:$0xff] }
 0x4b9   : > { %3207 = vrot.lane.b32.xlu1 %v4960_v56, %s5039_s8  ;;  %v3278_v52 = vpop.permute.xlu0 %3277  ;;  %4821 = vmatmul.mubr.msk.f32.gmra.mxu0 %vm3921_vm5, %v3880_v50  ;;  %v3655_v56 = vsel %vm1574_vm3, %v7959_v31, %v9861_v43  ;;  %v3656_v41 = vsel %vm1574_vm3, %v7951_v62, %v9862_v28 }
 0x4ba   : > { %v3782_v36 = vsel %vm3773_vm14, %v3749_v12, %v3278_v52  ;;  %v3687_v61 = vsel %vm1640_vm7, %v3655_v56, %v8169_v23  ;;  %v3688_v31 = vsel %vm1640_vm7, %v3656_v41, %v8165_v34  ;;  %v9863_v12 = vld [vmem:[#allocation153_spill] sm:$0xff] }
 0x4bb   : > { %v3374_v45 = vpop.permute.xlu1 %3373  ;;  %3585 = vrot.lane.b32.xlu0 %v9855_v5, %s5043_s13  ;;  %v3719_v50 = vsel %vm1706_vm9, %v3687_v61, %v8299_v4  ;;  %v9873_v61 = vld [vmem:[#allocation54_spill] sm:$0xff] }
 0x4bc   : > { %v3815_v59 = vsel %vm3806_vm15, %v3782_v36, %v3374_v45 }
 0x4bd   : > { %3587 = vrot.lane.b32.xlu1 %v9856_v14, %s5043_s13  ;;  %v3280_v60 = vpop.permute.xlu0 %3279 }
 0x4be   : > { %v3783_v6 = vsel %vm3773_vm14, %v3750_v0, %v3280_v60 }
 0x4bf   : > { %v3470_v11 = vpop.permute.xlu1 %3469  ;;  %3301 = vrot.lane.b32.xlu0 %v9855_v5, %s5040_s29  ;;  %v3720_v5 = vsel %vm1706_vm9, %v3688_v31, %v8293_v42 }
 0x4c0   : > { %v3848_v54 = vsel %vm3839_vm0, %v3815_v59, %v3470_v11  ;;  %v9867_v59 = vld [vmem:[#allocation119_spill] sm:$0xff] }
 0x4c1   : > { %3397 = vrot.lane.b32.xlu1 %v8067_v37, %s5041_s18  ;;  %v3376_v1 = vpop.permute.xlu0 %3375 }
 0x4c2   : > { %v3816_v29 = vsel %vm3806_vm15, %v3783_v6, %v3376_v1  ;;  %v9866_v6 = vld [vmem:[#allocation93_spill] sm:$0xff] }
 0x4c3   : > { %v3472_v57 = vpop.permute.xlu1 %3471  ;;  %3303 = vrot.lane.b32.xlu0 %v9856_v14, %s5040_s29  ;;  %v4963_v14 = vld [vmem:[#allocation3 + $0x1a8] sm:$0xff] }
 0x4c4   : > { %v3849_v32 = vsel %vm3839_vm0, %v3816_v29, %v3472_v57 }
 0x4c5   : > { %3493 = vrot.lane.b32.xlu1 %v4961_v25, %s5042_s9  ;;  %v3186_v53 = vpop.permute.xlu0 %3185 }
 0x4c6   : > { %v3751_v45 = vsel %vm1772_vm11, %v3719_v50, %v3186_v53  ;;  %v9865_v53 = vld [vmem:[#allocation155_spill] sm:$0xff] }
 0x4c7   : > { %v3188_v21 = vpop.permute.xlu1 %3187  ;;  %3399 = vrot.lane.b32.xlu0 %v8059_v51, %s5041_s18  ;;  %v3657_v0 = vsel %vm1574_vm3, %v7973_v10, %v9865_v53  ;;  %v4967_v53 = vld [vmem:[#allocation3 + $0x1f0] sm:$0xff] }
 0x4c8   : > { %v3752_v4 = vsel %vm1772_vm11, %v3720_v5, %v3188_v21  ;;  %v3689_v29 = vsel %vm1640_vm7, %v3657_v0, %v9867_v59  ;;  %v2719_v0 = vrot.slane %v4967_v53, 7 }
 0x4c9   : > { %3495 = vrot.lane.b32.xlu1 %v4962_v40, %s5042_s9  ;;  %v3566_v15 = vpop.permute.xlu0 %3565 }
 0x4ca   : > { %v3881_v3 = vsel %vm3872_vm1, %v3848_v54, %v3566_v15  ;;  %v9868_v54 = vld [vmem:[#allocation89_spill] sm:$0xff] }
 0x4cb   : > { %v3568_v24 = vpop.permute.xlu1 %3567  ;;  %3209 = vrot.lane.b32.xlu0 %v4961_v25, %s5039_s8  ;;  %4823 = vmatprep.mubr.msk.f32.mxu0 %vm3921_vm5, %v3881_v3  ;;  %v9870_v3 = vld [vmem:[#allocation62_spill] sm:$0xff] }
 0x4cc   : > { %v3882_v48 = vsel %vm3872_vm1, %v3849_v32, %v3568_v24  ;;  %v3721_v32 = vsel %vm1706_vm9, %v3689_v29, %v9870_v3  ;;  %v4968_v3 = vld [vmem:[#allocation3 + $0x1e8] sm:$0xff] }
 0x4cd   : > { %3211 = vrot.lane.b32.xlu1 %v4962_v40, %s5039_s8  ;;  %v3282_v38 = vpop.permute.xlu0 %3281  ;;  %4824 = vmatmul.mubr.msk.f32.gmra.mxu0 %vm3921_vm5, %v3882_v48  ;;  %v9869_v40 = vld [vmem:[#allocation39_spill] sm:$0xff]  ;;  %v9871_v48 = vld [vmem:[#allocation96_spill] sm:$0xff] }
 0x4ce   : > { %v3784_v23 = vsel %vm3773_vm14, %v3751_v45, %v3282_v38  ;;  %v3658_v15 = vsel %vm1574_vm3, %v9869_v40, %v9868_v54  ;;  %v9884_v54 = vld [vmem:[#allocation97_spill] sm:$0xff] }
 0x4cf   : > { %v3378_v17 = vpop.permute.xlu1 %3377  ;;  %3589 = vrot.lane.b32.xlu0 %v9859_v46, %s5043_s13  ;;  %v3690_v10 = vsel %vm1640_vm7, %v3658_v15, %v9871_v48 }
 0x4d0   : > { %v3817_v34 = vsel %vm3806_vm15, %v3784_v23, %v3378_v17  ;;  %v9872_v17 = vld [vmem:[#allocation53_spill] sm:$0xff] }
 0x4d1   : > { %3591 = vrot.lane.b32.xlu1 %v9860_v8, %s5043_s13  ;;  %v3284_v13 = vpop.permute.xlu0 %3283 }
 0x4d2   : > { %v3785_v60 = vsel %vm3773_vm14, %v3752_v4, %v3284_v13  ;;  %v4965_v13 = vld [vmem:[#allocation3 + $0x1c8] sm:$0xff] }
 0x4d3   : > { %v3474_v27 = vpop.permute.xlu1 %3473  ;;  %3305 = vrot.lane.b32.xlu0 %v9859_v46, %s5040_s29  ;;  %v3722_v46 = vsel %vm1706_vm9, %v3690_v10, %v9872_v17 }
 0x4d4   : > { %v3850_v42 = vsel %vm3839_vm0, %v3817_v34, %v3474_v27 }
 0x4d5   : > { %3401 = vrot.lane.b32.xlu1 %v8083_v39, %s5041_s18  ;;  %v3380_v22 = vpop.permute.xlu0 %3379 }
 0x4d6   : > { %v3818_v7 = vsel %vm3806_vm15, %v3785_v60, %v3380_v22  ;;  %v9874_v60 = vld [vmem:[#allocation16_spill] sm:$0xff] }
 0x4d7   : > { %v3476_v52 = vpop.permute.xlu1 %3475  ;;  %3307 = vrot.lane.b32.xlu0 %v9860_v8, %s5040_s29 }
 0x4d8   : > { %v3851_v58 = vsel %vm3839_vm0, %v3818_v7, %v3476_v52  ;;  %v4966_v52 = vld [vmem:[#allocation3 + $0x1d0] sm:$0xff] }
 0x4d9   : > { %3497 = vrot.lane.b32.xlu1 %v4963_v14, %s5042_s9  ;;  %v3190_v62 = vpop.permute.xlu0 %3189 }
 0x4da   : > { %v3753_v38 = vsel %vm1772_vm11, %v3721_v32, %v3190_v62 }
 0x4db   : > { %v3192_v11 = vpop.permute.xlu1 %3191  ;;  %3403 = vrot.lane.b32.xlu0 %v8075_v2, %s5041_s18 }
 0x4dc   : > { %v3754_v43 = vsel %vm1772_vm11, %v3722_v46, %v3192_v11  ;;  %v9875_v11 = vld [vmem:[#allocation114_spill] sm:$0xff] }
 0x4dd   : > { %3499 = vrot.lane.b32.xlu1 %v4964_v30, %s5042_s9  ;;  %v3570_v1 = vpop.permute.xlu0 %3569 }
 0x4de   : > { %v3883_v26 = vsel %vm3872_vm1, %v3850_v42, %v3570_v1  ;;  %v9876_v42 = vld [vmem:[#allocation115_spill] sm:$0xff] }
 0x4df   : > { %v3572_v33 = vpop.permute.xlu1 %3571  ;;  %3213 = vrot.lane.b32.xlu0 %v4963_v14, %s5039_s8  ;;  %4826 = vmatprep.mubr.msk.f32.mxu0 %vm3921_vm5, %v3883_v26  ;;  %v9878_v26 = vld [vmem:[#allocation159_spill] sm:$0xff] }
 0x4e0   : > { %v3884_v49 = vsel %vm3872_vm1, %v3851_v58, %v3572_v33  ;;  %v9879_v33 = vld [vmem:[#allocation30_spill] sm:$0xff] }
 0x4e1   : > { %3215 = vrot.lane.b32.xlu1 %v4964_v30, %s5039_s8  ;;  %v3286_v57 = vpop.permute.xlu0 %3285  ;;  %4827 = vmatmul.mubr.msk.f32.gmra.mxu0 %vm3921_vm5, %v3884_v49  ;;  %v9877_v30 = vld [vmem:[#allocation41_spill] sm:$0xff] }
 0x4e2   : > { %v3786_v8 = vsel %vm3773_vm14, %v3753_v38, %v3286_v57  ;;  %v3659_v1 = vsel %vm1574_vm3, %v9877_v30, %v9876_v42  ;;  %v9880_v57 = vld [vmem:[#allocation92_spill] sm:$0xff] }
 0x4e3   : > { %v3382_v63 = vpop.permute.xlu1 %3381  ;;  %3593 = vrot.lane.b32.xlu0 %v9863_v12, %s5043_s13  ;;  %v3691_v49 = vsel %vm1640_vm7, %v3659_v1, %v9879_v33  ;;  %v9890_v42 = vld [vmem:[#allocation56_spill] sm:$0xff]  ;;  %v9891_v1 = vld [vmem:[#allocation118_spill] sm:$0xff]  ;;  %v9892_v33 = vld [vmem:[#allocation123_spill] sm:$0xff] }
 0x4e4   : > { %v3819_v28 = vsel %vm3806_vm15, %v3786_v8, %v3382_v63  ;;  %v9881_v63 = vld [vmem:[#allocation154_spill] sm:$0xff] }
 0x4e5   : > { %3595 = vrot.lane.b32.xlu1 %v9864_v19, %s5043_s13  ;;  %v3288_v36 = vpop.permute.xlu0 %3287 }
 0x4e6   : > { %v3787_v56 = vsel %vm3773_vm14, %v3754_v43, %v3288_v36 }
 0x4e7   : > { %v3478_v25 = vpop.permute.xlu1 %3477  ;;  %3309 = vrot.lane.b32.xlu0 %v9863_v12, %s5040_s29  ;;  %v3660_v12 = vsel %vm1574_vm3, %v9881_v63, %v9880_v57  ;;  %v9893_v63 = vld [vmem:[#allocation47_spill] sm:$0xff] }
 0x4e8   : > { %v3852_v50 = vsel %vm3839_vm0, %v3819_v28, %v3478_v25 }
 0x4e9   : > { %3405 = vrot.lane.b32.xlu1 %v9866_v6, %s5041_s18  ;;  %v3384_v21 = vpop.permute.xlu0 %3383 }
 0x4ea   : > { %v3820_v41 = vsel %vm3806_vm15, %v3787_v56, %v3384_v21  ;;  %v9883_v21 = vld [vmem:[#allocation122_spill] sm:$0xff] }
 0x4eb   : > { %v3480_v24 = vpop.permute.xlu1 %3479  ;;  %3311 = vrot.lane.b32.xlu0 %v9864_v19, %s5040_s29  ;;  %v9882_v19 = vld [vmem:[#allocation163_spill] sm:$0xff]  ;;  %v3692_v59 = vsel %vm1640_vm7, %v3660_v12, %v9883_v21 }
 0x4ec   : > { %v3853_v5 = vsel %vm3839_vm0, %v3820_v41, %v3480_v24  ;;  %v3723_v36 = vsel %vm1706_vm9, %v3691_v49, %v9882_v19  ;;  %v3724_v40 = vsel %vm1706_vm9, %v3692_v59, %v9884_v54  ;;  %v9885_v24 = vld [vmem:[#allocation20_spill] sm:$0xff] }
 0x4ed   : > { %3501 = vrot.lane.b32.xlu1 %v4965_v13, %s5042_s9  ;;  %v3194_v27 = vpop.permute.xlu0 %3193  ;;  %v9886_v48 = vrot.slane %v9885_v24, 7 }
 0x4ee   : > { %v3755_v29 = vsel %vm1772_vm11, %v3723_v36, %v3194_v27  ;;  %v9894_v36 = vld [vmem:[#allocation100_spill] sm:$0xff] }
 0x4ef   : > { %v3196_v22 = vpop.permute.xlu1 %3195  ;;  %3407 = vrot.lane.b32.xlu0 %v9873_v61, %s5041_s18  ;;  %v8697_v10 = vsel %vm536_vm2, %v9886_v48, %v2719_v0  ;;  %v2587_v0 = vld [vmem:[#allocation3 + $0x210] sm:$0xff] }
 0x4f0   : > { %v3756_v38 = vsel %vm1772_vm11, %v3724_v40, %v3196_v22 }
 0x4f1   : > { %3503 = vrot.lane.b32.xlu1 %v4966_v52, %s5042_s9  ;;  %v3574_v31 = vpop.permute.xlu0 %3573 }
 0x4f2   : > { %v3885_v45 = vsel %vm3872_vm1, %v3852_v50, %v3574_v31  ;;  %v9887_v50 = vld [vmem:[#allocation21_spill] sm:$0xff] }
 0x4f3   : > { %v3576_v23 = vpop.permute.xlu1 %3575  ;;  %3217 = vrot.lane.b32.xlu0 %v4965_v13, %s5039_s8  ;;  %4829 = vmatprep.mubr.msk.f32.mxu0 %vm3921_vm5, %v3885_v45 }
 0x4f4   : > { %v3886_v14 = vsel %vm3872_vm1, %v3853_v5, %v3576_v23  ;;  %v2585_v5 = vld [vmem:[#allocation3 + $0x200] sm:$0xff]  ;;  %v2586_v23 = vld [vmem:[#allocation3 + $0x208] sm:$0xff] }
 0x4f5   : > { %3219 = vrot.lane.b32.xlu1 %v4966_v52, %s5039_s8  ;;  %v3290_v62 = vpop.permute.xlu0 %3289  ;;  %4830 = vmatmul.mubr.msk.f32.gmra.mxu0 %vm3921_vm5, %v3886_v14 }
 0x4f6   : > { %v3788_v15 = vsel %vm3773_vm14, %v3755_v29, %v3290_v62  ;;  %v2852_v62 = vrot.slane %v2585_v5, 7 }
 0x4f7   : > { %v3386_v4 = vpop.permute.xlu1 %3385  ;;  %3597 = vrot.lane.b32.xlu0 %v9874_v60, %s5043_s13 }
 0x4f8   : > { %v3821_v8 = vsel %vm3806_vm15, %v3788_v15, %v3386_v4  ;;  %v2853_v4 = vrot.slane %v2586_v23, 7  ;;  %v2855_v15 = vrot.slane %v2587_v0, 7 }
 0x4f9   : > { %3599 = vrot.lane.b32.xlu1 %v9875_v11, %s5043_s13  ;;  %v3292_v34 = vpop.permute.xlu0 %3291 }
 0x4fa   : > { %v3789_v17 = vsel %vm3773_vm14, %v3756_v38, %v3292_v34  ;;  %v9889_v34 = vld [vmem:[#allocation35_spill] sm:$0xff]  ;;  %v2854_v19 = vsel %vm536_vm2, %v2852_v62, %v2853_v4  ;;  %v2856_v48 = vsel %vm536_vm2, %v2853_v4, %v2855_v15  ;;  %v9896_v62 = vld [vmem:[#allocation158_spill] sm:$0xff] }
 0x4fb   : > { %v3482_v7 = vpop.permute.xlu1 %3481  ;;  %3313 = vrot.lane.b32.xlu0 %v9874_v60, %s5040_s29  ;;  %v9888_v60 = vld [vmem:[#allocation19_spill] sm:$0xff] }
 0x4fc   : > { %v3854_v27 = vsel %vm3839_vm0, %v3821_v8, %v3482_v7  ;;  %v2858_v8 = vrot.slane %v2586_v23, 1 }
 0x4fd   : > { %3409 = vrot.lane.b32.xlu1 %v9878_v26, %s5041_s18  ;;  %v3388_v58 = vpop.permute.xlu0 %3387 }
 0x4fe   : > { %v3822_v13 = vsel %vm3806_vm15, %v3789_v17, %v3388_v58  ;;  %v3662_v58 = vsel %vm1574_vm3, %v7995_v16, %v9891_v1 }
 0x4ff   : > { %v3484_v25 = vpop.permute.xlu1 %3483  ;;  %3315 = vrot.lane.b32.xlu0 %v9875_v11, %s5040_s29  ;;  %v3661_v11 = vsel %vm1574_vm3, %v8003_v44, %v9888_v60  ;;  %v3694_v44 = vsel %vm1640_vm7, %v3662_v58, %v9893_v63  ;;  %v9900_v63 = vld [vmem:[#allocation180_spill] sm:$0xff] }
 0x500   : > { %v3855_v28 = vsel %vm3839_vm0, %v3822_v13, %v3484_v25  ;;  %v3693_v30 = vsel %vm1640_vm7, %v3661_v11, %v9890_v42  ;;  %v3726_v25 = vsel %vm1706_vm9, %v3694_v44, %v9894_v36  ;;  %v9898_v42 = vld [vmem:[#allocation197_spill] sm:$0xff] }
 0x501   : > { %3505 = vrot.lane.b32.xlu1 %v4968_v3, %s5042_s9  ;;  %v3198_v32 = vpop.permute.xlu0 %3197  ;;  %v3725_v49 = vsel %vm1706_vm9, %v3693_v30, %v9892_v33 }
 0x502   : > { %v3757_v12 = vsel %vm1772_vm11, %v3725_v49, %v3198_v32 }
 0x503   : > { %v3200_v46 = vpop.permute.xlu1 %3199  ;;  %3411 = vrot.lane.b32.xlu0 %v8697_v10, %s5041_s18 }
 0x504   : > { %v3758_v21 = vsel %vm1772_vm11, %v3726_v25, %v3200_v46 }
 0x505   : > { %3221 = vrot.lane.b32.xlu1 %v4968_v3, %s5039_s8  ;;  %v3578_v43 = vpop.permute.xlu0 %3577 }
 0x506   : > { %v3887_v56 = vsel %vm3872_vm1, %v3854_v27, %v3578_v43  ;;  %v2859_v27 = vrot.slane %v2587_v0, 1 }
 0x507   : > { %v3580_v22 = vpop.permute.xlu1 %3579  ;;  %3127 = vrot.lane.b32.xlu0 %v8697_v10, %s5037_s23  ;;  %4832 = vmatprep.mubr.msk.f32.mxu0 %vm3921_vm5, %v3887_v56 }
 0x508   : > { %v3888_v41 = vsel %vm3872_vm1, %v3855_v28, %v3580_v22  ;;  %v2860_v56 = vsel %vm665_vm4, %v2858_v8, %v2859_v27  ;;  %v2588_v22 = vld [vmem:[#allocation3 + $0x218] sm:$0x1] }
 0x509   : > { %3601 = vrot.lane.b32.xlu1 %v9887_v50, %s5043_s13  ;;  %v3294_v52 = vpop.permute.xlu0 %3293  ;;  %4833 = vmatmul.mubr.msk.f32.gmra.mxu0 %vm3921_vm5, %v3888_v41 }
 0x50b   : > { %v3390_v31 = vpop.permute.xlu1 %3389  ;;  %3507 = vrot.lane.b32.xlu0 %v4967_v53, %s5042_s9 }
 0x50d   : > { %3317 = vrot.lane.b32.xlu1 %v9887_v50, %s5040_s29  ;;  %v3296_v45 = vpop.permute.xlu0 %3295  ;;  %v2590_v50 = vld [vmem:[#allocation3 + $0x228] sm:$0xff] }
 0x50e   : > { %v3791_v59 = vsel %vm3773_vm14, %v3758_v21, %v3296_v45  ;;  %v9895_v45 = vld [vmem:[#allocation27_spill] sm:$0xff]  ;;  %v2867_v60 = vrot.slane %v2590_v50, 7 }
 0x50f   : > { %v3486_v14 = vpop.permute.xlu1 %3485  ;;  %3223 = vrot.lane.b32.xlu0 %v4967_v53, %s5039_s8  ;;  %v3790_v53 = vsel %vm3773_vm14, %v3757_v12, %v3294_v52  ;;  %v2591_v52 = vld [vmem:[#allocation3 + $0x230] sm:$0xff]  ;;  %v3663_v5 = vsel %vm1574_vm3, %v8019_v55, %v9895_v45  ;;  %v9899_v55 = vld [vmem:[#allocation38_spill] sm:$0xff] }
 0x510   : > { %v3823_v54 = vsel %vm3806_vm15, %v3790_v53, %v3390_v31  ;;  %v2861_v31 = vrot.slane %v2588_v22, 1  ;;  %v3695_v4 = vsel %vm1640_vm7, %v3663_v5, %v9896_v62  ;;  %v2869_v11 = vrot.slane %v2591_v52, 7  ;;  %v9901_v22 = vld [vmem:[#allocation91_spill] sm:$0xff]  ;;  %v9904_v62 = vld [vmem:[#allocation134_spill] sm:$0xff] }
 0x511   : > { %3319 = vrot.lane.b32.xlu1 %v9889_v34, %s5040_s29  ;;  %v3392_v7 = vpop.permute.xlu0 %3391  ;;  %v3856_v3 = vsel %vm3839_vm0, %v3823_v54, %v3486_v14  ;;  %v2589_v14 = vld [vmem:[#allocation3 + $0x220] sm:$0xff]  ;;  %v3727_v30 = vsel %vm1706_vm9, %v3695_v4, %v9898_v42  ;;  %v2873_v15 = vrot.slane %v2591_v52, 1 }
 0x512   : > { %v3824_v40 = vsel %vm3806_vm15, %v3791_v59, %v3392_v7  ;;  %v2862_v49 = vsel %vm665_vm4, %v2859_v27, %v2861_v31  ;;  %v2870_v36 = vsel %vm536_vm2, %v2867_v60, %v2869_v11  ;;  %v9902_v31 = vld [vmem:[#allocation58_spill] sm:$0xff]  ;;  %v9905_v11 = vld [vmem:[#allocation49_spill] sm:$0xff] }
 0x513   : > { %v3488_v57 = vpop.permute.xlu1 %3487  ;;  %3603 = vrot.lane.b32.xlu0 %v9889_v34, %s5043_s13  ;;  %v9897_v34 = vld [vmem:[#allocation48_spill] sm:$0xff] }
 0x514   : > { %v3857_v38 = vsel %vm3839_vm0, %v3824_v40, %v3488_v57  ;;  %v3664_v7 = vsel %vm1574_vm3, %v8011_v18, %v9897_v34  ;;  %v2866_v57 = vrot.slane %v2589_v14, 7 }
 0x515   : > { %3129 = vrot.lane.b32.xlu1 %v2854_v19, %s5037_s23  ;;  %v3202_v16 = vpop.permute.xlu0 %3201  ;;  %v3696_v58 = vsel %vm1640_vm7, %v3664_v7, %v9899_v55 }
 0x516   : > { %v3759_v33 = vsel %vm1772_vm11, %v3727_v30, %v3202_v16  ;;  %v3728_v44 = vsel %vm1706_vm9, %v3696_v58, %v9900_v63  ;;  %v2592_v16 = vld [vmem:[#allocation3 + $0x238] sm:$0x1]  ;;  %v2868_v59 = vsel %vm536_vm2, %v2866_v57, %v2867_v60 }
 0x517   : > { %v3204_v29 = vpop.permute.xlu1 %3203  ;;  %3413 = vrot.lane.b32.xlu0 %v2854_v19, %s5041_s18  ;;  %v9906_v30 = vld [vmem:[#allocation126_spill] sm:$0xff] }
 0x518   : > { %v3760_v19 = vsel %vm1772_vm11, %v3728_v44, %v3204_v29 }
 0x519   : > { %3509 = vrot.lane.b32.xlu1 %v2586_v23, %s5042_s9  ;;  %v3582_v32 = vpop.permute.xlu0 %3581 }
 0x51a   : > { %v3889_v24 = vsel %vm3872_vm1, %v3856_v3, %v3582_v32  ;;  %v2875_v3 = vrot.slane %v2592_v16, 1 }
 0x51b   : > { %v3584_v17 = vpop.permute.xlu1 %3583  ;;  %3415 = vrot.lane.b32.xlu0 %v2856_v48, %s5041_s18  ;;  %4835 = vmatprep.mubr.msk.f32.mxu0 %vm3921_vm5, %v3889_v24 }
 0x51c   : > { %v3890_v46 = vsel %vm3872_vm1, %v3857_v38, %v3584_v17  ;;  %v2872_v38 = vrot.slane %v2590_v50, 1 }
 0x51d   : > { %3225 = vrot.lane.b32.xlu1 %v2586_v23, %s5039_s8  ;;  %v3298_v13 = vpop.permute.xlu0 %3297  ;;  %4836 = vmatmul.mubr.msk.f32.gmra.mxu0 %vm3921_vm5, %v3890_v46  ;;  %v2876_v46 = vsel %vm665_vm4, %v2873_v15, %v2875_v3 }
 0x51e   : > { %v3792_v12 = vsel %vm3773_vm14, %v3759_v33, %v3298_v13  ;;  %v2874_v13 = vsel %vm665_vm4, %v2872_v38, %v2873_v15 }
 0x51f   : > { %v3394_v43 = vpop.permute.xlu1 %3393  ;;  %3131 = vrot.lane.b32.xlu0 %v2856_v48, %s5037_s23  ;;  %s5044_s23 = smov [#allocation4]  }
 0x521   : > { %3605 = vrot.lane.b32.xlu1 %v2860_v56, %s5043_s13  ;;  %v3300_v28 = vpop.permute.xlu0 %3299 }
 0x522   : > { %v3793_v25 = vsel %vm3773_vm14, %v3760_v19, %v3300_v28  ;;  %v8805_v28 = vld [vmem:[%s9160_s4] ss:$0 sm:$0xff] }
 0x523   : > { %v3490_v41 = vpop.permute.xlu1 %3489  ;;  %3511 = vrot.lane.b32.xlu0 %v2587_v0, %s5042_s9 }
 0x525   : > { %3321 = vrot.lane.b32.xlu1 %v2860_v56, %s5040_s29  ;;  %v3396_v23 = vpop.permute.xlu0 %3395 }
 0x526   : > { %v3826_v21 = vsel %vm3806_vm15, %v3793_v25, %v3396_v23  ;;  %v9903_v23 = vld [vmem:[#allocation50_spill] sm:$0xff] }
 0x527   : > { %v3492_v1 = vpop.permute.xlu1 %3491  ;;  %3227 = vrot.lane.b32.xlu0 %v2587_v0, %s5039_s8  ;;  %v3825_v0 = vsel %vm3806_vm15, %v3792_v12, %v3394_v43  ;;  %v4747_v43 = vpop.f32.mrf.mxu1  ;;  %v3666_v14 = vsel %vm1574_vm3, %v8027_v35, %v9903_v23  ;;  %s4973_s8 = sshll.u32 %s5044_s23, 4  ;;  %s4974_s8 = int_to_ptr.vmem [resolvable:$false] %s4973_s8 }
 0x528   : > { %v3858_v54 = vsel %vm3839_vm0, %v3825_v0, %v3490_v41  ;;  %v3859_v32 = vsel %vm3839_vm0, %v3826_v21, %v3492_v1  ;;  %v3665_v41 = vsel %vm1574_vm3, %v8035_v47, %v9901_v22  ;;  %v2262_v5 = vadd.f32 %v4747_v43, %v8805_v28  ;;  %v8822_v47 = vld [vmem:[%s9162_s6] ss:$0 sm:$0xff]  ;;  %v9908_v43 = vld [vmem:[#allocation161_spill] sm:$0xff] }
 0x529   : > { %3323 = vrot.lane.b32.xlu1 %v2862_v49, %s5040_s29  ;;  %v3206_v18 = vpop.permute.xlu0 %3205  ;;  %v3697_v45 = vsel %vm1640_vm7, %v3665_v41, %v9902_v31  ;;  %v3698_v34 = vsel %vm1640_vm7, %v3666_v14, %v9905_v11  ;;  %v9909_v41 = vld [vmem:[#allocation157_spill] sm:$0xff]  ;;  %s4975_s29 = scalar_lea.vmem %s4974_s8, 8192 }
 0x52a   : > { %v3729_v4 = vsel %vm1706_vm9, %v3697_v45, %v9904_v62  ;;  %v3730_v35 = vsel %vm1706_vm9, %v3698_v34, %v9906_v30  ;;  %v4244_v57 = vsel %vm1574_vm3, %v2262_v5, 0.0  ;;  %v9911_v5 = vld [vmem:[#allocation95_spill] sm:$0xff] }
 0x52b   : > { %v3208_v53 = vpop.permute.xlu1 %3207  ;;  %3607 = vrot.lane.b32.xlu0 %v2862_v49, %s5043_s13  ;;  %v3761_v7 = vsel %vm1772_vm11, %v3729_v4, %v3206_v18  ;;  %v9912_v62 = vld [vmem:[#allocation199_spill] sm:$0xff] }
 0x52c   : > { %v3762_v33 = vsel %vm1772_vm11, %v3730_v35, %v3208_v53 }
 0x52d   : > { %3419 = vrot.lane.b32.xlu1 %v2870_v36, %s5041_s18  ;;  %v3586_v40 = vpop.permute.xlu0 %3585 }
 0x52e   : > { %v3891_v29 = vsel %vm3872_vm1, %v3858_v54, %v3586_v40 }
 0x52f   : > { %v3588_v24 = vpop.permute.xlu1 %3587  ;;  %3417 = vrot.lane.b32.xlu0 %v2868_v59, %s5041_s18  ;;  %4838 = vmatprep.mubr.msk.f32.mxu0 %vm3921_vm5, %v3891_v29  ;;  %s4385_s18 = sshll.u32 %s8845_s16, 4  ;;  %s9110_s18 = int_to_ptr.vmem [resolvable:$true] %s4385_s18 }
 0x530   : > { %v3892_v48 = vsel %vm3872_vm1, %v3859_v32, %v3588_v24  ;;  %p4976_p0 = scmp.lt.s32.totalorder %s9110_s18, %s4974_s8 }
 0x531   : > { %3515 = vrot.lane.b32.xlu1 %v2591_v52, %s5042_s9  ;;  %v3302_v17 = vpop.permute.xlu0 %3301  ;;  %4839 = vmatmul.mubr.msk.f32.gmra.mxu0 %vm3921_vm5, %v3892_v48  ;;  %v2256_v52 = vpop.f32.mrf.mxu1 }
 0x532   : > { %v2257_v42 = vadd.f32 %v8805_v28, %v2256_v52  ;;  %v3794_v1 = vsel %vm3773_vm14, %v3761_v7, %v3302_v17  ;;  %v9910_v52 = vld [vmem:[#allocation55_spill] sm:$0xff] }
 0x533   : > { %v3398_v8 = vpop.permute.xlu1 %3397  ;;  %3513 = vrot.lane.b32.xlu0 %v2590_v50, %s5042_s9  ;;  %v4750_v38 = vpop.f32.mrf.mxu1  ;;  %s9107_s9 = scalar_lea.hbm %s9163_s7, %s4561_s17 }
 0x534   : > { %v3827_v18 = vsel %vm3806_vm15, %v3794_v1, %v3398_v8  ;;  %v4243_v16 = vsel %vm1574_vm3, %v2257_v42, 0.0  ;;  %v2272_v22 = vadd.f32 %v4750_v38, %v8805_v28 }
 0x535   : > { %3611 = vrot.lane.b32.xlu1 %v2876_v46, %s5043_s13  ;;  %v3304_v27 = vpop.permute.xlu0 %3303  ;;  %v9907_v46 = vld [vmem:[#allocation94_spill] sm:$0xff] }
 0x536   : > { %v3795_v63 = vsel %vm3773_vm14, %v3762_v33, %v3304_v27  ;;  %v3667_v8 = vsel %vm1574_vm3, %v8051_v9, %v9907_v46  ;;  %v2266_v27 = vpop.f32.mrf.mxu1  ;;  %v4246_v42 = vsel %vm1574_vm3, %v2272_v22, 0.0 }
 0x537   : > { %v3494_v56 = vpop.permute.xlu1 %3493  ;;  %3609 = vrot.lane.b32.xlu0 %v2874_v13, %s5043_s13  ;;  %v2267_v14 = vadd.f32 %v8805_v28, %v2266_v27  ;;  %s4969_s13 = scalar_lea.vmem %s9110_s18, 4096 }
 0x538   : > { %v3860_v53 = vsel %vm3839_vm0, %v3827_v18, %v3494_v56  ;;  %v3699_v56 = vsel %vm1640_vm7, %v3667_v8, %v9908_v43  ;;  %v9916_v8 = vld [vmem:[#allocation137_spill] sm:$0xff]  ;;  %v9917_v43 = vld [vmem:[#allocation98_spill] sm:$0xff]  ;;  %p4970_p11 = scmp.ne.s32.totalorder %s9110_s18, %s4969_s13  ;;  %p4977_p1 = scmp.lt.s32.totalorder %s4975_s29, %s4969_s13 }
 0x539   : > { %v3400_v50 = vpop.permute.xlu0 %3399  ;;  %v3731_v31 = vsel %vm1706_vm9, %v3699_v56, %v9910_v52 }
 0x53a   : > { %v3828_v19 = vsel %vm3806_vm15, %v3795_v63, %v3400_v50  ;;  %v3668_v50 = vsel %vm1574_vm3, %v8043_v20, %v9909_v41  ;;  %v9918_v41 = vld [vmem:[#allocation64_spill] sm:$0xff]  ;;  %p4971_p12 = pnand %p4970_p11, %p5124_p5  ;;  %p4978_p2 = por %p4977_p1, %p4976_p0 }
 0x53b   : > { %v3496_v60 = vpop.permute.xlu1 %3495  ;;  %v3700_v23 = vsel %vm1640_vm7, %v3668_v50, %v9911_v5 }
 0x53c   : > { %v3861_v40 = vsel %vm3839_vm0, %v3828_v19, %v3496_v60  ;;  %v3732_v4 = vsel %vm1706_vm9, %v3700_v23, %v9912_v62  ;;  %p4972_p13 = pneg %p4971_p12 }
 0x53d   : > { %v4813_v55 = vpop.f32.mrf.mxu0  ;;  %v3210_v58 = vpop.permute.xlu0 %3209 }
 0x53e   : > { %v4090_v49 = vadd.f32 %v4813_v55, %v8822_v47  ;;  %v3763_v9 = vsel %vm1772_vm11, %v3731_v31, %v3210_v58  ;;  %p4979_p3 = pnand %p4978_p2, %p4972_p13 }
 0x53f   : > { %v3212_v44 = vpop.permute.xlu1 %3211  ;;  %v4084_v12 = vpop.f32.mrf.mxu0 }
 0x540   : > { %v4276_v36 = vadd.f32 %v4244_v57, %v4090_v49  ;;  %v4085_v25 = vadd.f32 %v8822_v47, %v4084_v12  ;;  %v3764_v20 = vsel %vm1772_vm11, %v3732_v4, %v3212_v44  ;;  %v4245_v57 = vsel %vm1574_vm3, %v2267_v14, 0.0 }
 0x541   : > { %v3590_v0 = vpop.permute.xlu0 %3589 }
 0x542   : > { %v4308_v21 = vmax.f32 %v4276_v36, 0.0  ;;  %v4275_v59 = vadd.f32 %v4243_v16, %v4085_v25  ;;  %v3893_v54 = vsel %vm3872_vm1, %v3860_v53, %v3590_v0 }
 0x543   : > { %v3592_v29 = vpop.permute.xlu1 %3591  ;;  %4841 = vmatprep.mubr.msk.f32.mxu0 %vm3921_vm5, %v3893_v54  ;;  %v4753_v54 = vpop.f32.mrf.mxu1 }
 0x544   : > { %4340 = vst [vmem:[%s8845_s16 + $0x8] sm:$0xff] %v4308_v21  ;;  %v4307_v15 = vmax.f32 %v4275_v59, 0.0  ;;  %v3894_v3 = vsel %vm3872_vm1, %v3861_v40, %v3592_v29  ;;  %v9913_v29 = vld [vmem:[#allocation120_spill] sm:$0xff]  ;;  %v2282_v38 = vadd.f32 %v4753_v54, %v8805_v28 }
 0x545   : > { %v3306_v32 = vpop.permute.xlu0 %3305  ;;  %4842 = vmatmul.mubr.msk.f32.gmra.mxu0 %vm3921_vm5, %v3894_v3 }
 0x546   : > { %4339 = vst [vmem:[%s8845_s16] sm:$0xff] %v4307_v15  ;;  %v3796_v60 = vsel %vm3773_vm14, %v3763_v9, %v3306_v32  ;;  %v3669_v15 = vsel %vm1574_vm3, %v8067_v37, %v9913_v29  ;;  %v2276_v32 = vpop.f32.mrf.mxu1  ;;  %v4248_v23 = vsel %vm1574_vm3, %v2282_v38, 0.0 }
 0x547   : > { %v3402_v24 = vpop.permute.xlu1 %3401  ;;  %v2277_v22 = vadd.f32 %v8805_v28, %v2276_v32 }
 0x548   : > { %v3829_v55 = vsel %vm3806_vm15, %v3796_v60, %v3402_v24  ;;  %v9914_v24 = vld [vmem:[#allocation121_spill] sm:$0xff] }
 0x549   : > { %v3308_v48 = vpop.permute.xlu0 %3307 }
 0x54a   : > { %v3797_v30 = vsel %vm3773_vm14, %v3764_v20, %v3308_v48  ;;  %v3701_v48 = vsel %vm1640_vm7, %v3669_v15, %v9914_v24  ;;  %v4247_v20 = vsel %vm1574_vm3, %v2277_v22, 0.0 }
 0x54b   : > { %v3498_v17 = vpop.permute.xlu1 %3497 }
 0x54c   : > { %v3862_v63 = vsel %vm3839_vm0, %v3829_v55, %v3498_v17  ;;  %v9915_v17 = vld [vmem:[#allocation117_spill] sm:$0xff] }
 0x54d   : > { %v3404_v13 = vpop.permute.xlu0 %3403  ;;  %v3670_v46 = vsel %vm1574_vm3, %v8059_v51, %v9915_v17 }
 0x54e   : > { %v3830_v58 = vsel %vm3806_vm15, %v3797_v30, %v3404_v13  ;;  %v3733_v13 = vsel %vm1706_vm9, %v3701_v48, %v9916_v8  ;;  %v3702_v56 = vsel %vm1640_vm7, %v3670_v46, %v9917_v43 }
 0x54f   : > { %v3500_v45 = vpop.permute.xlu1 %3499  ;;  %v3734_v50 = vsel %vm1706_vm9, %v3702_v56, %v9918_v41 }
 0x550   : > { %v3863_v36 = vsel %vm3839_vm0, %v3830_v58, %v3500_v45 }
 0x551   : > { %v4816_v11 = vpop.f32.mrf.mxu0  ;;  %v3214_v34 = vpop.permute.xlu0 %3213 }
 0x552   : > { %v4100_v7 = vadd.f32 %v4816_v11, %v8822_v47  ;;  %v3765_v37 = vsel %vm1772_vm11, %v3733_v13, %v3214_v34 }
 0x553   : > { %v3216_v35 = vpop.permute.xlu1 %3215  ;;  %v4094_v1 = vpop.f32.mrf.mxu0 }
 0x554   : > { %v4278_v33 = vadd.f32 %v4246_v42, %v4100_v7  ;;  %v4095_v49 = vadd.f32 %v8822_v47, %v4094_v1  ;;  %v3766_v51 = vsel %vm1772_vm11, %v3734_v50, %v3216_v35  ;;  %v9922_v50 = vld [vmem:[#allocation23_spill] sm:$0xff] }
 0x555   : > { %v3594_v44 = vpop.permute.xlu0 %3593 }
 0x556   : > { %v4310_v12 = vmax.f32 %v4278_v33, 0.0  ;;  %v4277_v18 = vadd.f32 %v4245_v57, %v4095_v49  ;;  %v3895_v19 = vsel %vm3872_vm1, %v3862_v63, %v3594_v44 }
 0x557   : > { %v3596_v25 = vpop.permute.xlu1 %3595  ;;  %4844 = vmatprep.mubr.msk.f32.mxu0 %vm3921_vm5, %v3895_v19 }
 0x558   : > { %4342 = vst [vmem:[%s8845_s16 + $0x18] sm:$0xff] %v4310_v12  ;;  %v4309_v16 = vmax.f32 %v4277_v18, 0.0  ;;  %v3896_v53 = vsel %vm3872_vm1, %v3863_v36, %v3596_v25  ;;  %v4756_v12 = vpop.f32.mrf.mxu1  ;;  %v9919_v18 = vld [vmem:[#allocation43_spill] sm:$0xff]  ;;  %v9920_v25 = vld [vmem:[#allocation36_spill] sm:$0xff] }
 0x559   : > { %v3310_v0 = vpop.permute.xlu0 %3309  ;;  %4845 = vmatmul.mubr.msk.f32.gmra.mxu0 %vm3921_vm5, %v3896_v53  ;;  %v3671_v19 = vsel %vm1574_vm3, %v8083_v39, %v9919_v18  ;;  %v9921_v53 = vld [vmem:[#allocation99_spill] sm:$0xff] }
 0x55a   : > { %4341 = vst [vmem:[%s8845_s16 + $0x10] sm:$0xff] %v4309_v16  ;;  %v3798_v52 = vsel %vm3773_vm14, %v3765_v37, %v3310_v0  ;;  %v3703_v16 = vsel %vm1640_vm7, %v3671_v19, %v9920_v25 }
 0x55b   : > { %v3406_v21 = vpop.permute.xlu1 %3405  ;;  %v3735_v0 = vsel %vm1706_vm9, %v3703_v16, %v9921_v53 }
 0x55c   : > { %v3831_v4 = vsel %vm3806_vm15, %v3798_v52, %v3406_v21  ;;  %v3672_v52 = vsel %vm1574_vm3, %v8075_v2, %v9922_v50 }
 0x55d   : > { %v3312_v59 = vpop.permute.xlu0 %3311 }
 0x55e   : > { %v3799_v9 = vsel %vm3773_vm14, %v3766_v51, %v3312_v59  ;;  %v2286_v59 = vpop.f32.mrf.mxu1 }
 0x55f   : > { %v3502_v40 = vpop.permute.xlu1 %3501 }
 0x560   : > { %v3864_v7 = vsel %vm3839_vm0, %v3831_v4, %v3502_v40  ;;  %v2292_v40 = vadd.f32 %v4756_v12, %v8805_v28 }
 0x561   : > { %v3408_v3 = vpop.permute.xlu0 %3407 }
 0x562   : > { %v3832_v60 = vsel %vm3806_vm15, %v3799_v9, %v3408_v3  ;;  %v2287_v3 = vadd.f32 %v8805_v28, %v2286_v59  ;;  %v4250_v38 = vsel %vm1574_vm3, %v2292_v40, 0.0 }
 0x563   : > { %v3504_v27 = vpop.permute.xlu1 %3503 }
 0x564   : > { %v3865_v55 = vsel %vm3839_vm0, %v3832_v60, %v3504_v27  ;;  %v4249_v56 = vsel %vm1574_vm3, %v2287_v3, 0.0 }
 0x565   : > { %v3218_v31 = vpop.permute.xlu0 %3217  ;;  %v4819_v45 = vpop.f32.mrf.mxu0 }
 0x566   : > { %v4110_v5 = vadd.f32 %v4819_v45, %v8822_v47  ;;  %v3767_v54 = vsel %vm1772_vm11, %v3735_v0, %v3218_v31  ;;  %v9923_v45 = vld [vmem:[#allocation124_spill] sm:$0xff] }
 0x567   : > { %v3220_v14 = vpop.permute.xlu1 %3219  ;;  %v4104_v62 = vpop.f32.mrf.mxu0  ;;  %v3704_v51 = vsel %vm1640_vm7, %v3672_v52, %v9923_v45 }
 0x568   : > { %v4280_v11 = vadd.f32 %v4248_v23, %v4110_v5  ;;  %v4105_v34 = vadd.f32 %v8822_v47, %v4104_v62  ;;  %v9924_v23 = vld [vmem:[#allocation162_spill] sm:$0xff] }
 0x569   : > { %v3598_v42 = vpop.permute.xlu0 %3597  ;;  %v3736_v9 = vsel %vm1706_vm9, %v3704_v51, %v9924_v23 }
 0x56a   : > { %v4312_v30 = vmax.f32 %v4280_v11, 0.0  ;;  %v4279_v35 = vadd.f32 %v4247_v20, %v4105_v34  ;;  %v3897_v1 = vsel %vm3872_vm1, %v3864_v7, %v3598_v42  ;;  %v3768_v4 = vsel %vm1772_vm11, %v3736_v9, %v3220_v14  ;;  %v4759_v7 = vpop.f32.mrf.mxu1 }
 0x56b   : > { %v3600_v58 = vpop.permute.xlu1 %3599  ;;  %4847 = vmatprep.mubr.msk.f32.mxu0 %vm3921_vm5, %v3897_v1  ;;  %v2302_v14 = vadd.f32 %v4759_v7, %v8805_v28 }
 0x56c   : > { %4344 = vst [vmem:[%s8845_s16 + $0x28] sm:$0xff] %v4312_v30  ;;  %v4311_v33 = vmax.f32 %v4279_v35, 0.0  ;;  %v3898_v49 = vsel %vm3872_vm1, %v3865_v55, %v3600_v58  ;;  %v2296_v1 = vpop.f32.mrf.mxu1  ;;  %v9925_v55 = vld [vmem:[#allocation34_spill] sm:$0xff] }
 0x56d   : > { %v3314_v57 = vpop.permute.xlu0 %3313  ;;  %4848 = vmatmul.mubr.msk.f32.gmra.mxu0 %vm3921_vm5, %v3898_v49  ;;  %v3673_v58 = vsel %vm1574_vm3, %v9866_v6, %v9925_v55  ;;  %v9926_v49 = vld [vmem:[#allocation60_spill] sm:$0xff]  ;;  %v4252_v16 = vsel %vm1574_vm3, %v2302_v14, 0.0 }
 0x56e   : > { %4343 = vst [vmem:[%s8845_s16 + $0x20] sm:$0xff] %v4311_v33  ;;  %v3800_v29 = vsel %vm3773_vm14, %v3767_v54, %v3314_v57  ;;  %v3705_v57 = vsel %vm1640_vm7, %v3673_v58, %v9926_v49  ;;  %v9933_v55 = vld [vmem:[#allocation160_spill] sm:$0xff] }
 0x56f   : > { %v3410_v63 = vpop.permute.xlu1 %3409 }
 0x570   : > { %v3833_v24 = vsel %vm3806_vm15, %v3800_v29, %v3410_v63  ;;  %v2297_v63 = vadd.f32 %v8805_v28, %v2296_v1 }
 0x571   : > { %v3316_v44 = vpop.permute.xlu0 %3315 }
 0x572   : > { %v3801_v60 = vsel %vm3773_vm14, %v3768_v4, %v3316_v44  ;;  %v9927_v44 = vld [vmem:[#allocation101_spill] sm:$0xff]  ;;  %v4251_v40 = vsel %vm1574_vm3, %v2297_v63, 0.0 }
 0x573   : > { %v3506_v36 = vpop.permute.xlu1 %3505  ;;  %v3737_v12 = vsel %vm1706_vm9, %v3705_v57, %v9927_v44 }
 0x574   : > { %v3866_v17 = vsel %vm3839_vm0, %v3833_v24, %v3506_v36 }
 0x575   : > { %v3412_v21 = vpop.permute.xlu0 %3411 }
 0x576   : > { %v3834_v34 = vsel %vm3806_vm15, %v3801_v60, %v3412_v21  ;;  %v9930_v60 = vld [vmem:[#allocation156_spill] sm:$0xff] }
 0x577   : > { %v3222_v15 = vpop.permute.xlu1 %3221 }
 0x578   : > { %v3769_v36 = vsel %vm1772_vm11, %v3737_v12, %v3222_v15 }
 0x579   : > { %v8930_v32 = vpop.permute.xlu0 %3127  ;;  %v4822_v39 = vpop.f32.mrf.mxu0 }
 0x57a   : > { %v4120_v48 = vadd.f32 %v4822_v39, %v8822_v47 }
 0x57b   : > { %v3602_v46 = vpop.permute.xlu1 %3601  ;;  %v4114_v8 = vpop.f32.mrf.mxu0 }
 0x57c   : > { %v4282_v13 = vadd.f32 %v4250_v38, %v4120_v48  ;;  %v3899_v27 = vsel %vm3872_vm1, %v3866_v17, %v3602_v46  ;;  %v4115_v43 = vadd.f32 %v8822_v47, %v4114_v8  ;;  %v9928_v17 = vld [vmem:[#allocation52_spill] sm:$0xff] }
 0x57d   : > { %v3508_v37 = vpop.permute.xlu0 %3507  ;;  %4850 = vmatprep.mubr.msk.f32.mxu0 %vm3921_vm5, %v3899_v27  ;;  %v3674_v46 = vsel %vm1574_vm3, %v9873_v61, %v9928_v17 }
 0x57e   : > { %v4314_v22 = vmax.f32 %v4282_v13, 0.0  ;;  %v4281_v41 = vadd.f32 %v4249_v56, %v4115_v43  ;;  %v3867_v2 = vsel %vm3839_vm0, %v3834_v34, %v3508_v37  ;;  %v9929_v13 = vld [vmem:[#allocation51_spill] sm:$0xff] }
 0x57f   : > { %v3318_v31 = vpop.permute.xlu1 %3317  ;;  %v3706_v27 = vsel %vm1640_vm7, %v3674_v46, %v9929_v13 }
 0x580   : > { %4346 = vst [vmem:[%s8845_s16 + $0x38] sm:$0xff] %v4314_v22  ;;  %v4313_v5 = vmax.f32 %v4281_v41, 0.0  ;;  %v3802_v6 = vsel %vm3773_vm14, %v3769_v36, %v3318_v31  ;;  %v3738_v43 = vsel %vm1706_vm9, %v3706_v27, %v8930_v32  ;;  %v4762_v41 = vpop.f32.mrf.mxu1 }
 0x581   : > { %v3224_v62 = vpop.permute.xlu0 %3223  ;;  %v2312_v23 = vadd.f32 %v4762_v41, %v8805_v28 }
 0x582   : > { %4345 = vst [vmem:[%s8845_s16 + $0x30] sm:$0xff] %v4313_v5  ;;  %v3770_v37 = vsel %vm1772_vm11, %v3738_v43, %v3224_v62  ;;  %v2306_v51 = vpop.f32.mrf.mxu1 }
 0x583   : > { %v3320_v11 = vpop.permute.xlu1 %3319  ;;  %v2307_v32 = vadd.f32 %v8805_v28, %v2306_v51 }
 0x584   : > { %v3803_v50 = vsel %vm3773_vm14, %v3770_v37, %v3320_v11  ;;  %v3676_v11 = vsel %vm1574_vm3, %v8697_v10, %v9930_v60 }
 0x585   : > { %v3604_v20 = vpop.permute.xlu0 %3603  ;;  %v4253_v57 = vsel %vm1574_vm3, %v2307_v32, 0.0 }
 0x586   : > { %v3900_v42 = vsel %vm3872_vm1, %v3867_v2, %v3604_v20  ;;  %v4254_v2 = vsel %vm1574_vm3, %v2312_v23, 0.0  ;;  %v9931_v20 = vld [vmem:[#allocation45_spill] sm:$0xff] }
 0x587   : > { %v8954_v30 = vpop.permute.xlu1 %3129  ;;  %4851 = vmatmul.mubr.msk.f32.gmra.mxu0 %vm3921_vm5, %v3900_v42  ;;  %v3675_v7 = vsel %vm1574_vm3, %v9878_v26, %v9931_v20  ;;  %v9932_v42 = vld [vmem:[#allocation135_spill] sm:$0xff] }
 0x588   : > { %v3707_v58 = vsel %vm1640_vm7, %v3675_v7, %v9933_v55 }
 0x589   : > { %v3414_v35 = vpop.permute.xlu0 %3413  ;;  %v3739_v63 = vsel %vm1706_vm9, %v3707_v58, %v8954_v30 }
 0x58a   : > { %v3835_v21 = vsel %vm3806_vm15, %v3802_v6, %v3414_v35  ;;  %v3708_v35 = vsel %vm1640_vm7, %v3676_v11, %v9932_v42 }
 0x58b   : > { %v3510_v33 = vpop.permute.xlu1 %3509 }
 0x58c   : > { %v3868_v15 = vsel %vm3839_vm0, %v3835_v21, %v3510_v33 }
 0x58d   : > { %v3416_v18 = vpop.permute.xlu0 %3415  ;;  %v4825_v19 = vpop.f32.mrf.mxu0 }
 0x58e   : > { %v4130_v25 = vadd.f32 %v4825_v19, %v8822_v47  ;;  %v3836_v61 = vsel %vm3806_vm15, %v3803_v50, %v3416_v18 }
 0x58f   : > { %v3226_v53 = vpop.permute.xlu1 %3225  ;;  %v4124_v0 = vpop.f32.mrf.mxu0 }
 0x590   : > { %v4284_v59 = vadd.f32 %v4252_v16, %v4130_v25  ;;  %v4125_v54 = vadd.f32 %v8822_v47, %v4124_v0  ;;  %v3771_v12 = vsel %vm1772_vm11, %v3739_v63, %v3226_v53 }
 0x591   : > { %v3132_v29 = vpop.permute.xlu0 %3131 }
 0x592   : > { %v4316_v3 = vmax.f32 %v4284_v59, 0.0  ;;  %v4283_v39 = vadd.f32 %v4251_v40, %v4125_v54  ;;  %v3740_v33 = vsel %vm1706_vm9, %v3708_v35, %v3132_v29  ;;  %v4765_v29 = vpop.f32.mrf.mxu1 }
 0x593   : > { %v3606_v24 = vpop.permute.xlu1 %3605 }
 0x594   : > { %4348 = vst [vmem:[%s8845_s16 + $0x48] sm:$0xff] %v4316_v3  ;;  %v4315_v48 = vmax.f32 %v4283_v39, 0.0  ;;  %v3901_v38 = vsel %vm3872_vm1, %v3868_v15, %v3606_v24  ;;  %v2316_v3 = vpop.f32.mrf.mxu1  ;;  %v2322_v39 = vadd.f32 %v4765_v29, %v8805_v28 }
 0x595   : > { %v3512_v8 = vpop.permute.xlu0 %3511  ;;  %4853 = vmatprep.mubr.msk.f32.mxu0 %vm3921_vm5, %v3901_v38  ;;  %v2317_v15 = vadd.f32 %v8805_v28, %v2316_v3 }
 0x596   : > { %4347 = vst [vmem:[%s8845_s16 + $0x40] sm:$0xff] %v4315_v48  ;;  %v3869_v31 = vsel %vm3839_vm0, %v3836_v61, %v3512_v8  ;;  %v4256_v38 = vsel %vm1574_vm3, %v2322_v39, 0.0  ;;  %v4768_v37 = vpop.f32.mrf.mxu1 }
 0x597   : > { %v3322_v56 = vpop.permute.xlu1 %3321  ;;  %v4255_v13 = vsel %vm1574_vm3, %v2317_v15, 0.0  ;;  %v2332_v41 = vadd.f32 %v4768_v37, %v8805_v28 }
 0x598   : > { %v3804_v36 = vsel %vm3773_vm14, %v3771_v12, %v3322_v56 }
 0x599   : > { %v3228_v22 = vpop.permute.xlu0 %3227 }
 0x59a   : > { %v3772_v26 = vsel %vm1772_vm11, %v3740_v33, %v3228_v22  ;;  %v2326_v22 = vpop.f32.mrf.mxu1 }
 0x59b   : > { %v3324_v52 = vpop.permute.xlu1 %3323  ;;  %v2327_v50 = vadd.f32 %v8805_v28, %v2326_v22 }
 0x59c   : > { %v3805_v25 = vsel %vm3773_vm14, %v3772_v26, %v3324_v52 }
 0x59d   : > { %v3608_v45 = vpop.permute.xlu0 %3607  ;;  %v4257_v23 = vsel %vm1574_vm3, %v2327_v50, 0.0 }
 0x59e   : > { %v3902_v5 = vsel %vm3872_vm1, %v3869_v31, %v3608_v45  ;;  %v4258_v31 = vsel %vm1574_vm3, %v2332_v41, 0.0 }
 0x59f   : > { %v3420_v9 = vpop.permute.xlu1 %3419  ;;  %4854 = vmatmul.mubr.msk.f32.gmra.mxu0 %vm3921_vm5, %v3902_v5 }
 0x5a0   : > { %v3838_v21 = vsel %vm3806_vm15, %v3805_v25, %v3420_v9 }
 0x5a1   : > { %v3418_v62 = vpop.permute.xlu0 %3417  ;;  %v4828_v4 = vpop.f32.mrf.mxu0 }
 0x5a2   : > { %v4140_v34 = vadd.f32 %v4828_v4, %v8822_v47  ;;  %v3837_v16 = vsel %vm3806_vm15, %v3804_v36, %v3418_v62  ;;  %v4771_v4 = vpop.f32.mrf.mxu1 }
 0x5a3   : > { %v3516_v1 = vpop.permute.xlu1 %3515  ;;  %v4134_v14 = vpop.f32.mrf.mxu0  ;;  %v2342_v11 = vadd.f32 %v4771_v4, %v8805_v28 }
 0x5a4   : > { %v4286_v10 = vadd.f32 %v4254_v2, %v4140_v34  ;;  %v4135_v49 = vadd.f32 %v8822_v47, %v4134_v14  ;;  %v3871_v54 = vsel %vm3839_vm0, %v3838_v21, %v3516_v1  ;;  %v2336_v60 = vpop.f32.mrf.mxu1 }
 0x5a5   : > { %v3514_v44 = vpop.permute.xlu0 %3513  ;;  %v2337_v34 = vadd.f32 %v8805_v28, %v2336_v60  ;;  %v4260_v7 = vsel %vm1574_vm3, %v2342_v11, 0.0 }
 0x5a6   : > { %v4318_v18 = vmax.f32 %v4286_v10, 0.0  ;;  %v4285_v19 = vadd.f32 %v4253_v57, %v4135_v49  ;;  %v3870_v30 = vsel %vm3839_vm0, %v3837_v16, %v3514_v44  ;;  %v4774_v10 = vpop.f32.mrf.mxu1 }
 0x5a7   : > { %v3612_v0 = vpop.permute.xlu1 %3611  ;;  %v4259_v14 = vsel %vm1574_vm3, %v2337_v34, 0.0  ;;  %v2352_v57 = vadd.f32 %v4774_v10, %v8805_v28 }
 0x5a8   : > { %4350 = vst [vmem:[%s8845_s16 + $0x58] sm:$0xff] %v4318_v18  ;;  %v4317_v6 = vmax.f32 %v4285_v19, 0.0  ;;  %v3904_v40 = vsel %vm3872_vm1, %v3871_v54, %v3612_v0  ;;  %v2346_v49 = vpop.f32.mrf.mxu1 }
 0x5a9   : > { %v3610_v59 = vpop.permute.xlu0 %3609  ;;  %v2347_v63 = vadd.f32 %v8805_v28, %v2346_v49  ;;  %v4262_v12 = vsel %vm1574_vm3, %v2352_v57, 0.0 }
 0x5aa   : > { %4349 = vst [vmem:[%s8845_s16 + $0x50] sm:$0xff] %v4317_v6  ;;  %v3903_v53 = vsel %vm3872_vm1, %v3870_v30, %v3610_v59  ;;  %v4777_v21 = vpop.f32.mrf.mxu1 }
 0x5ab   : > { %4856 = vmatprep.mubr.msk.f32.mxu0 %vm3921_vm5, %v3903_v53  ;;  %v4261_v25 = vsel %vm1574_vm3, %v2347_v63, 0.0  ;;  %v2362_v59 = vadd.f32 %v4777_v21, %v8805_v28 }
 0x5ac   : > { %4857 = vmatmul.mubr.msk.f32.gmra.mxu0 %vm3921_vm5, %v3904_v40  ;;  %v2356_v30 = vpop.f32.mrf.mxu1 }
 0x5ad   : > { %v2357_v54 = vadd.f32 %v8805_v28, %v2356_v30  ;;  %v4264_v29 = vsel %vm1574_vm3, %v2362_v59, 0.0 }
 0x5b5   : > { %v4831_v24 = vpop.f32.mrf.mxu0 }
 0x5b6   : > { %v4150_v48 = vadd.f32 %v4831_v24, %v8822_v47  ;;  %v4263_v24 = vsel %vm1574_vm3, %v2357_v54, 0.0 }
 0x5b7   : > { %v4144_v17 = vpop.f32.mrf.mxu0 }
 0x5b8   : > { %v4288_v46 = vadd.f32 %v4256_v38, %v4150_v48  ;;  %v4145_v8 = vadd.f32 %v8822_v47, %v4144_v17 }
 0x5ba   : > { %v4320_v27 = vmax.f32 %v4288_v46, 0.0  ;;  %v4287_v43 = vadd.f32 %v4255_v13, %v4145_v8  ;;  %v4780_v46 = vpop.f32.mrf.mxu1 }
 0x5bb   : > { %v2372_v13 = vadd.f32 %v4780_v46, %v8805_v28 }
 0x5bc   : > { %4352 = vst [vmem:[%s8845_s16 + $0x68] sm:$0xff] %v4320_v27  ;;  %v4319_v56 = vmax.f32 %v4287_v43, 0.0  ;;  %v2366_v8 = vpop.f32.mrf.mxu1 }
 0x5bd   : > { %v2367_v27 = vadd.f32 %v8805_v28, %v2366_v8  ;;  %v4266_v37 = vsel %vm1574_vm3, %v2372_v13, 0.0 }
 0x5be   : > { %4351 = vst [vmem:[%s8845_s16 + $0x60] sm:$0xff] %v4319_v56 }
 0x5c9   : > { %v4834_v52 = vpop.f32.mrf.mxu0 }
 0x5ca   : > { %v4160_v61 = vadd.f32 %v4834_v52, %v8822_v47  ;;  %v4265_v52 = vsel %vm1574_vm3, %v2367_v27, 0.0 }
 0x5cb   : > { %v4154_v45 = vpop.f32.mrf.mxu0 }
 0x5cc   : > { %v4290_v51 = vadd.f32 %v4258_v31, %v4160_v61  ;;  %v4155_v5 = vadd.f32 %v8822_v47, %v4154_v45 }
 0x5ce   : > { %v4322_v9 = vmax.f32 %v4290_v51, 0.0  ;;  %v4289_v32 = vadd.f32 %v4257_v23, %v4155_v5  ;;  %v4783_v51 = vpop.f32.mrf.mxu1 }
 0x5cf   : > { %v2382_v23 = vadd.f32 %v4783_v51, %v8805_v28 }
 0x5d0   : > { %4354 = vst [vmem:[%s8845_s16 + $0x78] sm:$0xff] %v4322_v9  ;;  %v4321_v62 = vmax.f32 %v4289_v32, 0.0  ;;  %v2376_v5 = vpop.f32.mrf.mxu1 }
 0x5d1   : > { %v2377_v9 = vadd.f32 %v8805_v28, %v2376_v5  ;;  %v4268_v4 = vsel %vm1574_vm3, %v2382_v23, 0.0 }
 0x5d2   : > { %4353 = vst [vmem:[%s8845_s16 + $0x70] sm:$0xff] %v4321_v62 }
 0x5dd   : > { %v4837_v2 = vpop.f32.mrf.mxu0 }
 0x5de   : > { %v4170_v20 = vadd.f32 %v4837_v2, %v8822_v47  ;;  %v4267_v2 = vsel %vm1574_vm3, %v2377_v9, 0.0 }
 0x5df   : > { %v4164_v42 = vpop.f32.mrf.mxu0 }
 0x5e0   : > { %v4292_v35 = vadd.f32 %v4260_v7, %v4170_v20  ;;  %v4165_v1 = vadd.f32 %v8822_v47, %v4164_v42 }
 0x5e2   : > { %v4324_v55 = vmax.f32 %v4292_v35, 0.0  ;;  %v4291_v58 = vadd.f32 %v4259_v14, %v4165_v1  ;;  %v4786_v35 = vpop.f32.mrf.mxu1 }
 0x5e3   : > { %v2392_v14 = vadd.f32 %v4786_v35, %v8805_v28 }
 0x5e4   : > { %4356 = vst [vmem:[%s8845_s16 + $0x88] sm:$0xff] %v4324_v55  ;;  %v4323_v33 = vmax.f32 %v4291_v58, 0.0  ;;  %v2386_v1 = vpop.f32.mrf.mxu1 }
 0x5e5   : > { %v2387_v55 = vadd.f32 %v8805_v28, %v2386_v1  ;;  %v4270_v10 = vsel %vm1574_vm3, %v2392_v14, 0.0 }
 0x5e6   : > { %4355 = vst [vmem:[%s8845_s16 + $0x80] sm:$0xff] %v4323_v33 }
 0x5f1   : > { %v4840_v26 = vpop.f32.mrf.mxu0 }
 0x5f2   : > { %v4180_v44 = vadd.f32 %v4840_v26, %v8822_v47  ;;  %v4269_v26 = vsel %vm1574_vm3, %v2387_v55, 0.0 }
 0x5f3   : > { %v4174_v18 = vpop.f32.mrf.mxu0 }
 0x5f4   : > { %v4294_v19 = vadd.f32 %v4262_v12, %v4180_v44  ;;  %v4175_v36 = vadd.f32 %v8822_v47, %v4174_v18 }
 0x5f6   : > { %v4326_v16 = vmax.f32 %v4294_v19, 0.0  ;;  %v4293_v6 = vadd.f32 %v4261_v25, %v4175_v36  ;;  %v4789_v19 = vpop.f32.mrf.mxu1 }
 0x5f7   : > { %v2402_v25 = vadd.f32 %v4789_v19, %v8805_v28 }
 0x5f8   : > { %4358 = vst [vmem:[%s8845_s16 + $0x98] sm:$0xff] %v4326_v16  ;;  %v4325_v0 = vmax.f32 %v4293_v6, 0.0  ;;  %v2396_v36 = vpop.f32.mrf.mxu1 }
 0x5f9   : > { %v2397_v16 = vadd.f32 %v8805_v28, %v2396_v36  ;;  %v4272_v21 = vsel %vm1574_vm3, %v2402_v25, 0.0 }
 0x5fa   : > { %4357 = vst [vmem:[%s8845_s16 + $0x90] sm:$0xff] %v4325_v0 }
 0x605   : > { %v4843_v53 = vpop.f32.mrf.mxu0 }
 0x606   : > { %v4190_v40 = vadd.f32 %v4843_v53, %v8822_v47  ;;  %v4271_v53 = vsel %vm1574_vm3, %v2397_v16, 0.0 }
 0x607   : > { %v4184_v3 = vpop.f32.mrf.mxu0 }
 0x608   : > { %v4296_v39 = vadd.f32 %v4264_v29, %v4190_v40  ;;  %v4185_v15 = vadd.f32 %v8822_v47, %v4184_v3  ;;  %v4792_v3 = vpop.f32.mrf.mxu1 }
 0x60a   : > { %v4328_v48 = vmax.f32 %v4296_v39, 0.0  ;;  %v4295_v38 = vadd.f32 %v4263_v24, %v4185_v15  ;;  %v2406_v15 = vpop.f32.mrf.mxu1  ;;  %v2412_v24 = vadd.f32 %v4792_v3, %v8805_v28 }
 0x60c   : > { %4360 = vst [vmem:[%s8845_s16 + $0xa8] sm:$0xff] %v4328_v48  ;;  %v4327_v17 = vmax.f32 %v4295_v38, 0.0  ;;  %v2407_v48 = vadd.f32 %v8805_v28, %v2406_v15  ;;  %v4274_v46 = vsel %vm1574_vm3, %v2412_v24, 0.0 }
 0x60e   : > { %4359 = vst [vmem:[%s8845_s16 + $0xa0] sm:$0xff] %v4327_v17 }
 0x619   : > { %v4846_v43 = vpop.f32.mrf.mxu0 }
 0x61a   : > { %v4200_v56 = vadd.f32 %v4846_v43, %v8822_v47  ;;  %v4273_v43 = vsel %vm1574_vm3, %v2407_v48, 0.0 }
 0x61b   : > { %v4194_v22 = vpop.f32.mrf.mxu0 }
 0x61c   : > { %v4298_v41 = vadd.f32 %v4266_v37, %v4200_v56  ;;  %v4195_v50 = vadd.f32 %v8822_v47, %v4194_v22 }
 0x61e   : > { %v4330_v61 = vmax.f32 %v4298_v41, 0.0  ;;  %v4297_v31 = vadd.f32 %v4265_v52, %v4195_v50 }
 0x620   : > { %4362 = vst [vmem:[%s8845_s16 + $0xb8] sm:$0xff] %v4330_v61  ;;  %v4329_v45 = vmax.f32 %v4297_v31, 0.0 }
 0x622   : > { %4361 = vst [vmem:[%s8845_s16 + $0xb0] sm:$0xff] %v4329_v45 }
 0x62d   : > { %v4849_v32 = vpop.f32.mrf.mxu0 }
 0x62e   : > { %v4210_v62 = vadd.f32 %v4849_v32, %v8822_v47 }
 0x62f   : > { %v4204_v60 = vpop.f32.mrf.mxu0 }
 0x630   : > { %v4300_v11 = vadd.f32 %v4268_v4, %v4210_v62  ;;  %v4205_v34 = vadd.f32 %v8822_v47, %v4204_v60 }
 0x632   : > { %v4332_v20 = vmax.f32 %v4300_v11, 0.0  ;;  %v4299_v7 = vadd.f32 %v4267_v2, %v4205_v34 }
 0x634   : > { %4364 = vst [vmem:[%s8845_s16 + $0xc8] sm:$0xff] %v4332_v20  ;;  %v4331_v42 = vmax.f32 %v4299_v7, 0.0 }
 0x636   : > { %4363 = vst [vmem:[%s8845_s16 + $0xc0] sm:$0xff] %v4331_v42 }
 0x647   : > { %v4852_v58 = vpop.f32.mrf.mxu0 }
 0x648   : > { %v4220_v33 = vadd.f32 %v4852_v58, %v8822_v47 }
 0x649   : > { %v4214_v49 = vpop.f32.mrf.mxu0 }
 0x64a   : > { %v4302_v57 = vadd.f32 %v4270_v10, %v4220_v33  ;;  %v4215_v63 = vadd.f32 %v8822_v47, %v4214_v49 }
 0x64c   : > { %v4334_v44 = vmax.f32 %v4302_v57, 0.0  ;;  %v4301_v12 = vadd.f32 %v4269_v26, %v4215_v63 }
 0x64e   : > { %4366 = vst [vmem:[%s8845_s16 + $0xd8] sm:$0xff] %v4334_v44  ;;  %v4333_v18 = vmax.f32 %v4301_v12, 0.0 }
 0x650   : > { %4365 = vst [vmem:[%s8845_s16 + $0xd0] sm:$0xff] %v4333_v18 }
 0x65f   : > { %v4855_v6 = vpop.f32.mrf.mxu0 }
 0x660   : > { %v4230_v0 = vadd.f32 %v4855_v6, %v8822_v47 }
 0x661   : > { %v4224_v30 = vpop.f32.mrf.mxu0 }
 0x662   : > { %v4304_v59 = vadd.f32 %v4272_v21, %v4230_v0  ;;  %v4225_v54 = vadd.f32 %v8822_v47, %v4224_v30 }
 0x664   : > { %v4336_v40 = vmax.f32 %v4304_v59, 0.0  ;;  %v4303_v29 = vadd.f32 %v4271_v53, %v4225_v54 }
 0x666   : > { %4368 = vst [vmem:[%s8845_s16 + $0xe8] sm:$0xff] %v4336_v40  ;;  %v4335_v39 = vmax.f32 %v4303_v29, 0.0 }
 0x668   : > { %4367 = vst [vmem:[%s8845_s16 + $0xe0] sm:$0xff] %v4335_v39 }
 0x66c   : > { %v4858_v38 = vpop.f32.mrf.mxu0 }
 0x66d   : > { %v4240_v17 = vadd.f32 %v4858_v38, %v8822_v47 }
 0x66e   : > { %v4234_v8 = vpop.f32.mrf.mxu0 }
 0x66f   : > { %v4306_v13 = vadd.f32 %v4274_v46, %v4240_v17  ;;  %v4235_v27 = vadd.f32 %v8822_v47, %v4234_v8 }
 0x671   : > { %v4338_v56 = vmax.f32 %v4306_v13, 0.0  ;;  %v4305_v37 = vadd.f32 %v4273_v43, %v4235_v27 }
 0x673   : > { %4370 = vst [vmem:[%s8845_s16 + $0xf8] sm:$0xff] %v4338_v56  ;;  %v4337_v28 = vmax.f32 %v4305_v37, 0.0 }
 0x675   : > { %4369 = vst [vmem:[%s8845_s16 + $0xf0] sm:$0xff] %v4337_v28 }
 0x676   : > { %4982 = shalt.err (!%p4979_p3)
}
 0x677   : > { %s4983_s21 = scalar_lea.hbm %s9107_s9, 4096  ;;  %s4987_s16 = scalar_lea.hbm %s9163_s7, 8192 }
 0x678   : > { %p4984_p4 = scmp.ne.s32.totalorder %s9107_s9, %s4983_s21  ;;  %p4988_p9 = scmp.lt.s32.totalorder %s9107_s9, %s9163_s7 }
 0x679   : > { %p4989_p10 = scmp.lt.s32.totalorder %s4987_s16, %s4983_s21 }
 0x67a   : > { %p4985_p7 = pnand %p4984_p4, %p5124_p5 }
 0x67b   : > { %p4990_p11 = por %p4989_p10, %p4988_p9 }
 0x67c   : > { %p4986_p8 = pneg %p4985_p7 }
 0x67e   : > { %p4991_p12 = pnand %p4990_p11, %p4986_p8 }
 0x680   : > { %4994 = shalt.err (!%p4991_p12)
}
 0x681   : > { %s5045_s22 = smov 128  }
 0x682   : > { %4869 = dma.vmem_to_hbm [thread:$0]  (%p5124_p5), %s9110_s18, 4096, %s9107_s9, %s9115_s28, %s5045_s22, %s5045_s22, %s5033_s19  }
 0x683 PF: > { %p4875_p13 = scmp.ge.s32.totalorder %s5029_s27, 2  ;;  %s4400_s13 = sand.u32 1, %s5017_s24  }
 0x684   : > { %s4401_s23 = scalar_lea.sflag [#allocation5], %s4400_s13 }
 0x685   : > { %p4872_p0 = pnand %p4875_p13, %p5128_p6 }
 0x687   : > { %p4873_p1 = pneg %p4872_p0 }
 0x689   : > { %5012 = dma.done.wait (%p4873_p1), %s4401_s23, 4096  }
 0x68a   : > { %5014 = vsyncadd (%p4873_p1), %s4401_s23, 4294963200  ;;  %p17_p2 = scmp.ge.s32.totalorder %s5111_s30, 4   ;;  %s9934_s24 = smov %s5021_s25 }
 0x68b   : > { %s9935_s25 = smov %s5025_s26  ;;  %s9936_s26 = smov %s5122_s10 }
 0x68c   : > { %s9937_s27 = smov %s5111_s30  ;;  %19 = sbr.rel (!%p17_p2) target bundleno = 3 (0x3), region = 85 }
 0x691   :  { %4406 = vsyncpa [#allocation5], 1 }
 0x692   :  { %4408 = vsyncpa [#allocation5 + $0x1], 1 }

</bundles_post_ra>
